<compile_context>
chip_gen: v6e
topology: v6e:2x2x1
jax: 0.10.0
libtpu: 0.0.40
codegen_flags: <defaults>
</compile_context>

<pallas_src>
import functools

import numpy as np
import jax
import jax.numpy as jnp
from jax.experimental import pallas as pl
from jax.experimental.pallas import tpu as pltpu


def _ceil_to(x, m):
    return ((x + m - 1) // m) * m


# ---------------------------------------------------------------------------
# Pallas kernel: single-block fused  (x @ w) + b  [+ tanh]
#   x: (tm, Kp) bf16   w: (Kp, Np) bf16   b: (1, Np) f32   out: (tm, Np) f32
# ---------------------------------------------------------------------------
def _mm_bias_act_kernel(x_ref, w_ref, b_ref, o_ref, *, post_act):
    y = jnp.dot(x_ref[...], w_ref[...], preferred_element_type=jnp.float32)
    y = y + b_ref[...]
    if post_act == "tanh":          # outermost nn.Tanh()
        y = jnp.tanh(y)
    o_ref[...] = y.astype(o_ref.dtype)


def _matmul_bias_act(x, w, b, post_act="none"):
    """x:(Mp,Kp) bf16, w:(Kp,Np) bf16, b:(1,Np) f32 -> (Mp,Np) f32."""
    mp, kp = x.shape
    kp2, npad = w.shape
    assert kp == kp2 and b.shape == (1, npad)
    # Parallel M axis only for the big-M calls (v7x megacore); one step otherwise.
    tm = 256 if (mp >= 512 and mp % 256 == 0) else mp
    kernel = functools.partial(_mm_bias_act_kernel, post_act=post_act)
    return pl.pallas_call(
        kernel,
        out_shape=jax.ShapeDtypeStruct((mp, npad), jnp.float32),
        grid_spec=pltpu.PrefetchScalarGridSpec(
            num_scalar_prefetch=0,
            grid=(mp // tm,),
            in_specs=[
                pl.BlockSpec((tm, kp), lambda i: (i, 0)),
                pl.BlockSpec((kp, npad), lambda i: (0, 0)),
                pl.BlockSpec((1, npad), lambda i: (0, 0)),
            ],
            out_specs=pl.BlockSpec((tm, npad), lambda i: (i, 0)),
        ),
        compiler_params=pltpu.CompilerParams(
            dimension_semantics=("parallel",)),
    )(x, w, b)


# ---------------------------------------------------------------------------
# im2col glue (plain JAX); last-axis order = (kh, kw, cin)
# ---------------------------------------------------------------------------
def _im2col(x_nhwc, kh, kw, stride, pad):
    n, h, w, c = x_nhwc.shape
    xp = jnp.pad(x_nhwc, ((0, 0), (pad, pad), (pad, pad), (0, 0)))
    oh = (h + 2 * pad - kh) // stride + 1
    ow = (w + 2 * pad - kw) // stride + 1
    cols = []
    for i in range(kh):
        for j in range(kw):
            cols.append(xp[:, i:i + stride * oh:stride, j:j + stride * ow:stride, :])
    patches = jnp.concatenate(cols, axis=-1).reshape(n * oh * ow, kh * kw * c)
    return patches, oh, ow


# ---------------------------------------------------------------------------
# One-time (init) weight packing: padded, matmul-ready, bf16 constants
# ---------------------------------------------------------------------------
def _pack_down_pair(w1, b1, w2, b2):
    """Fuse content & style Conv2d(3,3,s=2,p=1) into one block-diagonal matmul.
    w1: (Cout, Cin1, 3, 3), w2: (Cout, Cin2, 3, 3)  (numpy)."""
    co1, ci1 = w1.shape[0], w1.shape[1]
    co2, ci2 = w2.shape[0], w2.shape[1]
    w1m = np.transpose(w1, (2, 3, 1, 0)).reshape(9 * ci1, co1)   # (kh,kw,ci) x co
    w2m = np.transpose(w2, (2, 3, 1, 0)).reshape(9 * ci2, co2)
    k, n = 9 * ci1 + 9 * ci2, co1 + co2
    kp, npad = _ceil_to(k, 128), _ceil_to(n, 128)
    w = np.zeros((kp, npad), np.float32)
    w[:9 * ci1, :co1] = w1m                    # content block
    w[9 * ci1:k, co1:n] = w2m                  # style block
    b = np.zeros((1, npad), np.float32)
    b[0, :n] = np.concatenate([b1, b2])
    return jnp.asarray(w).astype(jnp.bfloat16), jnp.asarray(b)


# phase/offset -> original ConvTranspose kernel tap (derived from
# oy = 2*iy - 1 + ky with padding=1, stride=2, k=4); None = unused tap.
_KMAP = ((3, 1, None), (None, 2, 0))


def _pack_up(u_w, u_b):
    """ConvTranspose2d(k=4,s=2,p=1) as 4-phase sub-pixel matmul over 3x3
    stride-1 pad-1 patches of the UN-dilated input.
    u_w: (Cin, Cout, 4, 4) numpy -> weight (9*Cin -> 4*Cout), padded/bf16."""
    cin, cout = u_w.shape[0], u_w.shape[1]
    wp = np.zeros((3, 3, cin, 2, 2, cout), np.float32)   # (r, c, ci, py, px, co)
    for py in range(2):
        for r in range(3):
            ky = _KMAP[py][r]
            if ky is None:
                continue
            for px in range(2):
                for c in range(3):
                    kx = _KMAP[px][c]
                    if kx is None:
                        continue
                    wp[r, c, :, py, px, :] = u_w[:, :, ky, kx]
    wmat = wp.reshape(9 * cin, 4 * cout)
    k, n = wmat.shape
    kp, npad = _ceil_to(k, 128), _ceil_to(n, 128)
    w = np.zeros((kp, npad), np.float32)
    w[:k, :n] = wmat
    b = np.zeros((1, npad), np.float32)
    b[0, :n] = np.tile(u_b, 4)                 # bias repeated per phase (py,px)
    return jnp.asarray(w).astype(jnp.bfloat16), jnp.asarray(b)


# ---------------------------------------------------------------------------
# Layer wrappers (activation hoisted to the feature map; bf16 into the kernel)
# ---------------------------------------------------------------------------
def _down_pair(c_nhwc, s_nhwc, wp, bp, inner_nc, pre_act):
    """Both per-level Conv2d(3,3,s=2,p=1) (content & style) in ONE pallas_call."""
    if pre_act:                                 # LeakyReLU(0.2) before the conv
        c_nhwc = jnp.where(c_nhwc > 0, c_nhwc, 0.2 * c_nhwc)
        s_nhwc = jnp.where(s_nhwc > 0, s_nhwc, 0.2 * s_nhwc)
    pc, oh, ow = _im2col(c_nhwc.astype(jnp.bfloat16), 3, 3, 2, 1)
    ps, _, _ = _im2col(s_nhwc.astype(jnp.bfloat16), 3, 3, 2, 1)
    patches = jnp.concatenate([pc, ps], axis=-1)
    m, k = patches.shape
    kp, _ = wp.shape
    mp = _ceil_to(m, 16)
    patches = jnp.pad(patches, ((0, mp - m), (0, kp - k)))
    y = _matmul_bias_act(patches, wp, bp)
    nb = c_nhwc.shape[0]
    y = y[:m, :2 * inner_nc].reshape(nb, oh, ow, 2 * inner_nc)
    return y[..., :inner_nc], y[..., inner_nc:]


def _up(x_nhwc, wp, bp, cout, post_act="none"):
    """ReLU -> ConvTranspose2d(k=4,s=2,p=1) [-> tanh], sub-pixel decomposition."""
    x = jnp.maximum(x_nhwc, 0.0).astype(jnp.bfloat16)   # nl_layer() = ReLU (f32)
    nb, h, w, _ = x.shape
    patches, _, _ = _im2col(x, 3, 3, 1, 1)               # (nb*h*w, 9*cin)
    m, k = patches.shape
    kp, _ = wp.shape
    mp = _ceil_to(m, 16)
    patches = jnp.pad(patches, ((0, mp - m), (0, kp - k)))
    y = _matmul_bias_act(patches, wp, bp, post_act=post_act)   # (mp, Np)
    y = y[:m, :4 * cout].reshape(nb, h, w, 2, 2, cout)         # (.., py, px, co)
    y = jnp.transpose(y, (0, 1, 3, 2, 4, 5)).reshape(nb, 2 * h, 2 * w, cout)
    return y


# ---------------------------------------------------------------------------
# MLFont: init (packed constant weights) + forward
# ---------------------------------------------------------------------------
def init_mlfont(key, input_content=1, input_style=1, output_nc=1, ngf=8):
    inner = [ngf, ngf * 2, ngf * 4, ngf * 8, ngf * 8]
    in_c = [input_content] + inner[:4]
    in_s = [input_style] + inner[:4]
    outer = [output_nc, ngf, ngf * 2, ngf * 4, ngf * 8]
    up_in = [3 * inner[0], 3 * inner[1], 3 * inner[2], 3 * inner[3], 2 * inner[4]]

    packed = []
    for lvl in range(5):
        key, k1, k2, k3 = jax.random.split(key, 4)
        d1_w = np.asarray(jax.random.normal(
            k1, (inner[lvl], in_c[lvl], 3, 3), jnp.float32)) / np.sqrt(9.0 * in_c[lvl])
        d2_w = np.asarray(jax.random.normal(
            k2, (inner[lvl], in_s[lvl], 3, 3), jnp.float32)) / np.sqrt(9.0 * in_s[lvl])
        u_w = np.asarray(jax.random.normal(
            k3, (up_in[lvl], outer[lvl], 4, 4), jnp.float32)) / np.sqrt(16.0 * up_in[lvl])
        d1_b = np.zeros((inner[lvl],), np.float32)
        d2_b = np.zeros((inner[lvl],), np.float32)
        u_b = np.zeros((outer[lvl],), np.float32)
        dw, db = _pack_down_pair(d1_w, d1_b, d2_w, d2_b)
        uw, ub = _pack_up(u_w, u_b)
        packed.append(dict(dw=dw, db=db, uw=uw, ub=ub))

    def forward(params, content_nchw, style_nchw):
        # NCHW in/out (PyTorch convention); NHWC internally.
        c = jnp.transpose(content_nchw, (0, 2, 3, 1))
        s = jnp.transpose(style_nchw, (0, 2, 3, 1))

        # Encoder: fused content/style down-convs at every level.
        skips = []
        for lvl in range(5):
            p = params[lvl]
            x1, x2 = _down_pair(c, s, p["dw"], p["db"], inner[lvl], pre_act=lvl > 0)
            skips.append((x1, x2))
            c, s = x1, x2

        # Innermost: mid = cat(x1, x2); fake = ConvT(ReLU(mid));
        # return cat([fake, content, style]) with content/style = skips[3].
        ret = jnp.concatenate(skips[4], axis=-1)
        ret = _up(ret, params[4]["uw"], params[4]["ub"], outer[4])
        ret = jnp.concatenate([ret, skips[3][0], skips[3][1]], axis=-1)

        # Middle blocks (levels 3, 2, 1): fake = ConvT(ReLU(mid)); skip-concat.
        for lvl in (3, 2, 1):
            fake = _up(ret, params[lvl]["uw"], params[lvl]["ub"], outer[lvl])
            ret = jnp.concatenate([fake, skips[lvl - 1][0], skips[lvl - 1][1]], axis=-1)

        # Outermost: fake_B = Tanh(ConvT(ReLU(mid))).
        out = _up(ret, params[0]["uw"], params[0]["ub"], outer[0], post_act="tanh")
        return jnp.transpose(out, (0, 3, 1, 2))

    return packed, forward


if __name__ == "__main__":
    key = jax.random.PRNGKey(0)
    kp_, kc_, ks_ = jax.random.split(key, 3)

    # num_downs=5 requires spatial >= 2**5 = 32 (bottleneck reaches 1x1).
    params, forward = init_mlfont(kp_, input_content=1, input_style=1,
                                  output_nc=1, ngf=8)
    content = jax.random.normal(kc_, (2, 1, 32, 32), jnp.float32)
    style = jax.random.normal(ks_, (2, 1, 32, 32), jnp.float32)

    out = jax.jit(forward)(params, content, style)
    jax.block_until_ready(out)
    assert out.shape == (2, 1, 32, 32), out.shape
    assert bool(jnp.all(jnp.isfinite(out)))
    print("KERNEL_OK")
</pallas_src>

<mosaic_0001>
module attributes {stable_mosaic.version = 11 : i64} {
  func.func @_mm_bias_act_kernel(%arg0: i32, %arg1: memref<256x128xbf16, #tpu.memory_space<vmem>>, %arg2: memref<128x128xbf16, #tpu.memory_space<vmem>>, %arg3: memref<1x128xf32, #tpu.memory_space<vmem>>, %arg4: memref<256x128xf32, #tpu.memory_space<vmem>>) attributes {dimension_semantics = [#tpu.dimension_semantics<parallel>], iteration_bounds = array<i64: 2>, scalar_prefetch = 0 : i64, scratch_operands = 0 : i64, tpu.core_type = #tpu.core_type<tc>, window_params = [{transform_indices = @transform_0, window_bounds = array<i64: 256, 128>}, {pipeline_mode = #tpu.pipeline_mode<synchronous>, transform_indices = @transform_1, window_bounds = array<i64: 128, 128>}, {pipeline_mode = #tpu.pipeline_mode<synchronous>, transform_indices = @transform_2, window_bounds = array<i64: 1, 128>}, {transform_indices = @transform_3, window_bounds = array<i64: 256, 128>}]} {
    %c0 = arith.constant 0 : index
    %c0_0 = arith.constant 0 : index
    %0 = vector.load %arg1[%c0, %c0_0] : memref<256x128xbf16, #tpu.memory_space<vmem>>, vector<256x128xbf16>
    %c0_1 = arith.constant 0 : index
    %c0_2 = arith.constant 0 : index
    %1 = vector.load %arg2[%c0_1, %c0_2] : memref<128x128xbf16, #tpu.memory_space<vmem>>, vector<128x128xbf16>
    %cst = arith.constant dense<0.000000e+00> : vector<256x128xf32>
    %2 = tpu.matmul %0, %1, %cst {dimension_numbers = #tpu.dot_dimension_numbers<[1], [0], [0], [1], [0, 0, 1, 1], [], []>} : vector<256x128xbf16>, vector<128x128xbf16>, vector<256x128xf32> -> vector<256x128xf32>
    %c0_3 = arith.constant 0 : index
    %c0_4 = arith.constant 0 : index
    %3 = vector.load %arg3[%c0_3, %c0_4] : memref<1x128xf32, #tpu.memory_space<vmem>>, vector<1x128xf32>
    %4 = vector.broadcast %3 : vector<1x128xf32> to vector<256x128xf32>
    %5 = arith.addf %2, %4 : vector<256x128xf32>
    %c0_5 = arith.constant 0 : index
    %c0_6 = arith.constant 0 : index
    %6 = vector.load %arg4[%c0_5, %c0_6] : memref<256x128xf32, #tpu.memory_space<vmem>>, vector<256x128xf32>
    tpu.vector_store %arg4[%c0_5, %c0_6], %5 {strides = array<i32>} : memref<256x128xf32, #tpu.memory_space<vmem>>, vector<256x128xf32>,
    return
  }
  func.func @transform_0(%arg0: i32) -> (i32, i32) {
    %c0_i32 = arith.constant 0 : i32
    %c0_i32_0 = arith.constant 0 : i32
    return %arg0, %c0_i32 : i32, i32
  }
  func.func @transform_1(%arg0: i32) -> (i32, i32) {
    %c0_i32 = arith.constant 0 : i32
    %c0_i32_0 = arith.constant 0 : i32
    %c0_i32_1 = arith.constant 0 : i32
    return %c0_i32, %c0_i32_0 : i32, i32
  }
  func.func @transform_2(%arg0: i32) -> (i32, i32) {
    %c0_i32 = arith.constant 0 : i32
    %c0_i32_0 = arith.constant 0 : i32
    %c0_i32_1 = arith.constant 0 : i32
    return %c0_i32, %c0_i32_0 : i32, i32
  }
  func.func @transform_3(%arg0: i32) -> (i32, i32) {
    %c0_i32 = arith.constant 0 : i32
    %c0_i32_0 = arith.constant 0 : i32
    return %arg0, %c0_i32 : i32, i32
  }
}

module attributes {stable_mosaic.version = 11 : i64} {
  func.func @_mm_bias_act_kernel(%arg0: i32, %arg1: memref<128x256xbf16, #tpu.memory_space<vmem>>, %arg2: memref<256x128xbf16, #tpu.memory_space<vmem>>, %arg3: memref<1x128xf32, #tpu.memory_space<vmem>>, %arg4: memref<128x128xf32, #tpu.memory_space<vmem>>) attributes {dimension_semantics = [#tpu.dimension_semantics<parallel>], iteration_bounds = array<i64: 1>, scalar_prefetch = 0 : i64, scratch_operands = 0 : i64, tpu.core_type = #tpu.core_type<tc>, window_params = [{transform_indices = @transform_0, window_bounds = array<i64: 128, 256>}, {pipeline_mode = #tpu.pipeline_mode<synchronous>, transform_indices = @transform_1, window_bounds = array<i64: 256, 128>}, {pipeline_mode = #tpu.pipeline_mode<synchronous>, transform_indices = @transform_2, window_bounds = array<i64: 1, 128>}, {transform_indices = @transform_3, window_bounds = array<i64: 128, 128>}]} {
    %c0 = arith.constant 0 : index
    %c0_0 = arith.constant 0 : index
    %0 = vector.load %arg1[%c0, %c0_0] : memref<128x256xbf16, #tpu.memory_space<vmem>>, vector<128x256xbf16>
    %c0_1 = arith.constant 0 : index
    %c0_2 = arith.constant 0 : index
    %1 = vector.load %arg2[%c0_1, %c0_2] : memref<256x128xbf16, #tpu.memory_space<vmem>>, vector<256x128xbf16>
    %cst = arith.constant dense<0.000000e+00> : vector<128x128xf32>
    %2 = tpu.matmul %0, %1, %cst {dimension_numbers = #tpu.dot_dimension_numbers<[1], [0], [0], [1], [0, 0, 1, 1], [], []>} : vector<128x256xbf16>, vector<256x128xbf16>, vector<128x128xf32> -> vector<128x128xf32>
    %c0_3 = arith.constant 0 : index
    %c0_4 = arith.constant 0 : index
    %3 = vector.load %arg3[%c0_3, %c0_4] : memref<1x128xf32, #tpu.memory_space<vmem>>, vector<1x128xf32>
    %4 = vector.broadcast %3 : vector<1x128xf32> to vector<128x128xf32>
    %5 = arith.addf %2, %4 : vector<128x128xf32>
    %c0_5 = arith.constant 0 : index
    %c0_6 = arith.constant 0 : index
    %6 = vector.load %arg4[%c0_5, %c0_6] : memref<128x128xf32, #tpu.memory_space<vmem>>, vector<128x128xf32>
    tpu.vector_store %arg4[%c0_5, %c0_6], %5 {strides = array<i32>} : memref<128x128xf32, #tpu.memory_space<vmem>>, vector<128x128xf32>,
    return
  }
  func.func @transform_0(%arg0: i32) -> (i32, i32) {
    %c0_i32 = arith.constant 0 : i32
    %c0_i32_0 = arith.constant 0 : i32
    return %arg0, %c0_i32 : i32, i32
  }
  func.func @transform_1(%arg0: i32) -> (i32, i32) {
    %c0_i32 = arith.constant 0 : i32
    %c0_i32_0 = arith.constant 0 : i32
    %c0_i32_1 = arith.constant 0 : i32
    return %c0_i32, %c0_i32_0 : i32, i32
  }
  func.func @transform_2(%arg0: i32) -> (i32, i32) {
    %c0_i32 = arith.constant 0 : i32
    %c0_i32_0 = arith.constant 0 : i32
    %c0_i32_1 = arith.constant 0 : i32
    return %c0_i32, %c0_i32_0 : i32, i32
  }
  func.func @transform_3(%arg0: i32) -> (i32, i32) {
    %c0_i32 = arith.constant 0 : i32
    %c0_i32_0 = arith.constant 0 : i32
    return %arg0, %c0_i32 : i32, i32
  }
}

module attributes {stable_mosaic.version = 11 : i64} {
  func.func @_mm_bias_act_kernel(%arg0: i32, %arg1: memref<32x384xbf16, #tpu.memory_space<vmem>>, %arg2: memref<384x128xbf16, #tpu.memory_space<vmem>>, %arg3: memref<1x128xf32, #tpu.memory_space<vmem>>, %arg4: memref<32x128xf32, #tpu.memory_space<vmem>>) attributes {dimension_semantics = [#tpu.dimension_semantics<parallel>], iteration_bounds = array<i64: 1>, scalar_prefetch = 0 : i64, scratch_operands = 0 : i64, tpu.core_type = #tpu.core_type<tc>, window_params = [{transform_indices = @transform_0, window_bounds = array<i64: 32, 384>}, {pipeline_mode = #tpu.pipeline_mode<synchronous>, transform_indices = @transform_1, window_bounds = array<i64: 384, 128>}, {pipeline_mode = #tpu.pipeline_mode<synchronous>, transform_indices = @transform_2, window_bounds = array<i64: 1, 128>}, {transform_indices = @transform_3, window_bounds = array<i64: 32, 128>}]} {
    %c0 = arith.constant 0 : index
    %c0_0 = arith.constant 0 : index
    %0 = vector.load %arg1[%c0, %c0_0] : memref<32x384xbf16, #tpu.memory_space<vmem>>, vector<32x384xbf16>
    %c0_1 = arith.constant 0 : index
    %c0_2 = arith.constant 0 : index
    %1 = vector.load %arg2[%c0_1, %c0_2] : memref<384x128xbf16, #tpu.memory_space<vmem>>, vector<384x128xbf16>
    %cst = arith.constant dense<0.000000e+00> : vector<32x128xf32>
    %2 = tpu.matmul %0, %1, %cst {dimension_numbers = #tpu.dot_dimension_numbers<[1], [0], [0], [1], [0, 0, 1, 1], [], []>} : vector<32x384xbf16>, vector<384x128xbf16>, vector<32x128xf32> -> vector<32x128xf32>
    %c0_3 = arith.constant 0 : index
    %c0_4 = arith.constant 0 : index
    %3 = vector.load %arg3[%c0_3, %c0_4] : memref<1x128xf32, #tpu.memory_space<vmem>>, vector<1x128xf32>
    %4 = vector.broadcast %3 : vector<1x128xf32> to vector<32x128xf32>
    %5 = arith.addf %2, %4 : vector<32x128xf32>
    %c0_5 = arith.constant 0 : index
    %c0_6 = arith.constant 0 : index
    %6 = vector.load %arg4[%c0_5, %c0_6] : memref<32x128xf32, #tpu.memory_space<vmem>>, vector<32x128xf32>
    tpu.vector_store %arg4[%c0_5, %c0_6], %5 {strides = array<i32>} : memref<32x128xf32, #tpu.memory_space<vmem>>, vector<32x128xf32>,
    return
  }
  func.func @transform_0(%arg0: i32) -> (i32, i32) {
    %c0_i32 = arith.constant 0 : i32
    %c0_i32_0 = arith.constant 0 : i32
    return %arg0, %c0_i32 : i32, i32
  }
  func.func @transform_1(%arg0: i32) -> (i32, i32) {
    %c0_i32 = arith.constant 0 : i32
    %c0_i32_0 = arith.constant 0 : i32
    %c0_i32_1 = arith.constant 0 : i32
    return %c0_i32, %c0_i32_0 : i32, i32
  }
  func.func @transform_2(%arg0: i32) -> (i32, i32) {
    %c0_i32 = arith.constant 0 : i32
    %c0_i32_0 = arith.constant 0 : i32
    %c0_i32_1 = arith.constant 0 : i32
    return %c0_i32, %c0_i32_0 : i32, i32
  }
  func.func @transform_3(%arg0: i32) -> (i32, i32) {
    %c0_i32 = arith.constant 0 : i32
    %c0_i32_0 = arith.constant 0 : i32
    return %arg0, %c0_i32 : i32, i32
  }
}

module attributes {stable_mosaic.version = 11 : i64} {
  func.func @_mm_bias_act_kernel(%arg0: i32, %arg1: memref<16x1152xbf16, #tpu.memory_space<vmem>>, %arg2: memref<1152x128xbf16, #tpu.memory_space<vmem>>, %arg3: memref<1x128xf32, #tpu.memory_space<vmem>>, %arg4: memref<16x128xf32, #tpu.memory_space<vmem>>) attributes {dimension_semantics = [#tpu.dimension_semantics<parallel>], iteration_bounds = array<i64: 1>, scalar_prefetch = 0 : i64, scratch_operands = 0 : i64, tpu.core_type = #tpu.core_type<tc>, window_params = [{transform_indices = @transform_0, window_bounds = array<i64: 16, 1152>}, {pipeline_mode = #tpu.pipeline_mode<synchronous>, transform_indices = @transform_1, window_bounds = array<i64: 1152, 128>}, {pipeline_mode = #tpu.pipeline_mode<synchronous>, transform_indices = @transform_2, window_bounds = array<i64: 1, 128>}, {transform_indices = @transform_3, window_bounds = array<i64: 16, 128>}]} {
    %c0 = arith.constant 0 : index
    %c0_0 = arith.constant 0 : index
    %0 = vector.load %arg1[%c0, %c0_0] : memref<16x1152xbf16, #tpu.memory_space<vmem>>, vector<16x1152xbf16>
    %c0_1 = arith.constant 0 : index
    %c0_2 = arith.constant 0 : index
    %1 = vector.load %arg2[%c0_1, %c0_2] : memref<1152x128xbf16, #tpu.memory_space<vmem>>, vector<1152x128xbf16>
    %cst = arith.constant dense<0.000000e+00> : vector<16x128xf32>
    %2 = tpu.matmul %0, %1, %cst {dimension_numbers = #tpu.dot_dimension_numbers<[1], [0], [0], [1], [0, 0, 1, 1], [], []>} : vector<16x1152xbf16>, vector<1152x128xbf16>, vector<16x128xf32> -> vector<16x128xf32>
    %c0_3 = arith.constant 0 : index
    %c0_4 = arith.constant 0 : index
    %3 = vector.load %arg3[%c0_3, %c0_4] : memref<1x128xf32, #tpu.memory_space<vmem>>, vector<1x128xf32>
    %4 = vector.broadcast %3 : vector<1x128xf32> to vector<16x128xf32>
    %5 = arith.addf %2, %4 : vector<16x128xf32>
    %c0_5 = arith.constant 0 : index
    %c0_6 = arith.constant 0 : index
    %6 = vector.load %arg4[%c0_5, %c0_6] : memref<16x128xf32, #tpu.memory_space<vmem>>, vector<16x128xf32>
    tpu.vector_store %arg4[%c0_5, %c0_6], %5 {strides = array<i32>} : memref<16x128xf32, #tpu.memory_space<vmem>>, vector<16x128xf32>,
    return
  }
  func.func @transform_0(%arg0: i32) -> (i32, i32) {
    %c0_i32 = arith.constant 0 : i32
    %c0_i32_0 = arith.constant 0 : i32
    return %arg0, %c0_i32 : i32, i32
  }
  func.func @transform_1(%arg0: i32) -> (i32, i32) {
    %c0_i32 = arith.constant 0 : i32
    %c0_i32_0 = arith.constant 0 : i32
    %c0_i32_1 = arith.constant 0 : i32
    return %c0_i32, %c0_i32_0 : i32, i32
  }
  func.func @transform_2(%arg0: i32) -> (i32, i32) {
    %c0_i32 = arith.constant 0 : i32
    %c0_i32_0 = arith.constant 0 : i32
    %c0_i32_1 = arith.constant 0 : i32
    return %c0_i32, %c0_i32_0 : i32, i32
  }
  func.func @transform_3(%arg0: i32) -> (i32, i32) {
    %c0_i32 = arith.constant 0 : i32
    %c0_i32_0 = arith.constant 0 : i32
    return %arg0, %c0_i32 : i32, i32
  }
}

module attributes {stable_mosaic.version = 11 : i64} {
  func.func @_mm_bias_act_kernel(%arg0: i32, %arg1: memref<16x640xbf16, #tpu.memory_space<vmem>>, %arg2: memref<640x128xbf16, #tpu.memory_space<vmem>>, %arg3: memref<1x128xf32, #tpu.memory_space<vmem>>, %arg4: memref<16x128xf32, #tpu.memory_space<vmem>>) attributes {dimension_semantics = [#tpu.dimension_semantics<parallel>], iteration_bounds = array<i64: 1>, scalar_prefetch = 0 : i64, scratch_operands = 0 : i64, tpu.core_type = #tpu.core_type<tc>, window_params = [{transform_indices = @transform_0, window_bounds = array<i64: 16, 640>}, {pipeline_mode = #tpu.pipeline_mode<synchronous>, transform_indices = @transform_1, window_bounds = array<i64: 640, 128>}, {pipeline_mode = #tpu.pipeline_mode<synchronous>, transform_indices = @transform_2, window_bounds = array<i64: 1, 128>}, {transform_indices = @transform_3, window_bounds = array<i64: 16, 128>}]} {
    %c0 = arith.constant 0 : index
    %c0_0 = arith.constant 0 : index
    %0 = vector.load %arg1[%c0, %c0_0] : memref<16x640xbf16, #tpu.memory_space<vmem>>, vector<16x640xbf16>
    %c0_1 = arith.constant 0 : index
    %c0_2 = arith.constant 0 : index
    %1 = vector.load %arg2[%c0_1, %c0_2] : memref<640x128xbf16, #tpu.memory_space<vmem>>, vector<640x128xbf16>
    %cst = arith.constant dense<0.000000e+00> : vector<16x128xf32>
    %2 = tpu.matmul %0, %1, %cst {dimension_numbers = #tpu.dot_dimension_numbers<[1], [0], [0], [1], [0, 0, 1, 1], [], []>} : vector<16x640xbf16>, vector<640x128xbf16>, vector<16x128xf32> -> vector<16x128xf32>
    %c0_3 = arith.constant 0 : index
    %c0_4 = arith.constant 0 : index
    %3 = vector.load %arg3[%c0_3, %c0_4] : memref<1x128xf32, #tpu.memory_space<vmem>>, vector<1x128xf32>
    %4 = vector.broadcast %3 : vector<1x128xf32> to vector<16x128xf32>
    %5 = arith.addf %2, %4 : vector<16x128xf32>
    %c0_5 = arith.constant 0 : index
    %c0_6 = arith.constant 0 : index
    %6 = vector.load %arg4[%c0_5, %c0_6] : memref<16x128xf32, #tpu.memory_space<vmem>>, vector<16x128xf32>
    tpu.vector_store %arg4[%c0_5, %c0_6], %5 {strides = array<i32>} : memref<16x128xf32, #tpu.memory_space<vmem>>, vector<16x128xf32>,
    return
  }
  func.func @transform_0(%arg0: i32) -> (i32, i32) {
    %c0_i32 = arith.constant 0 : i32
    %c0_i32_0 = arith.constant 0 : i32
    return %arg0, %c0_i32 : i32, i32
  }
  func.func @transform_1(%arg0: i32) -> (i32, i32) {
    %c0_i32 = arith.constant 0 : i32
    %c0_i32_0 = arith.constant 0 : i32
    %c0_i32_1 = arith.constant 0 : i32
    return %c0_i32, %c0_i32_0 : i32, i32
  }
  func.func @transform_2(%arg0: i32) -> (i32, i32) {
    %c0_i32 = arith.constant 0 : i32
    %c0_i32_0 = arith.constant 0 : i32
    %c0_i32_1 = arith.constant 0 : i32
    return %c0_i32, %c0_i32_0 : i32, i32
  }
  func.func @transform_3(%arg0: i32) -> (i32, i32) {
    %c0_i32 = arith.constant 0 : i32
    %c0_i32_0 = arith.constant 0 : i32
    return %arg0, %c0_i32 : i32, i32
  }
}

module attributes {stable_mosaic.version = 11 : i64} {
  func.func @_mm_bias_act_kernel(%arg0: i32, %arg1: memref<16x1152xbf16, #tpu.memory_space<vmem>>, %arg2: memref<1152x256xbf16, #tpu.memory_space<vmem>>, %arg3: memref<1x256xf32, #tpu.memory_space<vmem>>, %arg4: memref<16x256xf32, #tpu.memory_space<vmem>>) attributes {dimension_semantics = [#tpu.dimension_semantics<parallel>], iteration_bounds = array<i64: 1>, scalar_prefetch = 0 : i64, scratch_operands = 0 : i64, tpu.core_type = #tpu.core_type<tc>, window_params = [{transform_indices = @transform_0, window_bounds = array<i64: 16, 1152>}, {pipeline_mode = #tpu.pipeline_mode<synchronous>, transform_indices = @transform_1, window_bounds = array<i64: 1152, 256>}, {pipeline_mode = #tpu.pipeline_mode<synchronous>, transform_indices = @transform_2, window_bounds = array<i64: 1, 256>}, {transform_indices = @transform_3, window_bounds = array<i64: 16, 256>}]} {
    %c0 = arith.constant 0 : index
    %c0_0 = arith.constant 0 : index
    %0 = vector.load %arg1[%c0, %c0_0] : memref<16x1152xbf16, #tpu.memory_space<vmem>>, vector<16x1152xbf16>
    %c0_1 = arith.constant 0 : index
    %c0_2 = arith.constant 0 : index
    %1 = vector.load %arg2[%c0_1, %c0_2] : memref<1152x256xbf16, #tpu.memory_space<vmem>>, vector<1152x256xbf16>
    %cst = arith.constant dense<0.000000e+00> : vector<16x256xf32>
    %2 = tpu.matmul %0, %1, %cst {dimension_numbers = #tpu.dot_dimension_numbers<[1], [0], [0], [1], [0, 0, 1, 1], [], []>} : vector<16x1152xbf16>, vector<1152x256xbf16>, vector<16x256xf32> -> vector<16x256xf32>
    %c0_3 = arith.constant 0 : index
    %c0_4 = arith.constant 0 : index
    %3 = vector.load %arg3[%c0_3, %c0_4] : memref<1x256xf32, #tpu.memory_space<vmem>>, vector<1x256xf32>
    %4 = vector.broadcast %3 : vector<1x256xf32> to vector<16x256xf32>
    %5 = arith.addf %2, %4 : vector<16x256xf32>
    %c0_5 = arith.constant 0 : index
    %c0_6 = arith.constant 0 : index
    %6 = vector.load %arg4[%c0_5, %c0_6] : memref<16x256xf32, #tpu.memory_space<vmem>>, vector<16x256xf32>
    tpu.vector_store %arg4[%c0_5, %c0_6], %5 {strides = array<i32>} : memref<16x256xf32, #tpu.memory_space<vmem>>, vector<16x256xf32>,
    return
  }
  func.func @transform_0(%arg0: i32) -> (i32, i32) {
    %c0_i32 = arith.constant 0 : i32
    %c0_i32_0 = arith.constant 0 : i32
    return %arg0, %c0_i32 : i32, i32
  }
  func.func @transform_1(%arg0: i32) -> (i32, i32) {
    %c0_i32 = arith.constant 0 : i32
    %c0_i32_0 = arith.constant 0 : i32
    %c0_i32_1 = arith.constant 0 : i32
    return %c0_i32, %c0_i32_0 : i32, i32
  }
  func.func @transform_2(%arg0: i32) -> (i32, i32) {
    %c0_i32 = arith.constant 0 : i32
    %c0_i32_0 = arith.constant 0 : i32
    %c0_i32_1 = arith.constant 0 : i32
    return %c0_i32, %c0_i32_0 : i32, i32
  }
  func.func @transform_3(%arg0: i32) -> (i32, i32) {
    %c0_i32 = arith.constant 0 : i32
    %c0_i32_0 = arith.constant 0 : i32
    return %arg0, %c0_i32 : i32, i32
  }
}

module attributes {stable_mosaic.version = 11 : i64} {
  func.func @_mm_bias_act_kernel(%arg0: i32, %arg1: memref<16x1792xbf16, #tpu.memory_space<vmem>>, %arg2: memref<1792x128xbf16, #tpu.memory_space<vmem>>, %arg3: memref<1x128xf32, #tpu.memory_space<vmem>>, %arg4: memref<16x128xf32, #tpu.memory_space<vmem>>) attributes {dimension_semantics = [#tpu.dimension_semantics<parallel>], iteration_bounds = array<i64: 1>, scalar_prefetch = 0 : i64, scratch_operands = 0 : i64, tpu.core_type = #tpu.core_type<tc>, window_params = [{transform_indices = @transform_0, window_bounds = array<i64: 16, 1792>}, {pipeline_mode = #tpu.pipeline_mode<synchronous>, transform_indices = @transform_1, window_bounds = array<i64: 1792, 128>}, {pipeline_mode = #tpu.pipeline_mode<synchronous>, transform_indices = @transform_2, window_bounds = array<i64: 1, 128>}, {transform_indices = @transform_3, window_bounds = array<i64: 16, 128>}]} {
    %c0 = arith.constant 0 : index
    %c0_0 = arith.constant 0 : index
    %0 = vector.load %arg1[%c0, %c0_0] : memref<16x1792xbf16, #tpu.memory_space<vmem>>, vector<16x1792xbf16>
    %c0_1 = arith.constant 0 : index
    %c0_2 = arith.constant 0 : index
    %1 = vector.load %arg2[%c0_1, %c0_2] : memref<1792x128xbf16, #tpu.memory_space<vmem>>, vector<1792x128xbf16>
    %cst = arith.constant dense<0.000000e+00> : vector<16x128xf32>
    %2 = tpu.matmul %0, %1, %cst {dimension_numbers = #tpu.dot_dimension_numbers<[1], [0], [0], [1], [0, 0, 1, 1], [], []>} : vector<16x1792xbf16>, vector<1792x128xbf16>, vector<16x128xf32> -> vector<16x128xf32>
    %c0_3 = arith.constant 0 : index
    %c0_4 = arith.constant 0 : index
    %3 = vector.load %arg3[%c0_3, %c0_4] : memref<1x128xf32, #tpu.memory_space<vmem>>, vector<1x128xf32>
    %4 = vector.broadcast %3 : vector<1x128xf32> to vector<16x128xf32>
    %5 = arith.addf %2, %4 : vector<16x128xf32>
    %c0_5 = arith.constant 0 : index
    %c0_6 = arith.constant 0 : index
    %6 = vector.load %arg4[%c0_5, %c0_6] : memref<16x128xf32, #tpu.memory_space<vmem>>, vector<16x128xf32>
    tpu.vector_store %arg4[%c0_5, %c0_6], %5 {strides = array<i32>} : memref<16x128xf32, #tpu.memory_space<vmem>>, vector<16x128xf32>,
    return
  }
  func.func @transform_0(%arg0: i32) -> (i32, i32) {
    %c0_i32 = arith.constant 0 : i32
    %c0_i32_0 = arith.constant 0 : i32
    return %arg0, %c0_i32 : i32, i32
  }
  func.func @transform_1(%arg0: i32) -> (i32, i32) {
    %c0_i32 = arith.constant 0 : i32
    %c0_i32_0 = arith.constant 0 : i32
    %c0_i32_1 = arith.constant 0 : i32
    return %c0_i32, %c0_i32_0 : i32, i32
  }
  func.func @transform_2(%arg0: i32) -> (i32, i32) {
    %c0_i32 = arith.constant 0 : i32
    %c0_i32_0 = arith.constant 0 : i32
    %c0_i32_1 = arith.constant 0 : i32
    return %c0_i32, %c0_i32_0 : i32, i32
  }
  func.func @transform_3(%arg0: i32) -> (i32, i32) {
    %c0_i32 = arith.constant 0 : i32
    %c0_i32_0 = arith.constant 0 : i32
    return %arg0, %c0_i32 : i32, i32
  }
}

module attributes {stable_mosaic.version = 11 : i64} {
  func.func @_mm_bias_act_kernel(%arg0: i32, %arg1: memref<32x896xbf16, #tpu.memory_space<vmem>>, %arg2: memref<896x128xbf16, #tpu.memory_space<vmem>>, %arg3: memref<1x128xf32, #tpu.memory_space<vmem>>, %arg4: memref<32x128xf32, #tpu.memory_space<vmem>>) attributes {dimension_semantics = [#tpu.dimension_semantics<parallel>], iteration_bounds = array<i64: 1>, scalar_prefetch = 0 : i64, scratch_operands = 0 : i64, tpu.core_type = #tpu.core_type<tc>, window_params = [{transform_indices = @transform_0, window_bounds = array<i64: 32, 896>}, {pipeline_mode = #tpu.pipeline_mode<synchronous>, transform_indices = @transform_1, window_bounds = array<i64: 896, 128>}, {pipeline_mode = #tpu.pipeline_mode<synchronous>, transform_indices = @transform_2, window_bounds = array<i64: 1, 128>}, {transform_indices = @transform_3, window_bounds = array<i64: 32, 128>}]} {
    %c0 = arith.constant 0 : index
    %c0_0 = arith.constant 0 : index
    %0 = vector.load %arg1[%c0, %c0_0] : memref<32x896xbf16, #tpu.memory_space<vmem>>, vector<32x896xbf16>
    %c0_1 = arith.constant 0 : index
    %c0_2 = arith.constant 0 : index
    %1 = vector.load %arg2[%c0_1, %c0_2] : memref<896x128xbf16, #tpu.memory_space<vmem>>, vector<896x128xbf16>
    %cst = arith.constant dense<0.000000e+00> : vector<32x128xf32>
    %2 = tpu.matmul %0, %1, %cst {dimension_numbers = #tpu.dot_dimension_numbers<[1], [0], [0], [1], [0, 0, 1, 1], [], []>} : vector<32x896xbf16>, vector<896x128xbf16>, vector<32x128xf32> -> vector<32x128xf32>
    %c0_3 = arith.constant 0 : index
    %c0_4 = arith.constant 0 : index
    %3 = vector.load %arg3[%c0_3, %c0_4] : memref<1x128xf32, #tpu.memory_space<vmem>>, vector<1x128xf32>
    %4 = vector.broadcast %3 : vector<1x128xf32> to vector<32x128xf32>
    %5 = arith.addf %2, %4 : vector<32x128xf32>
    %c0_5 = arith.constant 0 : index
    %c0_6 = arith.constant 0 : index
    %6 = vector.load %arg4[%c0_5, %c0_6] : memref<32x128xf32, #tpu.memory_space<vmem>>, vector<32x128xf32>
    tpu.vector_store %arg4[%c0_5, %c0_6], %5 {strides = array<i32>} : memref<32x128xf32, #tpu.memory_space<vmem>>, vector<32x128xf32>,
    return
  }
  func.func @transform_0(%arg0: i32) -> (i32, i32) {
    %c0_i32 = arith.constant 0 : i32
    %c0_i32_0 = arith.constant 0 : i32
    return %arg0, %c0_i32 : i32, i32
  }
  func.func @transform_1(%arg0: i32) -> (i32, i32) {
    %c0_i32 = arith.constant 0 : i32
    %c0_i32_0 = arith.constant 0 : i32
    %c0_i32_1 = arith.constant 0 : i32
    return %c0_i32, %c0_i32_0 : i32, i32
  }
  func.func @transform_2(%arg0: i32) -> (i32, i32) {
    %c0_i32 = arith.constant 0 : i32
    %c0_i32_0 = arith.constant 0 : i32
    %c0_i32_1 = arith.constant 0 : i32
    return %c0_i32, %c0_i32_0 : i32, i32
  }
  func.func @transform_3(%arg0: i32) -> (i32, i32) {
    %c0_i32 = arith.constant 0 : i32
    %c0_i32_0 = arith.constant 0 : i32
    return %arg0, %c0_i32 : i32, i32
  }
}

module attributes {stable_mosaic.version = 11 : i64} {
  func.func @_mm_bias_act_kernel(%arg0: i32, %arg1: memref<128x512xbf16, #tpu.memory_space<vmem>>, %arg2: memref<512x128xbf16, #tpu.memory_space<vmem>>, %arg3: memref<1x128xf32, #tpu.memory_space<vmem>>, %arg4: memref<128x128xf32, #tpu.memory_space<vmem>>) attributes {dimension_semantics = [#tpu.dimension_semantics<parallel>], iteration_bounds = array<i64: 1>, scalar_prefetch = 0 : i64, scratch_operands = 0 : i64, tpu.core_type = #tpu.core_type<tc>, window_params = [{transform_indices = @transform_0, window_bounds = array<i64: 128, 512>}, {pipeline_mode = #tpu.pipeline_mode<synchronous>, transform_indices = @transform_1, window_bounds = array<i64: 512, 128>}, {pipeline_mode = #tpu.pipeline_mode<synchronous>, transform_indices = @transform_2, window_bounds = array<i64: 1, 128>}, {transform_indices = @transform_3, window_bounds = array<i64: 128, 128>}]} {
    %c0 = arith.constant 0 : index
    %c0_0 = arith.constant 0 : index
    %0 = vector.load %arg1[%c0, %c0_0] : memref<128x512xbf16, #tpu.memory_space<vmem>>, vector<128x512xbf16>
    %c0_1 = arith.constant 0 : index
    %c0_2 = arith.constant 0 : index
    %1 = vector.load %arg2[%c0_1, %c0_2] : memref<512x128xbf16, #tpu.memory_space<vmem>>, vector<512x128xbf16>
    %cst = arith.constant dense<0.000000e+00> : vector<128x128xf32>
    %2 = tpu.matmul %0, %1, %cst {dimension_numbers = #tpu.dot_dimension_numbers<[1], [0], [0], [1], [0, 0, 1, 1], [], []>} : vector<128x512xbf16>, vector<512x128xbf16>, vector<128x128xf32> -> vector<128x128xf32>
    %c0_3 = arith.constant 0 : index
    %c0_4 = arith.constant 0 : index
    %3 = vector.load %arg3[%c0_3, %c0_4] : memref<1x128xf32, #tpu.memory_space<vmem>>, vector<1x128xf32>
    %4 = vector.broadcast %3 : vector<1x128xf32> to vector<128x128xf32>
    %5 = arith.addf %2, %4 : vector<128x128xf32>
    %c0_5 = arith.constant 0 : index
    %c0_6 = arith.constant 0 : index
    %6 = vector.load %arg4[%c0_5, %c0_6] : memref<128x128xf32, #tpu.memory_space<vmem>>, vector<128x128xf32>
    tpu.vector_store %arg4[%c0_5, %c0_6], %5 {strides = array<i32>} : memref<128x128xf32, #tpu.memory_space<vmem>>, vector<128x128xf32>,
    return
  }
  func.func @transform_0(%arg0: i32) -> (i32, i32) {
    %c0_i32 = arith.constant 0 : i32
    %c0_i32_0 = arith.constant 0 : i32
    return %arg0, %c0_i32 : i32, i32
  }
  func.func @transform_1(%arg0: i32) -> (i32, i32) {
    %c0_i32 = arith.constant 0 : i32
    %c0_i32_0 = arith.constant 0 : i32
    %c0_i32_1 = arith.constant 0 : i32
    return %c0_i32, %c0_i32_0 : i32, i32
  }
  func.func @transform_2(%arg0: i32) -> (i32, i32) {
    %c0_i32 = arith.constant 0 : i32
    %c0_i32_0 = arith.constant 0 : i32
    %c0_i32_1 = arith.constant 0 : i32
    return %c0_i32, %c0_i32_0 : i32, i32
  }
  func.func @transform_3(%arg0: i32) -> (i32, i32) {
    %c0_i32 = arith.constant 0 : i32
    %c0_i32_0 = arith.constant 0 : i32
    return %arg0, %c0_i32 : i32, i32
  }
}

module attributes {stable_mosaic.version = 11 : i64} {
  func.func @_mm_bias_act_kernel(%arg0: i32, %arg1: memref<256x256xbf16, #tpu.memory_space<vmem>>, %arg2: memref<256x128xbf16, #tpu.memory_space<vmem>>, %arg3: memref<1x128xf32, #tpu.memory_space<vmem>>, %arg4: memref<256x128xf32, #tpu.memory_space<vmem>>) attributes {dimension_semantics = [#tpu.dimension_semantics<parallel>], iteration_bounds = array<i64: 2>, scalar_prefetch = 0 : i64, scratch_operands = 0 : i64, tpu.core_type = #tpu.core_type<tc>, window_params = [{transform_indices = @transform_0, window_bounds = array<i64: 256, 256>}, {pipeline_mode = #tpu.pipeline_mode<synchronous>, transform_indices = @transform_1, window_bounds = array<i64: 256, 128>}, {pipeline_mode = #tpu.pipeline_mode<synchronous>, transform_indices = @transform_2, window_bounds = array<i64: 1, 128>}, {transform_indices = @transform_3, window_bounds = array<i64: 256, 128>}]} {
    %c0 = arith.constant 0 : index
    %c0_0 = arith.constant 0 : index
    %0 = vector.load %arg1[%c0, %c0_0] : memref<256x256xbf16, #tpu.memory_space<vmem>>, vector<256x256xbf16>
    %c0_1 = arith.constant 0 : index
    %c0_2 = arith.constant 0 : index
    %1 = vector.load %arg2[%c0_1, %c0_2] : memref<256x128xbf16, #tpu.memory_space<vmem>>, vector<256x128xbf16>
    %cst = arith.constant dense<0.000000e+00> : vector<256x128xf32>
    %2 = tpu.matmul %0, %1, %cst {dimension_numbers = #tpu.dot_dimension_numbers<[1], [0], [0], [1], [0, 0, 1, 1], [], []>} : vector<256x256xbf16>, vector<256x128xbf16>, vector<256x128xf32> -> vector<256x128xf32>
    %c0_3 = arith.constant 0 : index
    %c0_4 = arith.constant 0 : index
    %3 = vector.load %arg3[%c0_3, %c0_4] : memref<1x128xf32, #tpu.memory_space<vmem>>, vector<1x128xf32>
    %4 = vector.broadcast %3 : vector<1x128xf32> to vector<256x128xf32>
    %5 = arith.addf %2, %4 : vector<256x128xf32>
    %6 = math.tanh %5 : vector<256x128xf32>
    %c0_5 = arith.constant 0 : index
    %c0_6 = arith.constant 0 : index
    %7 = vector.load %arg4[%c0_5, %c0_6] : memref<256x128xf32, #tpu.memory_space<vmem>>, vector<256x128xf32>
    tpu.vector_store %arg4[%c0_5, %c0_6], %6 {strides = array<i32>} : memref<256x128xf32, #tpu.memory_space<vmem>>, vector<256x128xf32>,
    return
  }
  func.func @transform_0(%arg0: i32) -> (i32, i32) {
    %c0_i32 = arith.constant 0 : i32
    %c0_i32_0 = arith.constant 0 : i32
    return %arg0, %c0_i32 : i32, i32
  }
  func.func @transform_1(%arg0: i32) -> (i32, i32) {
    %c0_i32 = arith.constant 0 : i32
    %c0_i32_0 = arith.constant 0 : i32
    %c0_i32_1 = arith.constant 0 : i32
    return %c0_i32, %c0_i32_0 : i32, i32
  }
  func.func @transform_2(%arg0: i32) -> (i32, i32) {
    %c0_i32 = arith.constant 0 : i32
    %c0_i32_0 = arith.constant 0 : i32
    %c0_i32_1 = arith.constant 0 : i32
    return %c0_i32, %c0_i32_0 : i32, i32
  }
  func.func @transform_3(%arg0: i32) -> (i32, i32) {
    %c0_i32 = arith.constant 0 : i32
    %c0_i32_0 = arith.constant 0 : i32
    return %arg0, %c0_i32 : i32, i32
  }
}

</mosaic_0001>

<bundles_post_ra>
// kernel: forward.10
= control target key start
LH: loop header
LB: loop body
LE: loop exit
PB: predicated region body
PF: predicated region fallthrough
CT: control target
= control target key end

     0   :  { %s807_s12 = smov 0   ;;  %s941_s0 = inlined_call_operand.vmem [shape: bf16[512,128], index: 0, kind: input, shape index: {}]   ;;  %s942_s1 = inlined_call_operand.vmem [shape: bf16[128,128], index: 1, kind: input, shape index: {}]   ;;  %s943_s2 = inlined_call_operand.vmem [shape: f32[1,128], index: 2, kind: input, shape index: {}]   ;;  %s944_s3 = inlined_call_operand.vmem [shape: f32[512,128], index: 3, kind: output, shape index: {}]  }
   0x1 LB: > { %s623_s13 = sadd.s32 4294967295, %s785_s12   ;;  %p627_p0 = scmp.ge.s32.totalorder %s785_s12, 1  ;;  %s785_s12 = sphi %s807_s12, %s13_s12  }
   0x2   : > { %p138_p1 = scmp.lt.s32.totalorder %s785_s12, 3 }
   0x4   : > { %p139_p2 = pnand %p627_p0, %p138_p1 }
   0x5   : > { %s628_s16 = sshll.u32 (!%p139_p2), %s623_s13, 5 }
   0x6   : > { %142 = sbr.rel (%p139_p2) target bundleno = 270 (0x10e), region = 32  ;;  %p163_p3 = scmp.lt.s32.totalorder (!%p139_p2), %s628_s16, 63 }
   0xb   : > { %v755_v0 = vld [vmem:[%s942_s1 + $0x38] sm:$0xff]   ;;  %v756_v1 = vld [vmem:[%s942_s1 + $0x30] sm:$0xff]   ;;  %s946_s16 = smov (!%p163_p3, %s628_s16), 63  ;;  %v757_v2 = vld [vmem:[%s942_s1 + $0x28] sm:$0xff]  }
   0xc   : > { %683 = vmatprep.subr.bf16.mxu0 %v755_v0  ;;  %731 = vmatprep.subr.bf16.mxu1 %v755_v0  ;;  %s629_s21 = sshll.u32 %s946_s16, 2  ;;  %v758_v3 = vld [vmem:[%s942_s1 + $0x20] sm:$0xff]   ;;  %v759_v6 = vld [vmem:[%s942_s1 + $0x18] sm:$0xff]   ;;  %v760_v7 = vld [vmem:[%s942_s1 + $0x10] sm:$0xff]   ;;  %s631_s8 = sshll.u32 %s946_s16, 3 }
   0xd   : > { %684 = vmatpush3.bf16.msra.mxu0 %v755_v0  ;;  %739 = vmatpush3.bf16.msra.mxu1 %v755_v0  ;;  %s830_s24 = scalar_lea.vmem %s941_s0, %s629_s21  ;;  %v761_v8 = vld [vmem:[%s942_s1 + $0x8] sm:$0xff]   ;;  %v762_v9 = vld [vmem:[%s942_s1] sm:$0xff]   ;;  %s872_s14 = scalar_lea.vmem %s944_s3, %s631_s8 }
   0xe   : > { %685 = vmatprep.subr.bf16.mxu0 %v756_v1  ;;  %732 = vmatprep.subr.bf16.mxu1 %v756_v1  ;;  %v763_v4 = vld [vmem:[%s830_s24] sm:$0xff]   ;;  %v765_v10 = vld [vmem:[%s830_s24 + $0x8] sm:$0xff]   ;;  %v767_v12 = vld [vmem:[%s830_s24 + $0x10] sm:$0xff]  }
   0xf   : > { %v764_v5 = vld [vmem:[%s830_s24 + $0x40] sm:$0xff]   ;;  %699 = vmatprep.mubr.bf16.mxu0 %v763_v4  ;;  %v766_v11 = vld [vmem:[%s830_s24 + $0x48] sm:$0xff]   ;;  %v768_v13 = vld [vmem:[%s830_s24 + $0x50] sm:$0xff]  }
  0x10   : > { %715 = vmatprep.mubr.bf16.mxu1 %v764_v5  ;;  %v769_v14 = vld [vmem:[%s830_s24 + $0x18] sm:$0xff]   ;;  %v771_v16 = vld [vmem:[%s830_s24 + $0x20] sm:$0xff]   ;;  %v773_v18 = vld [vmem:[%s830_s24 + $0x28] sm:$0xff]  }
  0x11   : > { %686 = vmatpush3.bf16.msra.mxu0 %v756_v1  ;;  %740 = vmatpush3.bf16.msra.mxu1 %v756_v1  ;;  %v770_v15 = vld [vmem:[%s830_s24 + $0x58] sm:$0xff]   ;;  %v772_v17 = vld [vmem:[%s830_s24 + $0x60] sm:$0xff]   ;;  %v774_v19 = vld [vmem:[%s830_s24 + $0x68] sm:$0xff]  }
  0x12   : > { %687 = vmatprep.subr.bf16.mxu0 %v757_v2  ;;  %733 = vmatprep.subr.bf16.mxu1 %v757_v2  ;;  %v775_v20 = vld [vmem:[%s830_s24 + $0x30] sm:$0xff]   ;;  %v777_v22 = vld [vmem:[%s830_s24 + $0x38] sm:$0xff]   ;;  %v867_v24 = vld [vmem:[%s943_s2] ss:$0 sm:$0xff] }
  0x13   : > { %v776_v21 = vld [vmem:[%s830_s24 + $0x70] sm:$0xff]   ;;  %v778_v23 = vld [vmem:[%s830_s24 + $0x78] sm:$0xff]  }
  0x15   : > { %688 = vmatpush3.bf16.msra.mxu0 %v757_v2  ;;  %741 = vmatpush3.bf16.msra.mxu1 %v757_v2 }
  0x16   : > { %689 = vmatprep.subr.bf16.mxu0 %v758_v3  ;;  %734 = vmatprep.subr.bf16.mxu1 %v758_v3 }
  0x19   : > { %690 = vmatpush3.bf16.msra.mxu0 %v758_v3  ;;  %742 = vmatpush3.bf16.msra.mxu1 %v758_v3 }
  0x1a   : > { %691 = vmatprep.subr.bf16.mxu0 %v759_v6  ;;  %735 = vmatprep.subr.bf16.mxu1 %v759_v6 }
  0x1d   : > { %692 = vmatpush3.bf16.msra.mxu0 %v759_v6  ;;  %743 = vmatpush3.bf16.msra.mxu1 %v759_v6 }
  0x1e   : > { %693 = vmatprep.subr.bf16.mxu0 %v760_v7  ;;  %736 = vmatprep.subr.bf16.mxu1 %v760_v7 }
  0x21   : > { %694 = vmatpush3.bf16.msra.mxu0 %v760_v7  ;;  %744 = vmatpush3.bf16.msra.mxu1 %v760_v7 }
  0x22   : > { %695 = vmatprep.subr.bf16.mxu0 %v761_v8  ;;  %737 = vmatprep.subr.bf16.mxu1 %v761_v8 }
  0x25   : > { %696 = vmatpush3.bf16.msra.mxu0 %v761_v8  ;;  %745 = vmatpush3.bf16.msra.mxu1 %v761_v8 }
  0x26   : > { %697 = vmatprep.subr.bf16.mxu0 %v762_v9  ;;  %738 = vmatprep.subr.bf16.mxu1 %v762_v9 }
  0x29   : > { %698 = vmatpush3.bf16.msra.mxu0 %v762_v9  ;;  %746 = vmatpush3.bf16.msra.mxu1 %v762_v9 }
  0x2c   : > { %700 = vmatmul.mubr.bf16.vlgmr.msra.gmra.mxu0 %v765_v10  ;;  %716 = vmatmul.mubr.bf16.vlgmr.msra.gmra.mxu1 %v766_v11 }
  0x2d   : > { %703 = vmatprep.mubr.bf16.mxu0 %v767_v12  ;;  %719 = vmatprep.mubr.bf16.mxu1 %v768_v13 }
  0x34   : > { %704 = vmatmul.mubr.bf16.gmra.mxu0 %v769_v14  ;;  %720 = vmatmul.mubr.bf16.gmra.mxu1 %v770_v15 }
  0x35   : > { %707 = vmatprep.mubr.bf16.mxu0 %v771_v16  ;;  %723 = vmatprep.mubr.bf16.mxu1 %v772_v17 }
  0x3c   : > { %708 = vmatmul.mubr.bf16.gmra.mxu0 %v773_v18  ;;  %724 = vmatmul.mubr.bf16.gmra.mxu1 %v774_v19 }
  0x3d   : > { %711 = vmatprep.mubr.bf16.mxu0 %v775_v20  ;;  %727 = vmatprep.mubr.bf16.mxu1 %v776_v21 }
  0x44   : > { %712 = vmatmul.mubr.bf16.gmra.mxu0 %v777_v22  ;;  %728 = vmatmul.mubr.bf16.gmra.mxu1 %v778_v23 }
  0xec   : > { %v701_v25 = vpop.f32.mrf.mxu0  ;;  %v717_v26 = vpop.f32.mrf.mxu1 }
  0xed   : > { %v417_v27 = vadd.f32 %v701_v25, %v867_v24  ;;  %v481_v28 = vadd.f32 %v717_v26, %v867_v24 }
  0xee   : > { %v408_v29 = vpop.f32.mrf.mxu0  ;;  %v472_v30 = vpop.f32.mrf.mxu1 }
  0xef   : > { %537 = vst [vmem:[%s872_s14 + $0x10] sm:$0xff] %v417_v27  ;;  %553 = vst [vmem:[%s872_s14 + $0x90] sm:$0xff] %v481_v28  ;;  %v409_v31 = vadd.f32 %v867_v24, %v408_v29  ;;  %v473_v32 = vadd.f32 %v867_v24, %v472_v30 }
  0xf0   : > { %v702_v33 = vpop.f32.mrf.mxu0  ;;  %v718_v34 = vpop.f32.mrf.mxu1 }
  0xf1   : > { %535 = vst [vmem:[%s872_s14] sm:$0xff] %v409_v31  ;;  %551 = vst [vmem:[%s872_s14 + $0x80] sm:$0xff] %v473_v32  ;;  %v420_v35 = vadd.f32 %v702_v33, %v867_v24  ;;  %v484_v36 = vadd.f32 %v718_v34, %v867_v24 }
  0xf2   : > { %v411_v37 = vpop.f32.mrf.mxu0  ;;  %v475_v38 = vpop.f32.mrf.mxu1 }
  0xf3   : > { %538 = vst [vmem:[%s872_s14 + $0x18] sm:$0xff] %v420_v35  ;;  %554 = vst [vmem:[%s872_s14 + $0x98] sm:$0xff] %v484_v36  ;;  %v412_v39 = vadd.f32 %v867_v24, %v411_v37  ;;  %v476_v40 = vadd.f32 %v867_v24, %v475_v38 }
  0xf4   : > { %v705_v41 = vpop.f32.mrf.mxu0  ;;  %v721_v42 = vpop.f32.mrf.mxu1 }
  0xf5   : > { %536 = vst [vmem:[%s872_s14 + $0x8] sm:$0xff] %v412_v39  ;;  %552 = vst [vmem:[%s872_s14 + $0x88] sm:$0xff] %v476_v40  ;;  %v433_v43 = vadd.f32 %v705_v41, %v867_v24  ;;  %v497_v44 = vadd.f32 %v721_v42, %v867_v24 }
  0xf6   : > { %v424_v45 = vpop.f32.mrf.mxu0  ;;  %v488_v46 = vpop.f32.mrf.mxu1 }
  0xf7   : > { %541 = vst [vmem:[%s872_s14 + $0x30] sm:$0xff] %v433_v43  ;;  %557 = vst [vmem:[%s872_s14 + $0xb0] sm:$0xff] %v497_v44  ;;  %v425_v47 = vadd.f32 %v867_v24, %v424_v45  ;;  %v489_v48 = vadd.f32 %v867_v24, %v488_v46 }
  0xf8   : > { %v706_v49 = vpop.f32.mrf.mxu0  ;;  %v722_v50 = vpop.f32.mrf.mxu1 }
  0xf9   : > { %539 = vst [vmem:[%s872_s14 + $0x20] sm:$0xff] %v425_v47  ;;  %555 = vst [vmem:[%s872_s14 + $0xa0] sm:$0xff] %v489_v48  ;;  %v436_v51 = vadd.f32 %v706_v49, %v867_v24  ;;  %v500_v52 = vadd.f32 %v722_v50, %v867_v24 }
  0xfa   : > { %v427_v53 = vpop.f32.mrf.mxu0  ;;  %v491_v54 = vpop.f32.mrf.mxu1 }
  0xfb   : > { %542 = vst [vmem:[%s872_s14 + $0x38] sm:$0xff] %v436_v51  ;;  %558 = vst [vmem:[%s872_s14 + $0xb8] sm:$0xff] %v500_v52  ;;  %v428_v55 = vadd.f32 %v867_v24, %v427_v53  ;;  %v492_v56 = vadd.f32 %v867_v24, %v491_v54 }
  0xfc   : > { %v709_v57 = vpop.f32.mrf.mxu0  ;;  %v725_v58 = vpop.f32.mrf.mxu1 }
  0xfd   : > { %540 = vst [vmem:[%s872_s14 + $0x28] sm:$0xff] %v428_v55  ;;  %556 = vst [vmem:[%s872_s14 + $0xa8] sm:$0xff] %v492_v56  ;;  %v449_v59 = vadd.f32 %v709_v57, %v867_v24  ;;  %v513_v60 = vadd.f32 %v725_v58, %v867_v24 }
  0xfe   : > { %v440_v61 = vpop.f32.mrf.mxu0  ;;  %v504_v62 = vpop.f32.mrf.mxu1 }
  0xff   : > { %545 = vst [vmem:[%s872_s14 + $0x50] sm:$0xff] %v449_v59  ;;  %561 = vst [vmem:[%s872_s14 + $0xd0] sm:$0xff] %v513_v60  ;;  %v441_v63 = vadd.f32 %v867_v24, %v440_v61  ;;  %v505_v0 = vadd.f32 %v867_v24, %v504_v62 }
 0x100   : > { %v710_v1 = vpop.f32.mrf.mxu0  ;;  %v726_v2 = vpop.f32.mrf.mxu1 }
 0x101   : > { %543 = vst [vmem:[%s872_s14 + $0x40] sm:$0xff] %v441_v63  ;;  %559 = vst [vmem:[%s872_s14 + $0xc0] sm:$0xff] %v505_v0  ;;  %v452_v3 = vadd.f32 %v710_v1, %v867_v24  ;;  %v516_v4 = vadd.f32 %v726_v2, %v867_v24 }
 0x102   : > { %v443_v5 = vpop.f32.mrf.mxu0  ;;  %v507_v6 = vpop.f32.mrf.mxu1 }
 0x103   : > { %546 = vst [vmem:[%s872_s14 + $0x58] sm:$0xff] %v452_v3  ;;  %562 = vst [vmem:[%s872_s14 + $0xd8] sm:$0xff] %v516_v4  ;;  %v444_v7 = vadd.f32 %v867_v24, %v443_v5  ;;  %v508_v8 = vadd.f32 %v867_v24, %v507_v6 }
 0x104   : > { %v713_v9 = vpop.f32.mrf.mxu0  ;;  %v729_v10 = vpop.f32.mrf.mxu1 }
 0x105   : > { %544 = vst [vmem:[%s872_s14 + $0x48] sm:$0xff] %v444_v7  ;;  %560 = vst [vmem:[%s872_s14 + $0xc8] sm:$0xff] %v508_v8  ;;  %v465_v11 = vadd.f32 %v713_v9, %v867_v24  ;;  %v529_v12 = vadd.f32 %v729_v10, %v867_v24 }
 0x106   : > { %v456_v13 = vpop.f32.mrf.mxu0  ;;  %v520_v14 = vpop.f32.mrf.mxu1 }
 0x107   : > { %549 = vst [vmem:[%s872_s14 + $0x70] sm:$0xff] %v465_v11  ;;  %565 = vst [vmem:[%s872_s14 + $0xf0] sm:$0xff] %v529_v12  ;;  %v457_v15 = vadd.f32 %v867_v24, %v456_v13  ;;  %v521_v16 = vadd.f32 %v867_v24, %v520_v14 }
 0x108   : > { %v714_v17 = vpop.f32.mrf.mxu0  ;;  %v730_v18 = vpop.f32.mrf.mxu1 }
 0x109   : > { %547 = vst [vmem:[%s872_s14 + $0x60] sm:$0xff] %v457_v15  ;;  %563 = vst [vmem:[%s872_s14 + $0xe0] sm:$0xff] %v521_v16  ;;  %v468_v19 = vadd.f32 %v714_v17, %v867_v24  ;;  %v532_v20 = vadd.f32 %v730_v18, %v867_v24 }
 0x10a   : > { %v459_v21 = vpop.f32.mrf.mxu0  ;;  %v523_v22 = vpop.f32.mrf.mxu1 }
 0x10b   : > { %550 = vst [vmem:[%s872_s14 + $0x78] sm:$0xff] %v468_v19  ;;  %566 = vst [vmem:[%s872_s14 + $0xf8] sm:$0xff] %v532_v20  ;;  %v460_v23 = vadd.f32 %v867_v24, %v459_v21  ;;  %v524_v25 = vadd.f32 %v867_v24, %v523_v22 }
 0x10d   : > { %548 = vst [vmem:[%s872_s14 + $0x68] sm:$0xff] %v460_v23  ;;  %564 = vst [vmem:[%s872_s14 + $0xe8] sm:$0xff] %v524_v25 }
 0x10e PF: > { %s13_s12 = sadd.s32 1, %s785_s12  }
 0x10f   : > { %p10_p4 = scmp.ge.s32.totalorder %s13_s12, 4  }
 0x111   :  { %12 = sbr.rel (!%p10_p4) target bundleno = 1 (0x1), region = 62 }

// kernel: forward.11
= control target key start
LH: loop header
LB: loop body
LE: loop exit
PB: predicated region body
PF: predicated region fallthrough
CT: control target
= control target key end

     0   :  { %s701_s1 = inlined_call_operand.vmem [shape: bf16[256,128], index: 1, kind: input, shape index: {}]   ;;  %s702_s0 = inlined_call_operand.vmem [shape: bf16[128,256], index: 0, kind: input, shape index: {}]   ;;  %s703_s2 = inlined_call_operand.vmem [shape: f32[1,128], index: 2, kind: input, shape index: {}]   ;;  %s704_s3 = inlined_call_operand.vmem [shape: f32[128,128], index: 3, kind: output, shape index: {}]  }
   0x1   :  { %v476_v0 = vld [vmem:[%s701_s1 + $0x78] sm:$0xff]   ;;  %v478_v2 = vld [vmem:[%s701_s1 + $0x70] sm:$0xff]   ;;  %v480_v4 = vld [vmem:[%s701_s1 + $0x68] sm:$0xff]  }
   0x2   :  { %v477_v1 = vld [vmem:[%s701_s1 + $0x38] sm:$0xff]   ;;  %396 = vmatprep.subr.bf16.mxu0 %v476_v0  ;;  %460 = vmatprep.subr.bf16.mxu1 %v476_v0  ;;  %v479_v3 = vld [vmem:[%s701_s1 + $0x30] sm:$0xff]   ;;  %v481_v5 = vld [vmem:[%s701_s1 + $0x28] sm:$0xff]  }
   0x3   :  { %397 = vmatpush3.bf16.msra.mxu0 %v477_v1  ;;  %468 = vmatpush3.bf16.msra.mxu1 %v477_v1  ;;  %v482_v6 = vld [vmem:[%s701_s1 + $0x60] sm:$0xff]   ;;  %v484_v8 = vld [vmem:[%s701_s1 + $0x58] sm:$0xff]   ;;  %v486_v10 = vld [vmem:[%s701_s1 + $0x50] sm:$0xff]  }
   0x4   :  { %398 = vmatprep.subr.bf16.mxu0 %v478_v2  ;;  %461 = vmatprep.subr.bf16.mxu1 %v478_v2  ;;  %v483_v7 = vld [vmem:[%s701_s1 + $0x20] sm:$0xff]   ;;  %v485_v9 = vld [vmem:[%s701_s1 + $0x18] sm:$0xff]   ;;  %v487_v13 = vld [vmem:[%s701_s1 + $0x10] sm:$0xff]  }
   0x5   :  { %v494_v11 = vld [vmem:[%s702_s0 + $0x4] ss:$8 sps:$4 sm:$0xff]   ;;  %v492_v18 = vld [vmem:[%s702_s0] ss:$8 sps:$4 sm:$0xff]   ;;  %v498_v20 = vld [vmem:[%s702_s0 + $0x14] ss:$8 sps:$4 sm:$0xff]  }
   0x6   :  { %v497_v12 = vld [vmem:[%s702_s0 + $0x44] ss:$8 sps:$4 sm:$0xff]   ;;  %278 = vmatprep.mubr.bf16.mxu0 %v494_v11  ;;  %v495_v19 = vld [vmem:[%s702_s0 + $0x40] ss:$8 sps:$4 sm:$0xff]   ;;  %v500_v21 = vld [vmem:[%s702_s0 + $0x54] ss:$8 sps:$4 sm:$0xff]  }
   0x7   :  { %399 = vmatpush3.bf16.msra.mxu0 %v479_v3  ;;  %469 = vmatpush3.bf16.msra.mxu1 %v479_v3  ;;  %v488_v14 = vld [vmem:[%s701_s1 + $0x48] sm:$0xff]   ;;  %v490_v16 = vld [vmem:[%s701_s1 + $0x40] sm:$0xff]   ;;  %v502_v22 = vld [vmem:[%s702_s0 + $0x10] ss:$8 sps:$4 sm:$0xff]  }
   0x8   :  { %400 = vmatprep.subr.bf16.mxu0 %v480_v4  ;;  %462 = vmatprep.subr.bf16.mxu1 %v480_v4  ;;  %v489_v15 = vld [vmem:[%s701_s1 + $0x8] sm:$0xff]   ;;  %v491_v17 = vld [vmem:[%s701_s1] sm:$0xff]   ;;  %v503_v23 = vld [vmem:[%s702_s0 + $0x50] ss:$8 sps:$4 sm:$0xff]  }
   0x9   :  { %310 = vmatprep.mubr.bf16.mxu1 %v497_v12  ;;  %v504_v24 = vld [vmem:[%s702_s0 + $0x24] ss:$8 sps:$4 sm:$0xff]   ;;  %v508_v26 = vld [vmem:[%s702_s0 + $0x20] ss:$8 sps:$4 sm:$0xff]   ;;  %v510_v28 = vld [vmem:[%s702_s0 + $0x34] ss:$8 sps:$4 sm:$0xff]  }
   0xa   :  { %v506_v25 = vld [vmem:[%s702_s0 + $0x64] ss:$8 sps:$4 sm:$0xff]   ;;  %v509_v27 = vld [vmem:[%s702_s0 + $0x60] ss:$8 sps:$4 sm:$0xff]   ;;  %v512_v29 = vld [vmem:[%s702_s0 + $0x74] ss:$8 sps:$4 sm:$0xff]  }
   0xb   :  { %401 = vmatpush3.bf16.msra.mxu0 %v481_v5  ;;  %470 = vmatpush3.bf16.msra.mxu1 %v481_v5  ;;  %v514_v30 = vld [vmem:[%s702_s0 + $0x30] ss:$8 sps:$4 sm:$0xff]   ;;  %v635_v34 = vld [vmem:[%s703_s2] ss:$0 sm:$0xff] }
   0xc   :  { %402 = vmatprep.subr.bf16.mxu0 %v482_v6  ;;  %463 = vmatprep.subr.bf16.mxu1 %v482_v6  ;;  %v515_v31 = vld [vmem:[%s702_s0 + $0x70] ss:$8 sps:$4 sm:$0xff]  }
   0xf   :  { %403 = vmatpush3.bf16.msra.mxu0 %v483_v7  ;;  %471 = vmatpush3.bf16.msra.mxu1 %v483_v7 }
  0x10   :  { %404 = vmatprep.subr.bf16.mxu0 %v484_v8  ;;  %464 = vmatprep.subr.bf16.mxu1 %v484_v8 }
  0x13   :  { %405 = vmatpush3.bf16.msra.mxu0 %v485_v9  ;;  %472 = vmatpush3.bf16.msra.mxu1 %v485_v9 }
  0x14   :  { %406 = vmatprep.subr.bf16.mxu0 %v486_v10  ;;  %465 = vmatprep.subr.bf16.mxu1 %v486_v10 }
  0x17   :  { %407 = vmatpush3.bf16.msra.mxu0 %v487_v13  ;;  %473 = vmatpush3.bf16.msra.mxu1 %v487_v13 }
  0x18   :  { %408 = vmatprep.subr.bf16.mxu0 %v488_v14  ;;  %466 = vmatprep.subr.bf16.mxu1 %v488_v14 }
  0x1b   :  { %409 = vmatpush3.bf16.msra.mxu0 %v489_v15  ;;  %474 = vmatpush3.bf16.msra.mxu1 %v489_v15 }
  0x1c   :  { %410 = vmatprep.subr.bf16.mxu0 %v490_v16  ;;  %467 = vmatprep.subr.bf16.mxu1 %v490_v16 }
  0x1f   :  { %411 = vmatpush3.bf16.msra.mxu0 %v491_v17  ;;  %475 = vmatpush3.bf16.msra.mxu1 %v491_v17 }
  0x22   :  { %279 = vmatmul.mubr.bf16.vlgmr.msra.gmra.mxu0 %v492_v18  ;;  %311 = vmatmul.mubr.bf16.vlgmr.msra.gmra.mxu1 %v495_v19 }
  0x23   :  { %286 = vmatprep.mubr.bf16.mxu0 %v498_v20  ;;  %318 = vmatprep.mubr.bf16.mxu1 %v500_v21 }
  0x2a   :  { %287 = vmatmul.mubr.bf16.gmra.mxu0 %v502_v22  ;;  %319 = vmatmul.mubr.bf16.gmra.mxu1 %v503_v23 }
  0x2b   :  { %294 = vmatprep.mubr.bf16.mxu0 %v504_v24  ;;  %326 = vmatprep.mubr.bf16.mxu1 %v506_v25 }
  0x32   :  { %295 = vmatmul.mubr.bf16.gmra.mxu0 %v508_v26  ;;  %327 = vmatmul.mubr.bf16.gmra.mxu1 %v509_v27 }
  0x33   :  { %302 = vmatprep.mubr.bf16.mxu0 %v510_v28  ;;  %334 = vmatprep.mubr.bf16.mxu1 %v512_v29 }
  0x3a   :  { %303 = vmatmul.mubr.bf16.gmra.mxu0 %v514_v30  ;;  %335 = vmatmul.mubr.bf16.gmra.mxu1 %v515_v31 }
  0xe2   :  { %v412_v32 = vpop.f32.mrf.mxu0  ;;  %v436_v33 = vpop.f32.mrf.mxu1 }
  0xe4   :  { %v413_v35 = vpop.f32.mrf.mxu0  ;;  %v437_v36 = vpop.f32.mrf.mxu1 }
  0xe5   :  { %v414_v37 = vadd.f32 %v413_v35, %v412_v32  ;;  %v438_v38 = vadd.f32 %v437_v36, %v436_v33 }
  0xe6   :  { %v415_v39 = vpop.f32.mrf.mxu0  ;;  %v439_v40 = vpop.f32.mrf.mxu1 }
  0xe7   :  { %v281_v41 = vadd.f32 %v414_v37, %v635_v34  ;;  %v313_v42 = vadd.f32 %v438_v38, %v635_v34 }
  0xe8   :  { %v416_v43 = vpop.f32.mrf.mxu0  ;;  %v440_v44 = vpop.f32.mrf.mxu1 }
  0xe9   :  { %343 = vst [vmem:[%s704_s3] sm:$0xff] %v281_v41  ;;  %351 = vst [vmem:[%s704_s3 + $0x40] sm:$0xff] %v313_v42  ;;  %v417_v45 = vadd.f32 %v416_v43, %v415_v39  ;;  %v441_v46 = vadd.f32 %v440_v44, %v439_v40 }
  0xea   :  { %v418_v47 = vpop.f32.mrf.mxu0  ;;  %v442_v48 = vpop.f32.mrf.mxu1 }
  0xeb   :  { %v284_v49 = vadd.f32 %v417_v45, %v635_v34  ;;  %v316_v50 = vadd.f32 %v441_v46, %v635_v34 }
  0xec   :  { %v419_v51 = vpop.f32.mrf.mxu0  ;;  %v443_v52 = vpop.f32.mrf.mxu1 }
  0xed   :  { %344 = vst [vmem:[%s704_s3 + $0x8] sm:$0xff] %v284_v49  ;;  %352 = vst [vmem:[%s704_s3 + $0x48] sm:$0xff] %v316_v50  ;;  %v420_v53 = vadd.f32 %v419_v51, %v418_v47  ;;  %v444_v54 = vadd.f32 %v443_v52, %v442_v48 }
  0xee   :  { %v421_v55 = vpop.f32.mrf.mxu0  ;;  %v445_v56 = vpop.f32.mrf.mxu1 }
  0xef   :  { %v289_v57 = vadd.f32 %v420_v53, %v635_v34  ;;  %v321_v58 = vadd.f32 %v444_v54, %v635_v34 }
  0xf0   :  { %v422_v59 = vpop.f32.mrf.mxu0  ;;  %v446_v60 = vpop.f32.mrf.mxu1 }
  0xf1   :  { %345 = vst [vmem:[%s704_s3 + $0x10] sm:$0xff] %v289_v57  ;;  %353 = vst [vmem:[%s704_s3 + $0x50] sm:$0xff] %v321_v58  ;;  %v423_v61 = vadd.f32 %v422_v59, %v421_v55  ;;  %v447_v62 = vadd.f32 %v446_v60, %v445_v56 }
  0xf2   :  { %v424_v63 = vpop.f32.mrf.mxu0  ;;  %v448_v0 = vpop.f32.mrf.mxu1 }
  0xf3   :  { %v292_v1 = vadd.f32 %v423_v61, %v635_v34  ;;  %v324_v2 = vadd.f32 %v447_v62, %v635_v34 }
  0xf4   :  { %v425_v3 = vpop.f32.mrf.mxu0  ;;  %v449_v4 = vpop.f32.mrf.mxu1 }
  0xf5   :  { %346 = vst [vmem:[%s704_s3 + $0x18] sm:$0xff] %v292_v1  ;;  %354 = vst [vmem:[%s704_s3 + $0x58] sm:$0xff] %v324_v2  ;;  %v426_v5 = vadd.f32 %v425_v3, %v424_v63  ;;  %v450_v6 = vadd.f32 %v449_v4, %v448_v0 }
  0xf6   :  { %v427_v7 = vpop.f32.mrf.mxu0  ;;  %v451_v8 = vpop.f32.mrf.mxu1 }
  0xf7   :  { %v297_v9 = vadd.f32 %v426_v5, %v635_v34  ;;  %v329_v10 = vadd.f32 %v450_v6, %v635_v34 }
  0xf8   :  { %v428_v11 = vpop.f32.mrf.mxu0  ;;  %v452_v12 = vpop.f32.mrf.mxu1 }
  0xf9   :  { %347 = vst [vmem:[%s704_s3 + $0x20] sm:$0xff] %v297_v9  ;;  %355 = vst [vmem:[%s704_s3 + $0x60] sm:$0xff] %v329_v10  ;;  %v429_v13 = vadd.f32 %v428_v11, %v427_v7  ;;  %v453_v14 = vadd.f32 %v452_v12, %v451_v8 }
  0xfa   :  { %v430_v15 = vpop.f32.mrf.mxu0  ;;  %v454_v16 = vpop.f32.mrf.mxu1 }
  0xfb   :  { %v300_v17 = vadd.f32 %v429_v13, %v635_v34  ;;  %v332_v18 = vadd.f32 %v453_v14, %v635_v34 }
  0xfc   :  { %v431_v19 = vpop.f32.mrf.mxu0  ;;  %v455_v20 = vpop.f32.mrf.mxu1 }
  0xfd   :  { %348 = vst [vmem:[%s704_s3 + $0x28] sm:$0xff] %v300_v17  ;;  %356 = vst [vmem:[%s704_s3 + $0x68] sm:$0xff] %v332_v18  ;;  %v432_v21 = vadd.f32 %v431_v19, %v430_v15  ;;  %v456_v22 = vadd.f32 %v455_v20, %v454_v16 }
  0xfe   :  { %v433_v23 = vpop.f32.mrf.mxu0  ;;  %v457_v24 = vpop.f32.mrf.mxu1 }
  0xff   :  { %v305_v25 = vadd.f32 %v432_v21, %v635_v34  ;;  %v337_v26 = vadd.f32 %v456_v22, %v635_v34 }
 0x100   :  { %v434_v27 = vpop.f32.mrf.mxu0  ;;  %v458_v28 = vpop.f32.mrf.mxu1 }
 0x101   :  { %349 = vst [vmem:[%s704_s3 + $0x30] sm:$0xff] %v305_v25  ;;  %357 = vst [vmem:[%s704_s3 + $0x70] sm:$0xff] %v337_v26  ;;  %v435_v29 = vadd.f32 %v434_v27, %v433_v23  ;;  %v459_v30 = vadd.f32 %v458_v28, %v457_v24 }
 0x103   :  { %v308_v31 = vadd.f32 %v435_v29, %v635_v34  ;;  %v340_v32 = vadd.f32 %v459_v30, %v635_v34 }
 0x105   :  { %350 = vst [vmem:[%s704_s3 + $0x38] sm:$0xff] %v308_v31  ;;  %358 = vst [vmem:[%s704_s3 + $0x78] sm:$0xff] %v340_v32 }

// kernel: forward.12
= control target key start
LH: loop header
LB: loop body
LE: loop exit
PB: predicated region body
PF: predicated region fallthrough
CT: control target
= control target key end

     0   :  { %s606_s1 = inlined_call_operand.vmem [shape: bf16[384,128], index: 1, kind: input, shape index: {}]   ;;  %s607_s0 = inlined_call_operand.vmem [shape: bf16[32,384], index: 0, kind: input, shape index: {}]   ;;  %s608_s2 = inlined_call_operand.vmem [shape: f32[1,128], index: 2, kind: input, shape index: {}]   ;;  %s609_s3 = inlined_call_operand.vmem [shape: f32[32,128], index: 3, kind: output, shape index: {}]  }
   0x1   :  { %v449_v0 = vld [vmem:[%s606_s1 + $0x78] sm:$0xff]   ;;  %v451_v2 = vld [vmem:[%s606_s1 + $0x70] sm:$0xff]   ;;  %v454_v5 = vld [vmem:[%s606_s1 + $0x68] sm:$0xff]  }
   0x2   :  { %v450_v1 = vld [vmem:[%s606_s1 + $0x38] sm:$0xff]   ;;  %391 = vmatprep.subr.bf16.mxu0 %v449_v0  ;;  %v453_v4 = vld [vmem:[%s606_s1 + $0x30] sm:$0xff]   ;;  %v456_v7 = vld [vmem:[%s606_s1 + $0x28] sm:$0xff]  }
   0x3   :  { %392 = vmatpush3.bf16.msra.mxu0 %v450_v1  ;;  %v452_v3 = vld [vmem:[%s606_s1 + $0xb8] sm:$0xff]   ;;  %v455_v6 = vld [vmem:[%s606_s1 + $0xb0] sm:$0xff]   ;;  %v457_v8 = vld [vmem:[%s606_s1 + $0x60] sm:$0xff]  }
   0x4   :  { %393 = vmatprep.subr.bf16.mxu0 %v451_v2  ;;  %429 = vmatprep.subr.bf16.mxu1 %v452_v3  ;;  %v458_v9 = vld [vmem:[%s606_s1 + $0xa8] sm:$0xff]   ;;  %v459_v10 = vld [vmem:[%s606_s1 + $0x20] sm:$0xff]   ;;  %v460_v11 = vld [vmem:[%s606_s1 + $0x58] sm:$0xff]  }
   0x5   :  { %430 = vmatpush3.bf16.msra.mxu1 %v452_v3  ;;  %v461_v12 = vld [vmem:[%s606_s1 + $0xa0] sm:$0xff]   ;;  %v462_v13 = vld [vmem:[%s606_s1 + $0x18] sm:$0xff]   ;;  %v463_v15 = vld [vmem:[%s606_s1 + $0x50] sm:$0xff]  }
   0x6   :  { %431 = vmatprep.subr.bf16.mxu1 %v455_v6  ;;  %v464_v14 = vld [vmem:[%s606_s1 + $0x98] sm:$0xff]   ;;  %v465_v16 = vld [vmem:[%s606_s1 + $0x10] sm:$0xff]   ;;  %v466_v18 = vld [vmem:[%s606_s1 + $0x48] sm:$0xff]  }
   0x7   :  { %394 = vmatpush3.bf16.msra.mxu0 %v453_v4  ;;  %v467_v17 = vld [vmem:[%s606_s1 + $0x90] sm:$0xff]   ;;  %v468_v19 = vld [vmem:[%s606_s1 + $0x8] sm:$0xff]   ;;  %v469_v20 = vld [vmem:[%s606_s1 + $0x40] sm:$0xff]  }
   0x8   :  { %395 = vmatprep.subr.bf16.mxu0 %v454_v5  ;;  %v470_v21 = vld [vmem:[%s606_s1 + $0x88] sm:$0xff]   ;;  %v474_v22 = vld [vmem:[%s607_s0 + $0x4] ss:$12 sps:$4 sm:$0xff]   ;;  %v360_v32 = vld [vmem:[%s608_s2] ss:$0 sm:$0xff] }
   0x9   :  { %432 = vmatpush3.bf16.msra.mxu1 %v455_v6  ;;  %v471_v23 = vld [vmem:[%s606_s1] sm:$0xff]   ;;  %286 = vmatprep.mubr.bf16.mxu0 %v474_v22  ;;  %v476_v24 = vld [vmem:[%s607_s0 + $0x8] ss:$12 sps:$4 sm:$0xff]  }
   0xa   :  { %433 = vmatprep.subr.bf16.mxu1 %v458_v9  ;;  %v475_v25 = vld [vmem:[%s606_s1 + $0x80] sm:$0xff]   ;;  %445 = vmatprep.mubr.bf16.mxu1 %v476_v24  ;;  %v478_v27 = vld [vmem:[%s607_s0 + $0x1c] ss:$12 sps:$4 sm:$0xff]  }
   0xb   :  { %396 = vmatpush3.bf16.msra.mxu0 %v456_v7  ;;  %v472_v26 = vld [vmem:[%s607_s0] ss:$12 sps:$4 sm:$0xff]   ;;  %v480_v29 = vld [vmem:[%s607_s0 + $0x18] ss:$12 sps:$4 sm:$0xff]  }
   0xc   :  { %397 = vmatprep.subr.bf16.mxu0 %v457_v8  ;;  %v477_v28 = vld [vmem:[%s607_s0 + $0x20] ss:$12 sps:$4 sm:$0xff]  }
   0xd   :  { %434 = vmatpush3.bf16.msra.mxu1 %v458_v9 }
   0xe   :  { %435 = vmatprep.subr.bf16.mxu1 %v461_v12 }
   0xf   :  { %398 = vmatpush3.bf16.msra.mxu0 %v459_v10 }
  0x10   :  { %399 = vmatprep.subr.bf16.mxu0 %v460_v11 }
  0x11   :  { %436 = vmatpush3.bf16.msra.mxu1 %v461_v12 }
  0x12   :  { %437 = vmatprep.subr.bf16.mxu1 %v464_v14 }
  0x13   :  { %400 = vmatpush3.bf16.msra.mxu0 %v462_v13 }
  0x14   :  { %401 = vmatprep.subr.bf16.mxu0 %v463_v15 }
  0x15   :  { %438 = vmatpush3.bf16.msra.mxu1 %v464_v14 }
  0x16   :  { %439 = vmatprep.subr.bf16.mxu1 %v467_v17 }
  0x17   :  { %402 = vmatpush3.bf16.msra.mxu0 %v465_v16 }
  0x18   :  { %403 = vmatprep.subr.bf16.mxu0 %v466_v18 }
  0x19   :  { %440 = vmatpush3.bf16.msra.mxu1 %v467_v17 }
  0x1a   :  { %441 = vmatprep.subr.bf16.mxu1 %v470_v21 }
  0x1b   :  { %404 = vmatpush3.bf16.msra.mxu0 %v468_v19 }
  0x1c   :  { %405 = vmatprep.subr.bf16.mxu0 %v469_v20 }
  0x1d   :  { %442 = vmatpush3.bf16.msra.mxu1 %v470_v21 }
  0x1e   :  { %443 = vmatprep.subr.bf16.mxu1 %v475_v25 }
  0x1f   :  { %406 = vmatpush3.bf16.msra.mxu0 %v471_v23 }
  0x21   :  { %444 = vmatpush3.bf16.msra.mxu1 %v475_v25 }
  0x22   :  { %287 = vmatmul.mubr.bf16.vlgmr.msra.gmra.mxu0 %v472_v26 }
  0x23   :  { %294 = vmatprep.mubr.bf16.mxu0 %v478_v27 }
  0x24   :  { %446 = vmatmul.mubr.bf16.vlgmr.msra.gmra.mxu1 %v477_v28 }
  0x2a   :  { %295 = vmatmul.mubr.bf16.gmra.mxu0 %v480_v29 }
  0xe2   :  { %v407_v30 = vpop.f32.mrf.mxu0 }
  0xe4   :  { %v408_v31 = vpop.f32.mrf.mxu0  ;;  %v447_v34 = vpop.f32.mrf.mxu1 }
  0xe5   :  { %v409_v33 = vadd.f32 %v408_v31, %v407_v30 }
  0xe6   :  { %v410_v35 = vpop.f32.mrf.mxu0  ;;  %v337_v37 = vpop.f32.mrf.mxu1 }
  0xe7   :  { %v289_v36 = vadd.f32 %v409_v33, %v360_v32 }
  0xe8   :  { %v411_v38 = vpop.f32.mrf.mxu0  ;;  %v448_v41 = vpop.f32.mrf.mxu1 }
  0xe9   :  { %v412_v39 = vadd.f32 %v411_v38, %v410_v35  ;;  %v338_v40 = vadd.f32 %v337_v37, %v289_v36 }
  0xea   :  { %v413_v42 = vpop.f32.mrf.mxu0  ;;  %v340_v44 = vpop.f32.mrf.mxu1 }
  0xeb   :  { %352 = vst [vmem:[%s609_s3] sm:$0xff] %v338_v40  ;;  %v292_v43 = vadd.f32 %v412_v39, %v360_v32 }
  0xec   :  { %v414_v45 = vpop.f32.mrf.mxu0 }
  0xed   :  { %v415_v46 = vadd.f32 %v414_v45, %v413_v42  ;;  %v341_v47 = vadd.f32 %v340_v44, %v292_v43 }
  0xee   :  { %v416_v48 = vpop.f32.mrf.mxu0 }
  0xef   :  { %v297_v49 = vadd.f32 %v415_v46, %v360_v32  ;;  %353 = vst [vmem:[%s609_s3 + $0x8] sm:$0xff] %v341_v47 }
  0xf0   :  { %v417_v50 = vpop.f32.mrf.mxu0 }
  0xf1   :  { %v346_v51 = vadd.f32 %v447_v34, %v297_v49  ;;  %v418_v52 = vadd.f32 %v417_v50, %v416_v48 }
  0xf3   :  { %354 = vst [vmem:[%s609_s3 + $0x10] sm:$0xff] %v346_v51  ;;  %v300_v53 = vadd.f32 %v418_v52, %v360_v32 }
  0xf5   :  { %v349_v54 = vadd.f32 %v448_v41, %v300_v53 }
  0xf7   :  { %355 = vst [vmem:[%s609_s3 + $0x18] sm:$0xff] %v349_v54 }

// kernel: forward.13
= control target key start
LH: loop header
LB: loop body
LE: loop exit
PB: predicated region body
PF: predicated region fallthrough
CT: control target
= control target key end

     0   :  { %v671_v33 = vmov 0.0   ;;  %vm672_vm0 = vmmov 0   ;;  %s837_s1 = inlined_call_operand.vmem [shape: bf16[640,128], index: 1, kind: input, shape index: {}]   ;;  %s838_s0 = inlined_call_operand.vmem [shape: bf16[16,640], index: 0, kind: input, shape index: {}]   ;;  %s839_s2 = inlined_call_operand.vmem [shape: f32[1,128], index: 2, kind: input, shape index: {}]   ;;  %s840_s3 = inlined_call_operand.vmem [shape: f32[16,128], index: 3, kind: output, shape index: {}]  }
   0x1   :  { %v624_v0 = vld [vmem:[%s837_s1 + $0x78] sm:$0xff]   ;;  %v628_v4 = vld [vmem:[%s837_s1 + $0x70] sm:$0xff]   ;;  %v632_v8 = vld [vmem:[%s837_s1 + $0x68] sm:$0xff]  }
   0x2   :  { %v625_v1 = vld [vmem:[%s837_s1 + $0x38] sm:$0xff]   ;;  %549 = vmatprep.subr.bf16.mxu0 %v624_v0  ;;  %v629_v5 = vld [vmem:[%s837_s1 + $0x30] sm:$0xff]   ;;  %v633_v9 = vld [vmem:[%s837_s1 + $0x28] sm:$0xff]  }
   0x3   :  { %v626_v2 = vld [vmem:[%s837_s1 + $0xf8] sm:$0xff]   ;;  %550 = vmatpush3.bf16.msra.mxu0 %v625_v1  ;;  %v630_v6 = vld [vmem:[%s837_s1 + $0xf0] sm:$0xff]   ;;  %v634_v10 = vld [vmem:[%s837_s1 + $0xe8] sm:$0xff]  }
   0x4   :  { %v627_v3 = vld [vmem:[%s837_s1 + $0xb8] sm:$0xff]   ;;  %571 = vmatprep.subr.bf16.mxu1 %v626_v2  ;;  %551 = vmatprep.subr.bf16.mxu0 %v628_v4  ;;  %v631_v7 = vld [vmem:[%s837_s1 + $0xb0] sm:$0xff]   ;;  %v635_v11 = vld [vmem:[%s837_s1 + $0xa8] sm:$0xff]  }
   0x5   :  { %572 = vmatpush3.bf16.msra.mxu1 %v627_v3  ;;  %v636_v12 = vld [vmem:[%s837_s1 + $0x60] sm:$0xff]   ;;  %v640_v16 = vld [vmem:[%s837_s1 + $0x58] sm:$0xff]   ;;  %v644_v20 = vld [vmem:[%s837_s1 + $0x50] sm:$0xff]  }
   0x6   :  { %573 = vmatprep.subr.bf16.mxu1 %v630_v6  ;;  %v637_v13 = vld [vmem:[%s837_s1 + $0x20] sm:$0xff]   ;;  %v641_v17 = vld [vmem:[%s837_s1 + $0x18] sm:$0xff]   ;;  %v645_v21 = vld [vmem:[%s837_s1 + $0x10] sm:$0xff]  }
   0x7   :  { %552 = vmatpush3.bf16.msra.mxu0 %v629_v5  ;;  %v638_v14 = vld [vmem:[%s837_s1 + $0xe0] sm:$0xff]   ;;  %v642_v18 = vld [vmem:[%s837_s1 + $0xd8] sm:$0xff]   ;;  %v646_v22 = vld [vmem:[%s837_s1 + $0xd0] sm:$0xff]  }
   0x8   :  { %553 = vmatprep.subr.bf16.mxu0 %v632_v8  ;;  %v639_v15 = vld [vmem:[%s837_s1 + $0xa0] sm:$0xff]   ;;  %v643_v19 = vld [vmem:[%s837_s1 + $0x98] sm:$0xff]   ;;  %v647_v23 = vld [vmem:[%s837_s1 + $0x90] sm:$0xff]  }
   0x9   :  { %574 = vmatpush3.bf16.msra.mxu1 %v631_v7  ;;  %v648_v24 = vld [vmem:[%s837_s1 + $0x48] sm:$0xff]   ;;  %v652_v28 = vld [vmem:[%s837_s1 + $0x40] sm:$0xff]   ;;  %v662_v37 = vld [vmem:[%s837_s1 + $0x138] sm:$0xff]  }
   0xa   :  { %575 = vmatprep.subr.bf16.mxu1 %v634_v10  ;;  %v649_v25 = vld [vmem:[%s837_s1 + $0x8] sm:$0xff]   ;;  %v653_v29 = vld [vmem:[%s837_s1] sm:$0xff]   ;;  %v663_v38 = vld [vmem:[%s837_s1 + $0x130] sm:$0xff]  }
   0xb   :  { %554 = vmatpush3.bf16.msra.mxu0 %v633_v9  ;;  %v650_v26 = vld [vmem:[%s837_s1 + $0xc8] sm:$0xff]   ;;  %v654_v30 = vld [vmem:[%s837_s1 + $0xc0] sm:$0xff]   ;;  %v666_v41 = vld [vmem:[%s837_s1 + $0x118] sm:$0xff]  }
   0xc   :  { %555 = vmatprep.subr.bf16.mxu0 %v636_v12  ;;  %v651_v27 = vld [vmem:[%s837_s1 + $0x88] sm:$0xff]   ;;  %v655_v31 = vld [vmem:[%s838_s0] ss:$20 sps:$4 sm:$0xff]   ;;  %v657_v32 = vld [vmem:[%s838_s0 + $0x4] ss:$20 sps:$4 sm:$0xff]  }
   0xd   :  { %576 = vmatpush3.bf16.msra.mxu1 %v635_v11  ;;  %v658_v34 = vld [vmem:[%s837_s1 + $0x80] sm:$0xff]   ;;  %406 = vmatprep.mubr.bf16.mxu0 %v657_v32  ;;  %v659_v35 = vld [vmem:[%s838_s0 + $0x8] ss:$20 sps:$4 sm:$0xff]   ;;  %v667_v42 = vld [vmem:[%s837_s1 + $0x110] sm:$0xff]  }
   0xe   :  { %577 = vmatprep.subr.bf16.mxu1 %v638_v14  ;;  %v661_v36 = vld [vmem:[%s838_s0 + $0xc] ss:$20 sps:$4 sm:$0xff]   ;;  %v670_v45 = vld [vmem:[%s838_s0 + $0x10] ss:$20 sps:$4 sm:$0xff]  }
   0xf   :  { %556 = vmatpush3.bf16.msra.mxu0 %v637_v13  ;;  %447 = vmatprep.mubr.bf16.mxu1 %v661_v36  ;;  %v664_v39 = vld [vmem:[%s837_s1 + $0x128] sm:$0xff]   ;;  %v665_v40 = vld [vmem:[%s837_s1 + $0x120] sm:$0xff]  }
  0x10   :  { %557 = vmatprep.subr.bf16.mxu0 %v640_v16  ;;  %v668_v43 = vld [vmem:[%s837_s1 + $0x108] sm:$0xff]   ;;  %v669_v44 = vld [vmem:[%s837_s1 + $0x100] sm:$0xff]  }
  0x11   :  { %578 = vmatpush3.bf16.msra.mxu1 %v639_v15  ;;  %v503_v52 = vld [vmem:[%s839_s2] ss:$0 sm:$0xff] }
  0x12   :  { %579 = vmatprep.subr.bf16.mxu1 %v642_v18 }
  0x13   :  { %558 = vmatpush3.bf16.msra.mxu0 %v641_v17 }
  0x14   :  { %559 = vmatprep.subr.bf16.mxu0 %v644_v20 }
  0x15   :  { %580 = vmatpush3.bf16.msra.mxu1 %v643_v19 }
  0x16   :  { %581 = vmatprep.subr.bf16.mxu1 %v646_v22 }
  0x17   :  { %560 = vmatpush3.bf16.msra.mxu0 %v645_v21 }
  0x18   :  { %561 = vmatprep.subr.bf16.mxu0 %v648_v24 }
  0x19   :  { %582 = vmatpush3.bf16.msra.mxu1 %v647_v23 }
  0x1a   :  { %583 = vmatprep.subr.bf16.mxu1 %v650_v26 }
  0x1b   :  { %562 = vmatpush3.bf16.msra.mxu0 %v649_v25 }
  0x1c   :  { %563 = vmatprep.subr.bf16.mxu0 %v652_v28 }
  0x1d   :  { %584 = vmatpush3.bf16.msra.mxu1 %v651_v27 }
  0x1e   :  { %585 = vmatprep.subr.bf16.mxu1 %v654_v30 }
  0x1f   :  { %564 = vmatpush3.bf16.msra.mxu0 %v653_v29 }
  0x20   :  { %602 = vmatprep.subr.bf16.mxu0 %v671_v33 }
  0x21   :  { %586 = vmatpush3.bf16.msra.mxu1 %v658_v34 }
  0x22   :  { %407 = vmatmul.mubr.bf16.vlgmr.msra.gmra.mxu0 %v655_v31 }
  0x23   :  { %618 = vmatprep.mubr.msk.bf16.mxu0 %vm672_vm0, %v671_v33  ;;  %603 = vmatpush3.bf16.msra.mxu0 %v662_v37 }
  0x24   :  { %448 = vmatmul.mubr.bf16.vlgmr.msra.gmra.mxu1 %v659_v35  ;;  %604 = vmatprep.subr.bf16.mxu0 %v671_v33 }
  0x27   :  { %605 = vmatpush3.bf16.msra.mxu0 %v663_v38 }
  0x28   :  { %606 = vmatprep.subr.bf16.mxu0 %v671_v33 }
  0x2b   :  { %607 = vmatpush3.bf16.msra.mxu0 %v664_v39 }
  0x2c   :  { %608 = vmatprep.subr.bf16.mxu0 %v671_v33 }
  0x2f   :  { %609 = vmatpush3.bf16.msra.mxu0 %v665_v40 }
  0x30   :  { %610 = vmatprep.subr.bf16.mxu0 %v671_v33 }
  0x33   :  { %611 = vmatpush3.bf16.msra.mxu0 %v666_v41 }
  0x34   :  { %612 = vmatprep.subr.bf16.mxu0 %v671_v33 }
  0x37   :  { %613 = vmatpush3.bf16.msra.mxu0 %v667_v42 }
  0x38   :  { %614 = vmatprep.subr.bf16.mxu0 %v671_v33 }
  0x3b   :  { %615 = vmatpush3.bf16.msra.mxu0 %v668_v43 }
  0x3c   :  { %616 = vmatprep.subr.bf16.mxu0 %v671_v33 }
  0x3f   :  { %617 = vmatpush3.bf16.msra.mxu0 %v669_v44 }
  0x42   :  { %619 = vmatmul.mubr.bf16.vlgmr.msra.gmra.mxu0 %v670_v45 }
  0xe2   :  { %v565_v46 = vpop.f32.mrf.mxu0 }
  0xe4   :  { %v566_v47 = vpop.f32.mrf.mxu0  ;;  %v587_v48 = vpop.f32.mrf.mxu1 }
  0xe5   :  { %v567_v51 = vadd.f32 %v566_v47, %v565_v46 }
  0xe6   :  { %v568_v49 = vpop.f32.mrf.mxu0  ;;  %v588_v50 = vpop.f32.mrf.mxu1 }
  0xe7   :  { %v409_v55 = vadd.f32 %v567_v51, %v503_v52  ;;  %v589_v56 = vadd.f32 %v588_v50, %v587_v48 }
  0xe8   :  { %v569_v53 = vpop.f32.mrf.mxu0  ;;  %v590_v54 = vpop.f32.mrf.mxu1 }
  0xe9   :  { %v570_v57 = vadd.f32 %v569_v53, %v568_v49  ;;  %v450_v61 = vadd.f32 %v589_v56, %v409_v55 }
  0xea   :  { %v591_v58 = vpop.f32.mrf.mxu1 }
  0xeb   :  { %v412_v59 = vadd.f32 %v570_v57, %v503_v52  ;;  %v592_v60 = vadd.f32 %v591_v58, %v590_v54 }
  0xed   :  { %v453_v1 = vadd.f32 %v592_v60, %v412_v59 }
 0x102   :  { %v490_v62 = vpop.f32.mrf.mxu0 }
 0x103   :  { %v491_v63 = vadd.f32 %v490_v62, %v450_v61 }
 0x104   :  { %v620_v0 = vpop.f32.mrf.mxu0 }
 0x105   :  { %497 = vst [vmem:[%s840_s3] sm:$0xff] %v491_v63 }
 0x106   :  { %v493_v2 = vpop.f32.mrf.mxu0 }
 0x107   :  { %v494_v3 = vadd.f32 %v493_v2, %v453_v1 }
 0x108   :  { %v621_v4 = vpop.f32.mrf.mxu0 }
 0x109   :  { %498 = vst [vmem:[%s840_s3 + $0x8] sm:$0xff] %v494_v3 }

// kernel: forward.14
= control target key start
LH: loop header
LB: loop body
LE: loop exit
PB: predicated region body
PF: predicated region fallthrough
CT: control target
= control target key end

     0   :  { %vm1152_vm0 = vmmov 0   ;;  %s1425_s1 = inlined_call_operand.vmem [shape: bf16[1152,128], index: 1, kind: input, shape index: {}]   ;;  %s1426_s0 = inlined_call_operand.vmem [shape: bf16[16,1152], index: 0, kind: input, shape index: {}]   ;;  %s1427_s2 = inlined_call_operand.vmem [shape: f32[1,128], index: 2, kind: input, shape index: {}]   ;;  %s1428_s3 = inlined_call_operand.vmem [shape: f32[16,128], index: 3, kind: output, shape index: {}]  }
   0x1   :  { %v1066_v0 = vld [vmem:[%s1425_s1 + $0x78] sm:$0xff]   ;;  %v1070_v4 = vld [vmem:[%s1425_s1 + $0x70] sm:$0xff]   ;;  %v1074_v8 = vld [vmem:[%s1425_s1 + $0x68] sm:$0xff]  }
   0x2   :  { %v1067_v1 = vld [vmem:[%s1425_s1 + $0x38] sm:$0xff]   ;;  %947 = vmatprep.subr.bf16.mxu0 %v1066_v0  ;;  %v1071_v5 = vld [vmem:[%s1425_s1 + $0x30] sm:$0xff]   ;;  %v1075_v9 = vld [vmem:[%s1425_s1 + $0x28] sm:$0xff]  }
   0x3   :  { %v1068_v2 = vld [vmem:[%s1425_s1 + $0xf8] sm:$0xff]   ;;  %948 = vmatpush3.bf16.msra.mxu0 %v1067_v1  ;;  %v1072_v6 = vld [vmem:[%s1425_s1 + $0xf0] sm:$0xff]   ;;  %v1076_v10 = vld [vmem:[%s1425_s1 + $0xe8] sm:$0xff]  }
   0x4   :  { %v1069_v3 = vld [vmem:[%s1425_s1 + $0xb8] sm:$0xff]   ;;  %969 = vmatprep.subr.bf16.mxu1 %v1068_v2  ;;  %949 = vmatprep.subr.bf16.mxu0 %v1070_v4  ;;  %v1073_v7 = vld [vmem:[%s1425_s1 + $0xb0] sm:$0xff]   ;;  %v1077_v11 = vld [vmem:[%s1425_s1 + $0xa8] sm:$0xff]  }
   0x5   :  { %970 = vmatpush3.bf16.msra.mxu1 %v1069_v3  ;;  %v1078_v12 = vld [vmem:[%s1425_s1 + $0x60] sm:$0xff]   ;;  %v1082_v16 = vld [vmem:[%s1425_s1 + $0x58] sm:$0xff]   ;;  %v1086_v20 = vld [vmem:[%s1425_s1 + $0x50] sm:$0xff]  }
   0x6   :  { %971 = vmatprep.subr.bf16.mxu1 %v1072_v6  ;;  %v1079_v13 = vld [vmem:[%s1425_s1 + $0x20] sm:$0xff]   ;;  %v1083_v17 = vld [vmem:[%s1425_s1 + $0x18] sm:$0xff]   ;;  %v1087_v21 = vld [vmem:[%s1425_s1 + $0x10] sm:$0xff]   ;;  %v1151_v6 = vmov 0.0  }
   0x7   :  { %950 = vmatpush3.bf16.msra.mxu0 %v1071_v5  ;;  %v1080_v14 = vld [vmem:[%s1425_s1 + $0xe0] sm:$0xff]   ;;  %v1084_v18 = vld [vmem:[%s1425_s1 + $0xd8] sm:$0xff]   ;;  %v1088_v22 = vld [vmem:[%s1425_s1 + $0xd0] sm:$0xff]  }
   0x8   :  { %951 = vmatprep.subr.bf16.mxu0 %v1074_v8  ;;  %v1081_v15 = vld [vmem:[%s1425_s1 + $0xa0] sm:$0xff]   ;;  %v1085_v19 = vld [vmem:[%s1425_s1 + $0x98] sm:$0xff]   ;;  %v1089_v23 = vld [vmem:[%s1425_s1 + $0x90] sm:$0xff]  }
   0x9   :  { %972 = vmatpush3.bf16.msra.mxu1 %v1073_v7  ;;  %v1090_v24 = vld [vmem:[%s1425_s1 + $0x48] sm:$0xff]   ;;  %v1094_v28 = vld [vmem:[%s1425_s1 + $0x40] sm:$0xff]   ;;  %v1101_v34 = vld [vmem:[%s1425_s1 + $0x178] sm:$0xff]  }
   0xa   :  { %973 = vmatprep.subr.bf16.mxu1 %v1076_v10  ;;  %v1091_v25 = vld [vmem:[%s1425_s1 + $0x8] sm:$0xff]   ;;  %v1095_v29 = vld [vmem:[%s1425_s1] sm:$0xff]   ;;  %v1105_v37 = vld [vmem:[%s1425_s1 + $0x138] sm:$0xff]  }
   0xb   :  { %952 = vmatpush3.bf16.msra.mxu0 %v1075_v9  ;;  %v1092_v26 = vld [vmem:[%s1425_s1 + $0xc8] sm:$0xff]   ;;  %v1096_v30 = vld [vmem:[%s1425_s1 + $0xc0] sm:$0xff]   ;;  %v1106_v38 = vld [vmem:[%s1425_s1 + $0x1f8] sm:$0xff]  }
   0xc   :  { %953 = vmatprep.subr.bf16.mxu0 %v1078_v12  ;;  %v1093_v27 = vld [vmem:[%s1425_s1 + $0x88] sm:$0xff]   ;;  %v1097_v31 = vld [vmem:[%s1426_s0] ss:$36 sps:$4 sm:$0xff]   ;;  %v1107_v39 = vld [vmem:[%s1425_s1 + $0x1b8] sm:$0xff]  }
   0xd   :  { %974 = vmatpush3.bf16.msra.mxu1 %v1077_v11  ;;  %v1099_v32 = vld [vmem:[%s1426_s0 + $0x4] ss:$36 sps:$4 sm:$0xff]   ;;  %v1104_v36 = vld [vmem:[%s1426_s0 + $0xc] ss:$36 sps:$4 sm:$0xff]   ;;  %v1120_v52 = vld [vmem:[%s1425_s1 + $0x158] sm:$0xff]  }
   0xe   :  { %975 = vmatprep.subr.bf16.mxu1 %v1080_v14  ;;  %v1100_v33 = vld [vmem:[%s1425_s1 + $0x80] sm:$0xff]   ;;  %686 = vmatprep.mubr.bf16.mxu0 %v1099_v32  ;;  %v1102_v35 = vld [vmem:[%s1426_s0 + $0x8] ss:$36 sps:$4 sm:$0xff]   ;;  %v1108_v40 = vld [vmem:[%s1425_s1 + $0x170] sm:$0xff]  }
   0xf   :  { %954 = vmatpush3.bf16.msra.mxu0 %v1079_v13  ;;  %727 = vmatprep.mubr.bf16.mxu1 %v1104_v36  ;;  %v1109_v41 = vld [vmem:[%s1425_s1 + $0x130] sm:$0xff]   ;;  %v1112_v44 = vld [vmem:[%s1425_s1 + $0x168] sm:$0xff]   ;;  %v1116_v48 = vld [vmem:[%s1425_s1 + $0x160] sm:$0xff]  }
  0x10   :  { %955 = vmatprep.subr.bf16.mxu0 %v1082_v16  ;;  %v1110_v42 = vld [vmem:[%s1425_s1 + $0x1f0] sm:$0xff]   ;;  %v1113_v45 = vld [vmem:[%s1425_s1 + $0x128] sm:$0xff]   ;;  %v1117_v49 = vld [vmem:[%s1425_s1 + $0x120] sm:$0xff]  }
  0x11   :  { %976 = vmatpush3.bf16.msra.mxu1 %v1081_v15  ;;  %v1111_v43 = vld [vmem:[%s1425_s1 + $0x1b0] sm:$0xff]   ;;  %v1114_v46 = vld [vmem:[%s1425_s1 + $0x1e8] sm:$0xff]   ;;  %v1118_v50 = vld [vmem:[%s1425_s1 + $0x1e0] sm:$0xff]  }
  0x12   :  { %977 = vmatprep.subr.bf16.mxu1 %v1084_v18  ;;  %v1115_v47 = vld [vmem:[%s1425_s1 + $0x1a8] sm:$0xff]   ;;  %v1119_v51 = vld [vmem:[%s1425_s1 + $0x1a0] sm:$0xff]   ;;  %v1121_v53 = vld [vmem:[%s1425_s1 + $0x118] sm:$0xff]  }
  0x13   :  { %956 = vmatpush3.bf16.msra.mxu0 %v1083_v17  ;;  %v1122_v54 = vld [vmem:[%s1425_s1 + $0x1d8] sm:$0xff]   ;;  %v1124_v56 = vld [vmem:[%s1425_s1 + $0x150] sm:$0xff]   ;;  %v1128_v60 = vld [vmem:[%s1425_s1 + $0x148] sm:$0xff]  }
  0x14   :  { %957 = vmatprep.subr.bf16.mxu0 %v1086_v20  ;;  %v1123_v55 = vld [vmem:[%s1425_s1 + $0x198] sm:$0xff]   ;;  %v1125_v57 = vld [vmem:[%s1425_s1 + $0x110] sm:$0xff]   ;;  %v1129_v61 = vld [vmem:[%s1425_s1 + $0x108] sm:$0xff]  }
  0x15   :  { %978 = vmatpush3.bf16.msra.mxu1 %v1085_v19  ;;  %v1126_v58 = vld [vmem:[%s1425_s1 + $0x1d0] sm:$0xff]   ;;  %v1130_v62 = vld [vmem:[%s1425_s1 + $0x1c8] sm:$0xff]   ;;  %v1132_v0 = vld [vmem:[%s1425_s1 + $0x140] sm:$0xff]  }
  0x16   :  { %979 = vmatprep.subr.bf16.mxu1 %v1088_v22  ;;  %v1127_v59 = vld [vmem:[%s1425_s1 + $0x190] sm:$0xff]   ;;  %v1131_v63 = vld [vmem:[%s1425_s1 + $0x188] sm:$0xff]   ;;  %v1133_v1 = vld [vmem:[%s1425_s1 + $0x100] sm:$0xff]  }
  0x17   :  { %958 = vmatpush3.bf16.msra.mxu0 %v1087_v21  ;;  %v1134_v2 = vld [vmem:[%s1425_s1 + $0x1c0] sm:$0xff]   ;;  %v1135_v3 = vld [vmem:[%s1426_s0 + $0x10] ss:$36 sps:$4 sm:$0xff]   ;;  %v1139_v7 = vld [vmem:[%s1426_s0 + $0x18] ss:$36 sps:$4 sm:$0xff]  }
  0x18   :  { %959 = vmatprep.subr.bf16.mxu0 %v1090_v24  ;;  %v1137_v4 = vld [vmem:[%s1426_s0 + $0x14] ss:$36 sps:$4 sm:$0xff]   ;;  %v1138_v5 = vld [vmem:[%s1425_s1 + $0x180] sm:$0xff]   ;;  %v1144_v11 = vld [vmem:[%s1425_s1 + $0x228] sm:$0xff]  }
  0x19   :  { %980 = vmatpush3.bf16.msra.mxu1 %v1089_v23  ;;  %v1141_v8 = vld [vmem:[%s1426_s0 + $0x1c] ss:$36 sps:$4 sm:$0xff]   ;;  %v1143_v10 = vld [vmem:[%s1425_s1 + $0x230] sm:$0xff]   ;;  %v1148_v15 = vld [vmem:[%s1425_s1 + $0x208] sm:$0xff]  }
  0x1a   :  { %981 = vmatprep.subr.bf16.mxu1 %v1092_v26  ;;  %v1142_v9 = vld [vmem:[%s1425_s1 + $0x238] sm:$0xff]   ;;  %v1145_v12 = vld [vmem:[%s1425_s1 + $0x220] sm:$0xff]   ;;  %v1147_v14 = vld [vmem:[%s1425_s1 + $0x210] sm:$0xff]  }
  0x1b   :  { %960 = vmatpush3.bf16.msra.mxu0 %v1091_v25  ;;  %v1146_v13 = vld [vmem:[%s1425_s1 + $0x218] sm:$0xff]   ;;  %v1149_v16 = vld [vmem:[%s1425_s1 + $0x200] sm:$0xff]  }
  0x1c   :  { %961 = vmatprep.subr.bf16.mxu0 %v1094_v28  ;;  %v1150_v17 = vld [vmem:[%s1426_s0 + $0x20] ss:$36 sps:$4 sm:$0xff]  }
  0x1d   :  { %982 = vmatpush3.bf16.msra.mxu1 %v1093_v27 }
  0x1e   :  { %983 = vmatprep.subr.bf16.mxu1 %v1096_v30  ;;  %v865_v30 = vld [vmem:[%s1427_s2] ss:$0 sm:$0xff] }
  0x1f   :  { %962 = vmatpush3.bf16.msra.mxu0 %v1095_v29 }
  0x20   :  { %991 = vmatprep.subr.bf16.mxu0 %v1101_v34 }
  0x21   :  { %984 = vmatpush3.bf16.msra.mxu1 %v1100_v33 }
  0x22   :  { %687 = vmatmul.mubr.bf16.vlgmr.msra.gmra.mxu0 %v1097_v31  ;;  %1013 = vmatprep.subr.bf16.mxu1 %v1106_v38 }
  0x23   :  { %992 = vmatpush3.bf16.msra.mxu0 %v1105_v37  ;;  %768 = vmatprep.mubr.bf16.mxu0 %v1137_v4 }
  0x24   :  { %728 = vmatmul.mubr.bf16.vlgmr.msra.gmra.mxu1 %v1102_v35  ;;  %993 = vmatprep.subr.bf16.mxu0 %v1108_v40 }
  0x25   :  { %1014 = vmatpush3.bf16.msra.mxu1 %v1107_v39  ;;  %809 = vmatprep.mubr.bf16.mxu1 %v1141_v8 }
  0x26   :  { %1015 = vmatprep.subr.bf16.mxu1 %v1110_v42 }
  0x27   :  { %994 = vmatpush3.bf16.msra.mxu0 %v1109_v41 }
  0x28   :  { %995 = vmatprep.subr.bf16.mxu0 %v1112_v44 }
  0x29   :  { %1016 = vmatpush3.bf16.msra.mxu1 %v1111_v43 }
  0x2a   :  { %1017 = vmatprep.subr.bf16.mxu1 %v1114_v46 }
  0x2b   :  { %996 = vmatpush3.bf16.msra.mxu0 %v1113_v45 }
  0x2c   :  { %997 = vmatprep.subr.bf16.mxu0 %v1116_v48 }
  0x2d   :  { %1018 = vmatpush3.bf16.msra.mxu1 %v1115_v47 }
  0x2e   :  { %1019 = vmatprep.subr.bf16.mxu1 %v1118_v50 }
  0x2f   :  { %998 = vmatpush3.bf16.msra.mxu0 %v1117_v49 }
  0x30   :  { %999 = vmatprep.subr.bf16.mxu0 %v1120_v52 }
  0x31   :  { %1020 = vmatpush3.bf16.msra.mxu1 %v1119_v51 }
  0x32   :  { %1021 = vmatprep.subr.bf16.mxu1 %v1122_v54 }
  0x33   :  { %1000 = vmatpush3.bf16.msra.mxu0 %v1121_v53 }
  0x34   :  { %1001 = vmatprep.subr.bf16.mxu0 %v1124_v56 }
  0x35   :  { %1022 = vmatpush3.bf16.msra.mxu1 %v1123_v55 }
  0x36   :  { %1023 = vmatprep.subr.bf16.mxu1 %v1126_v58 }
  0x37   :  { %1002 = vmatpush3.bf16.msra.mxu0 %v1125_v57 }
  0x38   :  { %1003 = vmatprep.subr.bf16.mxu0 %v1128_v60 }
  0x39   :  { %1024 = vmatpush3.bf16.msra.mxu1 %v1127_v59 }
  0x3a   :  { %1025 = vmatprep.subr.bf16.mxu1 %v1130_v62 }
  0x3b   :  { %1004 = vmatpush3.bf16.msra.mxu0 %v1129_v61 }
  0x3c   :  { %1005 = vmatprep.subr.bf16.mxu0 %v1132_v0 }
  0x3d   :  { %1026 = vmatpush3.bf16.msra.mxu1 %v1131_v63 }
  0x3e   :  { %1027 = vmatprep.subr.bf16.mxu1 %v1134_v2 }
  0x3f   :  { %1006 = vmatpush3.bf16.msra.mxu0 %v1133_v1 }
  0x40   :  { %1044 = vmatprep.subr.bf16.mxu0 %v1151_v6 }
  0x41   :  { %1028 = vmatpush3.bf16.msra.mxu1 %v1138_v5 }
  0x42   :  { %769 = vmatmul.mubr.bf16.vlgmr.msra.gmra.mxu0 %v1135_v3 }
  0x43   :  { %1060 = vmatprep.mubr.msk.bf16.mxu0 %vm1152_vm0, %v1151_v6  ;;  %1045 = vmatpush3.bf16.msra.mxu0 %v1142_v9 }
  0x44   :  { %810 = vmatmul.mubr.bf16.vlgmr.msra.gmra.mxu1 %v1139_v7  ;;  %1046 = vmatprep.subr.bf16.mxu0 %v1151_v6 }
  0x47   :  { %1047 = vmatpush3.bf16.msra.mxu0 %v1143_v10 }
  0x48   :  { %1048 = vmatprep.subr.bf16.mxu0 %v1151_v6 }
  0x4b   :  { %1049 = vmatpush3.bf16.msra.mxu0 %v1144_v11 }
  0x4c   :  { %1050 = vmatprep.subr.bf16.mxu0 %v1151_v6 }
  0x4f   :  { %1051 = vmatpush3.bf16.msra.mxu0 %v1145_v12 }
  0x50   :  { %1052 = vmatprep.subr.bf16.mxu0 %v1151_v6 }
  0x53   :  { %1053 = vmatpush3.bf16.msra.mxu0 %v1146_v13 }
  0x54   :  { %1054 = vmatprep.subr.bf16.mxu0 %v1151_v6 }
  0x57   :  { %1055 = vmatpush3.bf16.msra.mxu0 %v1147_v14 }
  0x58   :  { %1056 = vmatprep.subr.bf16.mxu0 %v1151_v6 }
  0x5b   :  { %1057 = vmatpush3.bf16.msra.mxu0 %v1148_v15 }
  0x5c   :  { %1058 = vmatprep.subr.bf16.mxu0 %v1151_v6 }
  0x5f   :  { %1059 = vmatpush3.bf16.msra.mxu0 %v1149_v16 }
  0x62   :  { %1061 = vmatmul.mubr.bf16.vlgmr.msra.gmra.mxu0 %v1150_v17 }
  0xe2   :  { %v963_v18 = vpop.f32.mrf.mxu0 }
  0xe4   :  { %v964_v19 = vpop.f32.mrf.mxu0  ;;  %v985_v20 = vpop.f32.mrf.mxu1 }
  0xe5   :  { %v965_v29 = vadd.f32 %v964_v19, %v963_v18 }
  0xe6   :  { %v966_v21 = vpop.f32.mrf.mxu0  ;;  %v986_v22 = vpop.f32.mrf.mxu1 }
  0xe7   :  { %v689_v33 = vadd.f32 %v965_v29, %v865_v30  ;;  %v987_v34 = vadd.f32 %v986_v22, %v985_v20 }
  0xe8   :  { %v967_v23 = vpop.f32.mrf.mxu0  ;;  %v988_v24 = vpop.f32.mrf.mxu1 }
  0xe9   :  { %v968_v35 = vadd.f32 %v967_v23, %v966_v21  ;;  %v730_v39 = vadd.f32 %v987_v34, %v689_v33 }
  0xea   :  { %v989_v26 = vpop.f32.mrf.mxu1 }
  0xeb   :  { %v692_v40 = vadd.f32 %v968_v35, %v865_v30  ;;  %v990_v41 = vadd.f32 %v989_v26, %v988_v24 }
  0xed   :  { %v733_v46 = vadd.f32 %v990_v41, %v692_v40 }
 0x102   :  { %v1007_v25 = vpop.f32.mrf.mxu0 }
 0x104   :  { %v1008_v27 = vpop.f32.mrf.mxu0  ;;  %v1029_v28 = vpop.f32.mrf.mxu1 }
 0x105   :  { %v1009_v36 = vadd.f32 %v1008_v27, %v1007_v25 }
 0x106   :  { %v1010_v31 = vpop.f32.mrf.mxu0  ;;  %v1030_v32 = vpop.f32.mrf.mxu1 }
 0x107   :  { %v771_v42 = vadd.f32 %v1009_v36, %v730_v39  ;;  %v1031_v43 = vadd.f32 %v1030_v32, %v1029_v28 }
 0x108   :  { %v1011_v37 = vpop.f32.mrf.mxu0  ;;  %v1032_v38 = vpop.f32.mrf.mxu1 }
 0x109   :  { %v1012_v44 = vadd.f32 %v1011_v37, %v1010_v31  ;;  %v812_v49 = vadd.f32 %v1031_v43, %v771_v42 }
 0x10a   :  { %v1033_v45 = vpop.f32.mrf.mxu1 }
 0x10b   :  { %v774_v47 = vadd.f32 %v1012_v44, %v733_v46  ;;  %v1034_v48 = vadd.f32 %v1033_v45, %v1032_v38 }
 0x10d   :  { %v815_v53 = vadd.f32 %v1034_v48, %v774_v47 }
 0x122   :  { %v852_v50 = vpop.f32.mrf.mxu0 }
 0x123   :  { %v853_v51 = vadd.f32 %v852_v50, %v812_v49 }
 0x124   :  { %v1062_v52 = vpop.f32.mrf.mxu0 }
 0x125   :  { %859 = vst [vmem:[%s1428_s3] sm:$0xff] %v853_v51 }
 0x126   :  { %v855_v54 = vpop.f32.mrf.mxu0 }
 0x127   :  { %v856_v55 = vadd.f32 %v855_v54, %v815_v53 }
 0x128   :  { %v1063_v56 = vpop.f32.mrf.mxu0 }
 0x129   :  { %860 = vst [vmem:[%s1428_s3 + $0x8] sm:$0xff] %v856_v55 }

// kernel: forward.15
= control target key start
LH: loop header
LB: loop body
LE: loop exit
PB: predicated region body
PF: predicated region fallthrough
CT: control target
= control target key end

     0   :  { %s2048_s1 = inlined_call_operand.vmem [shape: bf16[1152,256], index: 1, kind: input, shape index: {}]   ;;  %s2049_s0 = inlined_call_operand.vmem [shape: bf16[16,1152], index: 0, kind: input, shape index: {}]   ;;  %s2050_s2 = inlined_call_operand.vmem [shape: f32[1,256], index: 2, kind: input, shape index: {}]   ;;  %s2051_s3 = inlined_call_operand.vmem [shape: f32[16,256], index: 3, kind: output, shape index: {}]  }
   0x1   :  { %v1324_v0 = vld [vmem:[%s2048_s1 + $0x74] ss:$8 sps:$4 sm:$0xff]   ;;  %v1326_v1 = vld [vmem:[%s2048_s1 + $0x70] ss:$8 sps:$4 sm:$0xff]   ;;  %v1330_v4 = vld [vmem:[%s2048_s1 + $0x64] ss:$8 sps:$4 sm:$0xff]  }
   0x2   :  { %947 = vmatprep.subr.bf16.mxu0 %v1324_v0  ;;  %v1327_v2 = vld [vmem:[%s2048_s1 + $0x174] ss:$8 sps:$4 sm:$0xff]   ;;  %v1329_v3 = vld [vmem:[%s2048_s1 + $0x170] ss:$8 sps:$4 sm:$0xff]   ;;  %v1332_v5 = vld [vmem:[%s2048_s1 + $0x60] ss:$8 sps:$4 sm:$0xff]  }
   0x3   :  { %948 = vmatpush1.bf16.msra.mxu0 %v1326_v1  ;;  %990 = vmatprep.subr.bf16.mxu1 %v1327_v2  ;;  %v1333_v6 = vld [vmem:[%s2048_s1 + $0x164] ss:$8 sps:$4 sm:$0xff]   ;;  %v1335_v7 = vld [vmem:[%s2048_s1 + $0x160] ss:$8 sps:$4 sm:$0xff]   ;;  %v1336_v8 = vld [vmem:[%s2048_s1 + $0x54] ss:$8 sps:$4 sm:$0xff]  }
   0x4   :  { %991 = vmatpush1.bf16.msra.mxu1 %v1329_v3  ;;  %949 = vmatprep.subr.bf16.mxu0 %v1330_v4  ;;  %v1338_v9 = vld [vmem:[%s2048_s1 + $0x50] ss:$8 sps:$4 sm:$0xff]   ;;  %v1339_v10 = vld [vmem:[%s2048_s1 + $0x154] ss:$8 sps:$4 sm:$0xff]   ;;  %v1342_v11 = vld [vmem:[%s2048_s1 + $0x44] ss:$8 sps:$4 sm:$0xff]  }
   0x5   :  { %992 = vmatprep.subr.bf16.mxu1 %v1333_v6  ;;  %v1341_v12 = vld [vmem:[%s2048_s1 + $0x150] ss:$8 sps:$4 sm:$0xff]   ;;  %v1345_v13 = vld [vmem:[%s2048_s1 + $0x144] ss:$8 sps:$4 sm:$0xff]   ;;  %v1344_v14 = vld [vmem:[%s2048_s1 + $0x40] ss:$8 sps:$4 sm:$0xff]  }
   0x6   :  { %v1348_v15 = vld [vmem:[%s2048_s1 + $0x34] ss:$8 sps:$4 sm:$0xff]   ;;  %v1347_v16 = vld [vmem:[%s2048_s1 + $0x140] ss:$8 sps:$4 sm:$0xff]   ;;  %v1350_v18 = vld [vmem:[%s2048_s1 + $0x30] ss:$8 sps:$4 sm:$0xff]  }
   0x7   :  { %950 = vmatpush1.bf16.msra.mxu0 %v1332_v5  ;;  %v1351_v17 = vld [vmem:[%s2048_s1 + $0x134] ss:$8 sps:$4 sm:$0xff]   ;;  %v1354_v19 = vld [vmem:[%s2048_s1 + $0x24] ss:$8 sps:$4 sm:$0xff]   ;;  %v1353_v20 = vld [vmem:[%s2048_s1 + $0x130] ss:$8 sps:$4 sm:$0xff]  }
   0x8   :  { %951 = vmatprep.subr.bf16.mxu0 %v1336_v8  ;;  %993 = vmatpush1.bf16.msra.mxu1 %v1335_v7  ;;  %v1357_v21 = vld [vmem:[%s2048_s1 + $0x124] ss:$8 sps:$4 sm:$0xff]   ;;  %v1356_v22 = vld [vmem:[%s2048_s1 + $0x20] ss:$8 sps:$4 sm:$0xff]   ;;  %v1360_v23 = vld [vmem:[%s2048_s1 + $0x14] ss:$8 sps:$4 sm:$0xff]  }
   0x9   :  { %994 = vmatprep.subr.bf16.mxu1 %v1339_v10  ;;  %v1359_v24 = vld [vmem:[%s2048_s1 + $0x120] ss:$8 sps:$4 sm:$0xff]   ;;  %v1363_v25 = vld [vmem:[%s2048_s1 + $0x114] ss:$8 sps:$4 sm:$0xff]   ;;  %v1362_v26 = vld [vmem:[%s2048_s1 + $0x10] ss:$8 sps:$4 sm:$0xff]  }
   0xa   :  { %v1366_v27 = vld [vmem:[%s2048_s1 + $0x4] ss:$8 sps:$4 sm:$0xff]   ;;  %v1365_v28 = vld [vmem:[%s2048_s1 + $0x110] ss:$8 sps:$4 sm:$0xff]   ;;  %v1368_v30 = vld [vmem:[%s2048_s1] ss:$8 sps:$4 sm:$0xff]  }
   0xb   :  { %952 = vmatpush1.bf16.msra.mxu0 %v1338_v9  ;;  %v1369_v29 = vld [vmem:[%s2048_s1 + $0x104] ss:$8 sps:$4 sm:$0xff]   ;;  %v1372_v31 = vld [vmem:[%s2048_s1 + $0xf4] ss:$8 sps:$4 sm:$0xff]   ;;  %v1371_v32 = vld [vmem:[%s2048_s1 + $0x100] ss:$8 sps:$4 sm:$0xff]  }
   0xc   :  { %953 = vmatprep.subr.bf16.mxu0 %v1342_v11  ;;  %995 = vmatpush1.bf16.msra.mxu1 %v1341_v12  ;;  %v1375_v33 = vld [vmem:[%s2048_s1 + $0x1f4] ss:$8 sps:$4 sm:$0xff]   ;;  %v1374_v34 = vld [vmem:[%s2048_s1 + $0xf0] ss:$8 sps:$4 sm:$0xff]   ;;  %v1378_v35 = vld [vmem:[%s2048_s1 + $0xe4] ss:$8 sps:$4 sm:$0xff]  }
   0xd   :  { %996 = vmatprep.subr.bf16.mxu1 %v1345_v13  ;;  %v1377_v36 = vld [vmem:[%s2048_s1 + $0x1f0] ss:$8 sps:$4 sm:$0xff]   ;;  %v1381_v37 = vld [vmem:[%s2048_s1 + $0x1e4] ss:$8 sps:$4 sm:$0xff]   ;;  %v1380_v38 = vld [vmem:[%s2048_s1 + $0xe0] ss:$8 sps:$4 sm:$0xff]  }
   0xe   :  { %v1384_v39 = vld [vmem:[%s2048_s1 + $0xd4] ss:$8 sps:$4 sm:$0xff]   ;;  %v1383_v40 = vld [vmem:[%s2048_s1 + $0x1e0] ss:$8 sps:$4 sm:$0xff]   ;;  %v1386_v42 = vld [vmem:[%s2048_s1 + $0xd0] ss:$8 sps:$4 sm:$0xff]  }
   0xf   :  { %954 = vmatpush1.bf16.msra.mxu0 %v1344_v14  ;;  %v1387_v41 = vld [vmem:[%s2048_s1 + $0x1d4] ss:$8 sps:$4 sm:$0xff]   ;;  %v1390_v43 = vld [vmem:[%s2048_s1 + $0xc4] ss:$8 sps:$4 sm:$0xff]   ;;  %v1389_v44 = vld [vmem:[%s2048_s1 + $0x1d0] ss:$8 sps:$4 sm:$0xff]  }
  0x10   :  { %955 = vmatprep.subr.bf16.mxu0 %v1348_v15  ;;  %997 = vmatpush1.bf16.msra.mxu1 %v1347_v16  ;;  %v1393_v45 = vld [vmem:[%s2048_s1 + $0x1c4] ss:$8 sps:$4 sm:$0xff]   ;;  %v1392_v46 = vld [vmem:[%s2048_s1 + $0xc0] ss:$8 sps:$4 sm:$0xff]   ;;  %v1396_v48 = vld [vmem:[%s2048_s1 + $0xb4] ss:$8 sps:$4 sm:$0xff]  }
  0x11   :  { %998 = vmatprep.subr.bf16.mxu1 %v1351_v17  ;;  %v1421_v47 = vld [vmem:[%s2049_s0 + $0x4] ss:$36 sps:$4 sm:$0xff]   ;;  %v1399_v50 = vld [vmem:[%s2048_s1 + $0x1b4] ss:$8 sps:$4 sm:$0xff]   ;;  %v1428_v51 = vld [vmem:[%s2049_s0 + $0xc] ss:$36 sps:$4 sm:$0xff]  }
  0x12   :  { %v1395_v49 = vld [vmem:[%s2048_s1 + $0x1c0] ss:$8 sps:$4 sm:$0xff]   ;;  %979 = vmatprep.mubr.bf16.mxu0 %v1421_v47  ;;  %v1398_v52 = vld [vmem:[%s2048_s1 + $0xb0] ss:$8 sps:$4 sm:$0xff]   ;;  %v1402_v53 = vld [vmem:[%s2048_s1 + $0xa4] ss:$8 sps:$4 sm:$0xff]   ;;  %1022 = vmatprep.mubr.bf16.mxu1 %v1428_v51 }
  0x13   :  { %956 = vmatpush1.bf16.msra.mxu0 %v1350_v18  ;;  %v1401_v54 = vld [vmem:[%s2048_s1 + $0x1b0] ss:$8 sps:$4 sm:$0xff]   ;;  %v1405_v55 = vld [vmem:[%s2048_s1 + $0x1a4] ss:$8 sps:$4 sm:$0xff]   ;;  %v1404_v56 = vld [vmem:[%s2048_s1 + $0xa0] ss:$8 sps:$4 sm:$0xff]  }
  0x14   :  { %957 = vmatprep.subr.bf16.mxu0 %v1354_v19  ;;  %999 = vmatpush1.bf16.msra.mxu1 %v1353_v20  ;;  %v1408_v57 = vld [vmem:[%s2048_s1 + $0x94] ss:$8 sps:$4 sm:$0xff]   ;;  %v1407_v58 = vld [vmem:[%s2048_s1 + $0x1a0] ss:$8 sps:$4 sm:$0xff]   ;;  %v1410_v60 = vld [vmem:[%s2048_s1 + $0x90] ss:$8 sps:$4 sm:$0xff]  }
  0x15   :  { %1000 = vmatprep.subr.bf16.mxu1 %v1357_v21  ;;  %v1411_v59 = vld [vmem:[%s2048_s1 + $0x194] ss:$8 sps:$4 sm:$0xff]   ;;  %v1414_v61 = vld [vmem:[%s2048_s1 + $0x84] ss:$8 sps:$4 sm:$0xff]   ;;  %v1413_v62 = vld [vmem:[%s2048_s1 + $0x190] ss:$8 sps:$4 sm:$0xff]  }
  0x16   :  { %v1417_v63 = vld [vmem:[%s2048_s1 + $0x184] ss:$8 sps:$4 sm:$0xff]   ;;  %v1416_v0 = vld [vmem:[%s2048_s1 + $0x80] ss:$8 sps:$4 sm:$0xff]   ;;  %v1425_v1 = vld [vmem:[%s2048_s1 + $0x274] ss:$8 sps:$4 sm:$0xff]  }
  0x17   :  { %958 = vmatpush1.bf16.msra.mxu0 %v1356_v22  ;;  %v1422_v2 = vld [vmem:[%s2048_s1 + $0x180] ss:$8 sps:$4 sm:$0xff]   ;;  %v1431_v4 = vld [vmem:[%s2048_s1 + $0x374] ss:$8 sps:$4 sm:$0xff]   ;;  %v1423_v5 = vld [vmem:[%s2048_s1 + $0x270] ss:$8 sps:$4 sm:$0xff]  }
  0x18   :  { %959 = vmatprep.subr.bf16.mxu0 %v1360_v23  ;;  %1001 = vmatpush1.bf16.msra.mxu1 %v1359_v24  ;;  %v1419_v3 = vld [vmem:[%s2049_s0] ss:$36 sps:$4 sm:$0xff]   ;;  %v1426_v6 = vld [vmem:[%s2049_s0 + $0x8] ss:$36 sps:$4 sm:$0xff]   ;;  %v1429_v8 = vld [vmem:[%s2048_s1 + $0x370] ss:$8 sps:$4 sm:$0xff]  }
  0x19   :  { %1002 = vmatprep.subr.bf16.mxu1 %v1363_v25  ;;  %v1434_v7 = vld [vmem:[%s2048_s1 + $0x264] ss:$8 sps:$4 sm:$0xff]   ;;  %v1432_v10 = vld [vmem:[%s2048_s1 + $0x260] ss:$8 sps:$4 sm:$0xff]   ;;  %v1440_v11 = vld [vmem:[%s2048_s1 + $0x254] ss:$8 sps:$4 sm:$0xff]  }
  0x1a   :  { %v1437_v9 = vld [vmem:[%s2048_s1 + $0x364] ss:$8 sps:$4 sm:$0xff]   ;;  %v1435_v12 = vld [vmem:[%s2048_s1 + $0x360] ss:$8 sps:$4 sm:$0xff]   ;;  %v1443_v13 = vld [vmem:[%s2048_s1 + $0x354] ss:$8 sps:$4 sm:$0xff]  }
  0x1b   :  { %960 = vmatpush1.bf16.msra.mxu0 %v1362_v26  ;;  %v1438_v14 = vld [vmem:[%s2048_s1 + $0x250] ss:$8 sps:$4 sm:$0xff]   ;;  %v1446_v15 = vld [vmem:[%s2048_s1 + $0x244] ss:$8 sps:$4 sm:$0xff]   ;;  %v1444_v18 = vld [vmem:[%s2048_s1 + $0x240] ss:$8 sps:$4 sm:$0xff]  }
  0x1c   :  { %961 = vmatprep.subr.bf16.mxu0 %v1366_v27  ;;  %1003 = vmatpush1.bf16.msra.mxu1 %v1365_v28  ;;  %v1441_v16 = vld [vmem:[%s2048_s1 + $0x350] ss:$8 sps:$4 sm:$0xff]   ;;  %v1449_v17 = vld [vmem:[%s2048_s1 + $0x344] ss:$8 sps:$4 sm:$0xff]   ;;  %v1452_v19 = vld [vmem:[%s2048_s1 + $0x234] ss:$8 sps:$4 sm:$0xff]  }
  0x1d   :  { %1004 = vmatprep.subr.bf16.mxu1 %v1369_v29  ;;  %v1447_v20 = vld [vmem:[%s2048_s1 + $0x340] ss:$8 sps:$4 sm:$0xff]   ;;  %v1455_v21 = vld [vmem:[%s2048_s1 + $0x334] ss:$8 sps:$4 sm:$0xff]   ;;  %v1450_v22 = vld [vmem:[%s2048_s1 + $0x230] ss:$8 sps:$4 sm:$0xff]  }
  0x1e   :  { %v1458_v23 = vld [vmem:[%s2048_s1 + $0x224] ss:$8 sps:$4 sm:$0xff]   ;;  %v1453_v24 = vld [vmem:[%s2048_s1 + $0x330] ss:$8 sps:$4 sm:$0xff]   ;;  %v1456_v26 = vld [vmem:[%s2048_s1 + $0x220] ss:$8 sps:$4 sm:$0xff]  }
  0x1f   :  { %962 = vmatpush1.bf16.msra.mxu0 %v1368_v30  ;;  %v1461_v25 = vld [vmem:[%s2048_s1 + $0x324] ss:$8 sps:$4 sm:$0xff]   ;;  %v1464_v27 = vld [vmem:[%s2048_s1 + $0x214] ss:$8 sps:$4 sm:$0xff]   ;;  %v1459_v28 = vld [vmem:[%s2048_s1 + $0x320] ss:$8 sps:$4 sm:$0xff]  }
  0x20   :  { %963 = vmatprep.subr.bf16.mxu0 %v1372_v31  ;;  %1005 = vmatpush1.bf16.msra.mxu1 %v1371_v32  ;;  %v1467_v29 = vld [vmem:[%s2048_s1 + $0x314] ss:$8 sps:$4 sm:$0xff]   ;;  %v1462_v30 = vld [vmem:[%s2048_s1 + $0x210] ss:$8 sps:$4 sm:$0xff]   ;;  %v1470_v32 = vld [vmem:[%s2048_s1 + $0x204] ss:$8 sps:$4 sm:$0xff]  }
  0x21   :  { %1006 = vmatprep.subr.bf16.mxu1 %v1375_v33  ;;  %v1465_v31 = vld [vmem:[%s2048_s1 + $0x310] ss:$8 sps:$4 sm:$0xff]   ;;  %v1491_v47 = vld [vmem:[%s2048_s1 + $0x3d4] ss:$8 sps:$4 sm:$0xff]   ;;  %v1497_v51 = vld [vmem:[%s2048_s1 + $0x3c4] ss:$8 sps:$4 sm:$0xff]  }
  0x22   :  { %v1524_v33 = vld [vmem:[%s2049_s0 + $0x14] ss:$36 sps:$4 sm:$0xff]  }
  0x23   :  { %964 = vmatpush2.bf16.msra.mxu0 %v1374_v34  ;;  %v1473_v34 = vld [vmem:[%s2048_s1 + $0x304] ss:$8 sps:$4 sm:$0xff]  }
  0x24   :  { %965 = vmatprep.subr.bf16.mxu0 %v1378_v35  ;;  %1007 = vmatpush2.bf16.msra.mxu1 %v1377_v36  ;;  %v1468_v35 = vld [vmem:[%s2048_s1 + $0x200] ss:$8 sps:$4 sm:$0xff]  }
  0x25   :  { %1008 = vmatprep.subr.bf16.mxu1 %v1381_v37  ;;  %v1530_v36 = vld [vmem:[%s2049_s0 + $0x1c] ss:$36 sps:$4 sm:$0xff]  }
  0x26   :  { %v1476_v37 = vld [vmem:[%s2048_s1 + $0x2f4] ss:$8 sps:$4 sm:$0xff]  }
  0x27   :  { %966 = vmatpush2.bf16.msra.mxu0 %v1380_v38  ;;  %v1471_v38 = vld [vmem:[%s2048_s1 + $0x300] ss:$8 sps:$4 sm:$0xff]  }
  0x28   :  { %967 = vmatprep.subr.bf16.mxu0 %v1384_v39  ;;  %1009 = vmatpush2.bf16.msra.mxu1 %v1383_v40  ;;  %v1479_v39 = vld [vmem:[%s2048_s1 + $0x3f4] ss:$8 sps:$4 sm:$0xff]   ;;  %v1474_v40 = vld [vmem:[%s2048_s1 + $0x2f0] ss:$8 sps:$4 sm:$0xff]  }
  0x29   :  { %1010 = vmatprep.subr.bf16.mxu1 %v1387_v41  ;;  %v1482_v41 = vld [vmem:[%s2048_s1 + $0x2e4] ss:$8 sps:$4 sm:$0xff]  }
  0x2b   :  { %968 = vmatpush2.bf16.msra.mxu0 %v1386_v42  ;;  %v1477_v42 = vld [vmem:[%s2048_s1 + $0x3f0] ss:$8 sps:$4 sm:$0xff]  }
  0x2c   :  { %969 = vmatprep.subr.bf16.mxu0 %v1390_v43  ;;  %1011 = vmatpush2.bf16.msra.mxu1 %v1389_v44  ;;  %v1485_v43 = vld [vmem:[%s2048_s1 + $0x3e4] ss:$8 sps:$4 sm:$0xff]   ;;  %v1480_v44 = vld [vmem:[%s2048_s1 + $0x2e0] ss:$8 sps:$4 sm:$0xff]  }
  0x2d   :  { %1012 = vmatprep.subr.bf16.mxu1 %v1393_v45  ;;  %v1488_v45 = vld [vmem:[%s2048_s1 + $0x2d4] ss:$8 sps:$4 sm:$0xff]  }
  0x2f   :  { %970 = vmatpush2.bf16.msra.mxu0 %v1392_v46  ;;  %v1483_v46 = vld [vmem:[%s2048_s1 + $0x3e0] ss:$8 sps:$4 sm:$0xff]  }
  0x30   :  { %971 = vmatprep.subr.bf16.mxu0 %v1396_v48  ;;  %1013 = vmatpush2.bf16.msra.mxu1 %v1395_v49  ;;  %v1486_v48 = vld [vmem:[%s2048_s1 + $0x2d0] ss:$8 sps:$4 sm:$0xff]   ;;  %v1494_v49 = vld [vmem:[%s2048_s1 + $0x2c4] ss:$8 sps:$4 sm:$0xff]  }
  0x31   :  { %1014 = vmatprep.subr.bf16.mxu1 %v1399_v50  ;;  %v1489_v50 = vld [vmem:[%s2048_s1 + $0x3d0] ss:$8 sps:$4 sm:$0xff]  }
  0x33   :  { %972 = vmatpush2.bf16.msra.mxu0 %v1398_v52  ;;  %v1492_v52 = vld [vmem:[%s2048_s1 + $0x2c0] ss:$8 sps:$4 sm:$0xff]  }
  0x34   :  { %973 = vmatprep.subr.bf16.mxu0 %v1402_v53  ;;  %1015 = vmatpush2.bf16.msra.mxu1 %v1401_v54  ;;  %v1500_v53 = vld [vmem:[%s2048_s1 + $0x2b4] ss:$8 sps:$4 sm:$0xff]   ;;  %v1495_v54 = vld [vmem:[%s2048_s1 + $0x3c0] ss:$8 sps:$4 sm:$0xff]  }
  0x35   :  { %1016 = vmatprep.subr.bf16.mxu1 %v1405_v55  ;;  %v1503_v55 = vld [vmem:[%s2048_s1 + $0x3b4] ss:$8 sps:$4 sm:$0xff]  }
  0x37   :  { %974 = vmatpush2.bf16.msra.mxu0 %v1404_v56  ;;  %v1498_v56 = vld [vmem:[%s2048_s1 + $0x2b0] ss:$8 sps:$4 sm:$0xff]  }
  0x38   :  { %975 = vmatprep.subr.bf16.mxu0 %v1408_v57  ;;  %1017 = vmatpush2.bf16.msra.mxu1 %v1407_v58  ;;  %v1506_v57 = vld [vmem:[%s2048_s1 + $0x2a4] ss:$8 sps:$4 sm:$0xff]   ;;  %v1501_v58 = vld [vmem:[%s2048_s1 + $0x3b0] ss:$8 sps:$4 sm:$0xff]  }
  0x39   :  { %1018 = vmatprep.subr.bf16.mxu1 %v1411_v59  ;;  %v1509_v59 = vld [vmem:[%s2048_s1 + $0x3a4] ss:$8 sps:$4 sm:$0xff]  }
  0x3b   :  { %976 = vmatpush2.bf16.msra.mxu0 %v1410_v60  ;;  %v1504_v60 = vld [vmem:[%s2048_s1 + $0x2a0] ss:$8 sps:$4 sm:$0xff]  }
  0x3c   :  { %977 = vmatprep.subr.bf16.mxu0 %v1414_v61  ;;  %1019 = vmatpush2.bf16.msra.mxu1 %v1413_v62  ;;  %v1512_v61 = vld [vmem:[%s2048_s1 + $0x294] ss:$8 sps:$4 sm:$0xff]   ;;  %v1507_v62 = vld [vmem:[%s2048_s1 + $0x3a0] ss:$8 sps:$4 sm:$0xff]  }
  0x3d   :  { %1020 = vmatprep.subr.bf16.mxu1 %v1417_v63  ;;  %v1515_v63 = vld [vmem:[%s2048_s1 + $0x394] ss:$8 sps:$4 sm:$0xff]  }
  0x3f   :  { %978 = vmatpush2.bf16.msra.mxu0 %v1416_v0  ;;  %v1510_v0 = vld [vmem:[%s2048_s1 + $0x290] ss:$8 sps:$4 sm:$0xff]  }
  0x40   :  { %1033 = vmatprep.subr.bf16.mxu0 %v1425_v1  ;;  %1021 = vmatpush2.bf16.msra.mxu1 %v1422_v2  ;;  %v1518_v1 = vld [vmem:[%s2048_s1 + $0x284] ss:$8 sps:$4 sm:$0xff]   ;;  %v1513_v2 = vld [vmem:[%s2048_s1 + $0x390] ss:$8 sps:$4 sm:$0xff]  }
  0x41   :  { %1076 = vmatprep.subr.bf16.mxu1 %v1431_v4  ;;  %v1516_v4 = vld [vmem:[%s2048_s1 + $0x280] ss:$8 sps:$4 sm:$0xff]  }
  0x42   :  { %980 = vmatmul.mubr.bf16.vlgmr.msra.gmra.mxu0 %v1419_v3  ;;  %v1521_v3 = vld [vmem:[%s2048_s1 + $0x384] ss:$8 sps:$4 sm:$0xff]  }
  0x43   :  { %1034 = vmatpush1.bf16.msra.mxu0 %v1423_v5  ;;  %1023 = vmatmul.mubr.bf16.vlgmr.msra.gmra.mxu1 %v1426_v6  ;;  %v1527_v5 = vld [vmem:[%s2048_s1 + $0x474] ss:$8 sps:$4 sm:$0xff]   ;;  %v1519_v6 = vld [vmem:[%s2048_s1 + $0x380] ss:$8 sps:$4 sm:$0xff]  }
  0x44   :  { %1035 = vmatprep.subr.bf16.mxu0 %v1434_v7  ;;  %1077 = vmatpush1.bf16.msra.mxu1 %v1429_v8  ;;  %v1522_v7 = vld [vmem:[%s2049_s0 + $0x10] ss:$36 sps:$4 sm:$0xff]  }
  0x45   :  { %1078 = vmatprep.subr.bf16.mxu1 %v1437_v9  ;;  %1065 = vmatprep.mubr.bf16.mxu0 %v1524_v33  ;;  %v1525_v8 = vld [vmem:[%s2048_s1 + $0x470] ss:$8 sps:$4 sm:$0xff]  }
  0x46   :  { %1108 = vmatprep.mubr.bf16.mxu1 %v1530_v36  ;;  %v1528_v9 = vld [vmem:[%s2049_s0 + $0x18] ss:$36 sps:$4 sm:$0xff]  }
  0x47   :  { %1036 = vmatpush1.bf16.msra.mxu0 %v1432_v10  ;;  %v1533_v10 = vld [vmem:[%s2048_s1 + $0x464] ss:$8 sps:$4 sm:$0xff]  }
  0x48   :  { %1037 = vmatprep.subr.bf16.mxu0 %v1440_v11  ;;  %1079 = vmatpush1.bf16.msra.mxu1 %v1435_v12  ;;  %v1531_v11 = vld [vmem:[%s2048_s1 + $0x460] ss:$8 sps:$4 sm:$0xff]   ;;  %v1553_v12 = vmov 0  }
  0x49   :  { %1080 = vmatprep.subr.bf16.mxu1 %v1443_v13  ;;  %v1536_v13 = vld [vmem:[%s2048_s1 + $0x454] ss:$8 sps:$4 sm:$0xff]  }
  0x4b   :  { %1038 = vmatpush1.bf16.msra.mxu0 %v1438_v14  ;;  %v1534_v14 = vld [vmem:[%s2048_s1 + $0x450] ss:$8 sps:$4 sm:$0xff]  }
  0x4c   :  { %1039 = vmatprep.subr.bf16.mxu0 %v1446_v15  ;;  %1081 = vmatpush1.bf16.msra.mxu1 %v1441_v16  ;;  %v1539_v15 = vld [vmem:[%s2048_s1 + $0x444] ss:$8 sps:$4 sm:$0xff]   ;;  %v1537_v16 = vld [vmem:[%s2048_s1 + $0x440] ss:$8 sps:$4 sm:$0xff]  }
  0x4d   :  { %1082 = vmatprep.subr.bf16.mxu1 %v1449_v17  ;;  %v1542_v17 = vld [vmem:[%s2048_s1 + $0x434] ss:$8 sps:$4 sm:$0xff]  }
  0x4f   :  { %1040 = vmatpush1.bf16.msra.mxu0 %v1444_v18  ;;  %v1540_v18 = vld [vmem:[%s2048_s1 + $0x430] ss:$8 sps:$4 sm:$0xff]  }
  0x50   :  { %1041 = vmatprep.subr.bf16.mxu0 %v1452_v19  ;;  %1083 = vmatpush1.bf16.msra.mxu1 %v1447_v20  ;;  %v1545_v19 = vld [vmem:[%s2048_s1 + $0x424] ss:$8 sps:$4 sm:$0xff]   ;;  %v1543_v20 = vld [vmem:[%s2048_s1 + $0x420] ss:$8 sps:$4 sm:$0xff]  }
  0x51   :  { %1084 = vmatprep.subr.bf16.mxu1 %v1455_v21  ;;  %v1548_v21 = vld [vmem:[%s2048_s1 + $0x414] ss:$8 sps:$4 sm:$0xff]  }
  0x53   :  { %1042 = vmatpush1.bf16.msra.mxu0 %v1450_v22  ;;  %v1546_v22 = vld [vmem:[%s2048_s1 + $0x410] ss:$8 sps:$4 sm:$0xff]  }
  0x54   :  { %1043 = vmatprep.subr.bf16.mxu0 %v1458_v23  ;;  %1085 = vmatpush1.bf16.msra.mxu1 %v1453_v24  ;;  %v1551_v23 = vld [vmem:[%s2048_s1 + $0x404] ss:$8 sps:$4 sm:$0xff]   ;;  %v1549_v24 = vld [vmem:[%s2048_s1 + $0x400] ss:$8 sps:$4 sm:$0xff]  }
  0x55   :  { %1086 = vmatprep.subr.bf16.mxu1 %v1461_v25  ;;  %v1552_v25 = vld [vmem:[%s2049_s0 + $0x20] ss:$36 sps:$4 sm:$0xff]  }
  0x57   :  { %1044 = vmatpush1.bf16.msra.mxu0 %v1456_v26 }
  0x58   :  { %1045 = vmatprep.subr.bf16.mxu0 %v1464_v27  ;;  %1087 = vmatpush1.bf16.msra.mxu1 %v1459_v28  ;;  %v171_v27 = vlaneseq }
  0x59   :  { %1088 = vmatprep.subr.bf16.mxu1 %v1467_v29 }
  0x5b   :  { %1046 = vmatpush1.bf16.msra.mxu0 %v1462_v30  ;;  %v172_v30 = vshrl.u32 %v171_v27, 7 }
  0x5c   :  { %1047 = vmatprep.subr.bf16.mxu0 %v1470_v32  ;;  %1089 = vmatpush1.bf16.msra.mxu1 %v1465_v31 }
  0x5d   :  { %1090 = vmatprep.subr.bf16.mxu1 %v1473_v34  ;;  %v173_v33 = vsub.s32 0, %v172_v30  ;;  %v169_v34 = vld [vmem:[%s2050_s2] sm:$0x3] }
  0x5f   :  { %1048 = vmatpush1.bf16.msra.mxu0 %v1468_v35  ;;  %v177_v35 = vsub.s32 1, %v172_v30 }
  0x60   :  { %1049 = vmatprep.subr.bf16.mxu0 %v1476_v37  ;;  %1091 = vmatpush1.bf16.msra.mxu1 %v1471_v38  ;;  %v174_v38 = vrot.slane %v169_v34, %v173_v33 }
  0x61   :  { %1092 = vmatprep.subr.bf16.mxu1 %v1479_v39 }
  0x63   :  { %1050 = vmatpush2.bf16.msra.mxu0 %v1474_v40  ;;  %v178_v40 = vrot.slane %v169_v34, %v177_v35 }
  0x64   :  { %1051 = vmatprep.subr.bf16.mxu0 %v1482_v41  ;;  %1093 = vmatpush2.bf16.msra.mxu1 %v1477_v42 }
  0x65   :  { %1094 = vmatprep.subr.bf16.mxu1 %v1485_v43 }
  0x67   :  { %1052 = vmatpush2.bf16.msra.mxu0 %v1480_v44 }
  0x68   :  { %1053 = vmatprep.subr.bf16.mxu0 %v1488_v45  ;;  %1095 = vmatpush2.bf16.msra.mxu1 %v1483_v46 }
  0x69   :  { %1096 = vmatprep.subr.bf16.mxu1 %v1491_v47 }
  0x6b   :  { %1054 = vmatpush2.bf16.msra.mxu0 %v1486_v48 }
  0x6c   :  { %1055 = vmatprep.subr.bf16.mxu0 %v1494_v49  ;;  %1097 = vmatpush2.bf16.msra.mxu1 %v1489_v50 }
  0x6d   :  { %1098 = vmatprep.subr.bf16.mxu1 %v1497_v51 }
  0x6f   :  { %1056 = vmatpush2.bf16.msra.mxu0 %v1492_v52 }
  0x70   :  { %1057 = vmatprep.subr.bf16.mxu0 %v1500_v53  ;;  %1099 = vmatpush2.bf16.msra.mxu1 %v1495_v54 }
  0x71   :  { %1100 = vmatprep.subr.bf16.mxu1 %v1503_v55 }
  0x73   :  { %1058 = vmatpush2.bf16.msra.mxu0 %v1498_v56 }
  0x74   :  { %1059 = vmatprep.subr.bf16.mxu0 %v1506_v57  ;;  %1101 = vmatpush2.bf16.msra.mxu1 %v1501_v58 }
  0x75   :  { %1102 = vmatprep.subr.bf16.mxu1 %v1509_v59 }
  0x77   :  { %1060 = vmatpush2.bf16.msra.mxu0 %v1504_v60 }
  0x78   :  { %1061 = vmatprep.subr.bf16.mxu0 %v1512_v61  ;;  %1103 = vmatpush2.bf16.msra.mxu1 %v1507_v62 }
  0x79   :  { %1104 = vmatprep.subr.bf16.mxu1 %v1515_v63 }
  0x7b   :  { %1062 = vmatpush2.bf16.msra.mxu0 %v1510_v0 }
  0x7c   :  { %1063 = vmatprep.subr.bf16.mxu0 %v1518_v1  ;;  %1105 = vmatpush2.bf16.msra.mxu1 %v1513_v2 }
  0x7d   :  { %1106 = vmatprep.subr.bf16.mxu1 %v1521_v3 }
  0x7f   :  { %1064 = vmatpush2.bf16.msra.mxu0 %v1516_v4 }
  0x80   :  { %1119 = vmatprep.subr.bf16.mxu0 %v1527_v5  ;;  %1107 = vmatpush2.bf16.msra.mxu1 %v1519_v6 }
  0x82   :  { %1066 = vmatmul.mubr.bf16.vlgmr.msra.gmra.mxu0 %v1522_v7 }
  0x83   :  { %1120 = vmatpush1.bf16.msra.mxu0 %v1525_v8  ;;  %1151 = vmatprep.mubr.bf16.mxu0 %v1553_v12 }
  0x84   :  { %1109 = vmatmul.mubr.bf16.vlgmr.msra.gmra.mxu1 %v1528_v9  ;;  %1121 = vmatprep.subr.bf16.mxu0 %v1533_v10 }
  0x87   :  { %1122 = vmatpush1.bf16.msra.mxu0 %v1531_v11 }
  0x88   :  { %1123 = vmatprep.subr.bf16.mxu0 %v1536_v13 }
  0x8b   :  { %1124 = vmatpush1.bf16.msra.mxu0 %v1534_v14 }
  0x8c   :  { %1125 = vmatprep.subr.bf16.mxu0 %v1539_v15 }
  0x8f   :  { %1126 = vmatpush1.bf16.msra.mxu0 %v1537_v16 }
  0x90   :  { %1127 = vmatprep.subr.bf16.mxu0 %v1542_v17 }
  0x93   :  { %1128 = vmatpush1.bf16.msra.mxu0 %v1540_v18 }
  0x94   :  { %1129 = vmatprep.subr.bf16.mxu0 %v1545_v19 }
  0x97   :  { %1130 = vmatpush1.bf16.msra.mxu0 %v1543_v20 }
  0x98   :  { %1131 = vmatprep.subr.bf16.mxu0 %v1548_v21 }
  0x9b   :  { %1132 = vmatpush1.bf16.msra.mxu0 %v1546_v22 }
  0x9c   :  { %1133 = vmatprep.subr.bf16.mxu0 %v1551_v23 }
  0x9f   :  { %1134 = vmatpush1.bf16.msra.mxu0 %v1549_v24 }
  0xa2   :  { %1152 = vmatmul.mubr.bf16.vlgmr.msra.gmra.mxu0 %v1552_v25 }
 0x102   :  { %v981_v26 = vpop.f32.mrf.mxu0 }
 0x103   :  { %v1024_v29 = vpop.f32.mrf.mxu1  ;;  %v982_v42 = vadd.f32 %v981_v26, %v174_v38 }
 0x104   :  { %v983_v28 = vpop.f32.mrf.mxu0 }
 0x105   :  { %v1026_v32 = vpop.f32.mrf.mxu1  ;;  %v984_v45 = vadd.f32 %v983_v28, %v178_v40  ;;  %v1025_v46 = vadd.f32 %v1024_v29, %v982_v42 }
 0x106   :  { %v985_v31 = vpop.f32.mrf.mxu0 }
 0x107   :  { %v1028_v37 = vpop.f32.mrf.mxu1  ;;  %v986_v47 = vadd.f32 %v985_v31, %v174_v38  ;;  %v1027_v50 = vadd.f32 %v1026_v32, %v984_v45 }
 0x108   :  { %v987_v36 = vpop.f32.mrf.mxu0 }
 0x109   :  { %v1030_v41 = vpop.f32.mrf.mxu1  ;;  %v988_v51 = vadd.f32 %v987_v36, %v178_v40  ;;  %v1029_v53 = vadd.f32 %v1028_v37, %v986_v47 }
 0x10b   :  { %v1031_v57 = vadd.f32 %v1030_v41, %v988_v51 }
 0x142   :  { %v1067_v39 = vpop.f32.mrf.mxu0 }
 0x143   :  { %v1068_v52 = vadd.f32 %v1067_v39, %v1025_v46 }
 0x144   :  { %v1069_v43 = vpop.f32.mrf.mxu0  ;;  %v1110_v44 = vpop.f32.mrf.mxu1 }
 0x145   :  { %v1070_v54 = vadd.f32 %v1069_v43, %v1027_v50  ;;  %v1111_v58 = vadd.f32 %v1110_v44, %v1068_v52 }
 0x146   :  { %v1071_v48 = vpop.f32.mrf.mxu0  ;;  %v1112_v49 = vpop.f32.mrf.mxu1 }
 0x147   :  { %v1072_v59 = vadd.f32 %v1071_v48, %v1029_v53  ;;  %v1113_v61 = vadd.f32 %v1112_v49, %v1070_v54 }
 0x148   :  { %v1073_v55 = vpop.f32.mrf.mxu0  ;;  %v1114_v56 = vpop.f32.mrf.mxu1 }
 0x149   :  { %v1074_v62 = vadd.f32 %v1073_v55, %v1031_v57  ;;  %v1115_v2 = vadd.f32 %v1114_v56, %v1072_v59 }
 0x14a   :  { %v1116_v0 = vpop.f32.mrf.mxu1 }
 0x14b   :  { %v1117_v5 = vadd.f32 %v1116_v0, %v1074_v62 }
 0x162   :  { %v1153_v60 = vpop.f32.mrf.mxu0 }
 0x163   :  { %v1154_v63 = vadd.f32 %v1153_v60, %v1111_v58 }
 0x164   :  { %v1155_v1 = vpop.f32.mrf.mxu0 }
 0x165   :  { %1162 = vst [vmem:[%s2051_s3] sm:$0xff] %v1154_v63  ;;  %v1156_v3 = vadd.f32 %v1155_v1, %v1113_v61 }
 0x166   :  { %v1157_v4 = vpop.f32.mrf.mxu0 }
 0x167   :  { %1163 = vst [vmem:[%s2051_s3 + $0x8] sm:$0xff] %v1156_v3  ;;  %v1158_v6 = vadd.f32 %v1157_v4, %v1115_v2 }
 0x168   :  { %v1159_v7 = vpop.f32.mrf.mxu0 }
 0x169   :  { %1164 = vst [vmem:[%s2051_s3 + $0x10] sm:$0xff] %v1158_v6  ;;  %v1160_v8 = vadd.f32 %v1159_v7, %v1117_v5 }
 0x16b   :  { %1165 = vst [vmem:[%s2051_s3 + $0x18] sm:$0xff] %v1160_v8 }

// kernel: forward.16
= control target key start
LH: loop header
LB: loop body
LE: loop exit
PB: predicated region body
PF: predicated region fallthrough
CT: control target
= control target key end

     0   :  { %s2116_s1 = inlined_call_operand.vmem [shape: bf16[1792,128], index: 1, kind: input, shape index: {}]   ;;  %s2117_s0 = inlined_call_operand.vmem [shape: bf16[16,1792], index: 0, kind: input, shape index: {}]   ;;  %s2118_s2 = inlined_call_operand.vmem [shape: f32[1,128], index: 2, kind: input, shape index: {}]   ;;  %s2119_s3 = inlined_call_operand.vmem [shape: f32[16,128], index: 3, kind: output, shape index: {}]  }
   0x1   :  { %v1576_v0 = vld [vmem:[%s2116_s1 + $0x78] sm:$0xff]   ;;  %v1580_v4 = vld [vmem:[%s2116_s1 + $0x70] sm:$0xff]   ;;  %v1584_v8 = vld [vmem:[%s2116_s1 + $0x68] sm:$0xff]  }
   0x2   :  { %v1577_v1 = vld [vmem:[%s2116_s1 + $0x38] sm:$0xff]   ;;  %1422 = vmatprep.subr.bf16.mxu0 %v1576_v0  ;;  %v1581_v5 = vld [vmem:[%s2116_s1 + $0x30] sm:$0xff]   ;;  %v1585_v9 = vld [vmem:[%s2116_s1 + $0x28] sm:$0xff]  }
   0x3   :  { %v1578_v2 = vld [vmem:[%s2116_s1 + $0xf8] sm:$0xff]   ;;  %1423 = vmatpush3.bf16.msra.mxu0 %v1577_v1  ;;  %v1582_v6 = vld [vmem:[%s2116_s1 + $0xf0] sm:$0xff]   ;;  %v1586_v10 = vld [vmem:[%s2116_s1 + $0xe8] sm:$0xff]  }
   0x4   :  { %v1579_v3 = vld [vmem:[%s2116_s1 + $0xb8] sm:$0xff]   ;;  %1444 = vmatprep.subr.bf16.mxu1 %v1578_v2  ;;  %1424 = vmatprep.subr.bf16.mxu0 %v1580_v4  ;;  %v1583_v7 = vld [vmem:[%s2116_s1 + $0xb0] sm:$0xff]   ;;  %v1587_v11 = vld [vmem:[%s2116_s1 + $0xa8] sm:$0xff]  }
   0x5   :  { %1445 = vmatpush3.bf16.msra.mxu1 %v1579_v3  ;;  %v1588_v12 = vld [vmem:[%s2116_s1 + $0x60] sm:$0xff]   ;;  %v1592_v16 = vld [vmem:[%s2116_s1 + $0x58] sm:$0xff]   ;;  %v1596_v20 = vld [vmem:[%s2116_s1 + $0x50] sm:$0xff]  }
   0x6   :  { %1446 = vmatprep.subr.bf16.mxu1 %v1582_v6  ;;  %v1589_v13 = vld [vmem:[%s2116_s1 + $0x20] sm:$0xff]   ;;  %v1593_v17 = vld [vmem:[%s2116_s1 + $0x18] sm:$0xff]   ;;  %v1597_v21 = vld [vmem:[%s2116_s1 + $0x10] sm:$0xff]  }
   0x7   :  { %1425 = vmatpush3.bf16.msra.mxu0 %v1581_v5  ;;  %v1590_v14 = vld [vmem:[%s2116_s1 + $0xe0] sm:$0xff]   ;;  %v1594_v18 = vld [vmem:[%s2116_s1 + $0xd8] sm:$0xff]   ;;  %v1598_v22 = vld [vmem:[%s2116_s1 + $0xd0] sm:$0xff]  }
   0x8   :  { %1426 = vmatprep.subr.bf16.mxu0 %v1584_v8  ;;  %v1591_v15 = vld [vmem:[%s2116_s1 + $0xa0] sm:$0xff]   ;;  %v1595_v19 = vld [vmem:[%s2116_s1 + $0x98] sm:$0xff]   ;;  %v1599_v23 = vld [vmem:[%s2116_s1 + $0x90] sm:$0xff]  }
   0x9   :  { %1447 = vmatpush3.bf16.msra.mxu1 %v1583_v7  ;;  %v1600_v24 = vld [vmem:[%s2116_s1 + $0x48] sm:$0xff]   ;;  %v1604_v28 = vld [vmem:[%s2116_s1 + $0x40] sm:$0xff]   ;;  %v1611_v34 = vld [vmem:[%s2116_s1 + $0x178] sm:$0xff]  }
   0xa   :  { %1448 = vmatprep.subr.bf16.mxu1 %v1586_v10  ;;  %v1601_v25 = vld [vmem:[%s2116_s1 + $0x8] sm:$0xff]   ;;  %v1605_v29 = vld [vmem:[%s2116_s1] sm:$0xff]   ;;  %v1615_v37 = vld [vmem:[%s2116_s1 + $0x138] sm:$0xff]  }
   0xb   :  { %1427 = vmatpush3.bf16.msra.mxu0 %v1585_v9  ;;  %v1602_v26 = vld [vmem:[%s2116_s1 + $0xc8] sm:$0xff]   ;;  %v1606_v30 = vld [vmem:[%s2116_s1 + $0xc0] sm:$0xff]   ;;  %v1616_v38 = vld [vmem:[%s2116_s1 + $0x1f8] sm:$0xff]  }
   0xc   :  { %1428 = vmatprep.subr.bf16.mxu0 %v1588_v12  ;;  %v1603_v27 = vld [vmem:[%s2116_s1 + $0x88] sm:$0xff]   ;;  %v1607_v31 = vld [vmem:[%s2117_s0] ss:$56 sps:$4 sm:$0xff]   ;;  %v1609_v32 = vld [vmem:[%s2117_s0 + $0x4] ss:$56 sps:$4 sm:$0xff]  }
   0xd   :  { %1449 = vmatpush3.bf16.msra.mxu1 %v1587_v11  ;;  %v1610_v33 = vld [vmem:[%s2116_s1 + $0x80] sm:$0xff]   ;;  %1034 = vmatprep.mubr.bf16.mxu0 %v1609_v32  ;;  %v1617_v39 = vld [vmem:[%s2116_s1 + $0x1b8] sm:$0xff]   ;;  %v1618_v40 = vld [vmem:[%s2116_s1 + $0x170] sm:$0xff]  }
   0xe   :  { %1450 = vmatprep.subr.bf16.mxu1 %v1590_v14  ;;  %v1612_v35 = vld [vmem:[%s2117_s0 + $0x8] ss:$56 sps:$4 sm:$0xff]   ;;  %v1614_v36 = vld [vmem:[%s2117_s0 + $0xc] ss:$56 sps:$4 sm:$0xff]   ;;  %v1619_v41 = vld [vmem:[%s2116_s1 + $0x130] sm:$0xff]  }
   0xf   :  { %1429 = vmatpush3.bf16.msra.mxu0 %v1589_v13  ;;  %1075 = vmatprep.mubr.bf16.mxu1 %v1614_v36  ;;  %v1620_v42 = vld [vmem:[%s2116_s1 + $0x1f0] sm:$0xff]   ;;  %v1622_v44 = vld [vmem:[%s2116_s1 + $0x168] sm:$0xff]   ;;  %v1626_v48 = vld [vmem:[%s2116_s1 + $0x160] sm:$0xff]  }
  0x10   :  { %1430 = vmatprep.subr.bf16.mxu0 %v1592_v16  ;;  %v1621_v43 = vld [vmem:[%s2116_s1 + $0x1b0] sm:$0xff]   ;;  %v1623_v45 = vld [vmem:[%s2116_s1 + $0x128] sm:$0xff]   ;;  %v1627_v49 = vld [vmem:[%s2116_s1 + $0x120] sm:$0xff]  }
  0x11   :  { %1451 = vmatpush3.bf16.msra.mxu1 %v1591_v15  ;;  %v1624_v46 = vld [vmem:[%s2116_s1 + $0x1e8] sm:$0xff]   ;;  %v1628_v50 = vld [vmem:[%s2116_s1 + $0x1e0] sm:$0xff]   ;;  %v1630_v52 = vld [vmem:[%s2116_s1 + $0x158] sm:$0xff]  }
  0x12   :  { %1452 = vmatprep.subr.bf16.mxu1 %v1594_v18  ;;  %v1625_v47 = vld [vmem:[%s2116_s1 + $0x1a8] sm:$0xff]   ;;  %v1629_v51 = vld [vmem:[%s2116_s1 + $0x1a0] sm:$0xff]   ;;  %v1631_v53 = vld [vmem:[%s2116_s1 + $0x118] sm:$0xff]  }
  0x13   :  { %1431 = vmatpush3.bf16.msra.mxu0 %v1593_v17  ;;  %v1632_v54 = vld [vmem:[%s2116_s1 + $0x1d8] sm:$0xff]   ;;  %v1634_v56 = vld [vmem:[%s2116_s1 + $0x150] sm:$0xff]   ;;  %v1638_v60 = vld [vmem:[%s2116_s1 + $0x148] sm:$0xff]  }
  0x14   :  { %1432 = vmatprep.subr.bf16.mxu0 %v1596_v20  ;;  %v1633_v55 = vld [vmem:[%s2116_s1 + $0x198] sm:$0xff]   ;;  %v1635_v57 = vld [vmem:[%s2116_s1 + $0x110] sm:$0xff]   ;;  %v1639_v61 = vld [vmem:[%s2116_s1 + $0x108] sm:$0xff]  }
  0x15   :  { %1453 = vmatpush3.bf16.msra.mxu1 %v1595_v19  ;;  %v1636_v58 = vld [vmem:[%s2116_s1 + $0x1d0] sm:$0xff]   ;;  %v1640_v62 = vld [vmem:[%s2116_s1 + $0x1c8] sm:$0xff]   ;;  %v1642_v0 = vld [vmem:[%s2116_s1 + $0x140] sm:$0xff]  }
  0x16   :  { %1454 = vmatprep.subr.bf16.mxu1 %v1598_v22  ;;  %v1637_v59 = vld [vmem:[%s2116_s1 + $0x190] sm:$0xff]   ;;  %v1641_v63 = vld [vmem:[%s2116_s1 + $0x188] sm:$0xff]   ;;  %v1643_v1 = vld [vmem:[%s2116_s1 + $0x100] sm:$0xff]  }
  0x17   :  { %1433 = vmatpush3.bf16.msra.mxu0 %v1597_v21  ;;  %v1644_v2 = vld [vmem:[%s2116_s1 + $0x1c0] sm:$0xff]   ;;  %v1645_v3 = vld [vmem:[%s2117_s0 + $0x10] ss:$56 sps:$4 sm:$0xff]   ;;  %v1647_v4 = vld [vmem:[%s2117_s0 + $0x14] ss:$56 sps:$4 sm:$0xff]  }
  0x18   :  { %1434 = vmatprep.subr.bf16.mxu0 %v1600_v24  ;;  %v1648_v5 = vld [vmem:[%s2116_s1 + $0x180] sm:$0xff]   ;;  %v1649_v6 = vld [vmem:[%s2116_s1 + $0x278] sm:$0xff]   ;;  %v1656_v12 = vld [vmem:[%s2116_s1 + $0x270] sm:$0xff]  }
  0x19   :  { %1455 = vmatpush3.bf16.msra.mxu1 %v1599_v23  ;;  %v1650_v7 = vld [vmem:[%s2117_s0 + $0x18] ss:$56 sps:$4 sm:$0xff]   ;;  %v1652_v8 = vld [vmem:[%s2117_s0 + $0x1c] ss:$56 sps:$4 sm:$0xff]   ;;  %v1660_v16 = vld [vmem:[%s2116_s1 + $0x268] sm:$0xff]  }
  0x1a   :  { %1456 = vmatprep.subr.bf16.mxu1 %v1602_v26  ;;  %v1653_v9 = vld [vmem:[%s2116_s1 + $0x238] sm:$0xff]   ;;  %v1657_v13 = vld [vmem:[%s2116_s1 + $0x230] sm:$0xff]   ;;  %v1661_v17 = vld [vmem:[%s2116_s1 + $0x228] sm:$0xff]  }
  0x1b   :  { %1435 = vmatpush3.bf16.msra.mxu0 %v1601_v25  ;;  %v1654_v10 = vld [vmem:[%s2116_s1 + $0x2f8] sm:$0xff]   ;;  %v1658_v14 = vld [vmem:[%s2116_s1 + $0x2f0] sm:$0xff]   ;;  %v1662_v18 = vld [vmem:[%s2116_s1 + $0x2e8] sm:$0xff]  }
  0x1c   :  { %1436 = vmatprep.subr.bf16.mxu0 %v1604_v28  ;;  %v1655_v11 = vld [vmem:[%s2116_s1 + $0x2b8] sm:$0xff]   ;;  %v1659_v15 = vld [vmem:[%s2116_s1 + $0x2b0] sm:$0xff]   ;;  %v1663_v19 = vld [vmem:[%s2116_s1 + $0x2a8] sm:$0xff]  }
  0x1d   :  { %1457 = vmatpush3.bf16.msra.mxu1 %v1603_v27  ;;  %v1664_v20 = vld [vmem:[%s2116_s1 + $0x260] sm:$0xff]   ;;  %v1668_v24 = vld [vmem:[%s2116_s1 + $0x258] sm:$0xff]   ;;  %v1672_v28 = vld [vmem:[%s2116_s1 + $0x250] sm:$0xff]  }
  0x1e   :  { %1458 = vmatprep.subr.bf16.mxu1 %v1606_v30  ;;  %v1665_v21 = vld [vmem:[%s2116_s1 + $0x220] sm:$0xff]   ;;  %v1669_v25 = vld [vmem:[%s2116_s1 + $0x218] sm:$0xff]   ;;  %v1674_v30 = vld [vmem:[%s2116_s1 + $0x2d0] sm:$0xff]  }
  0x1f   :  { %1437 = vmatpush3.bf16.msra.mxu0 %v1605_v29  ;;  %v1666_v22 = vld [vmem:[%s2116_s1 + $0x2e0] sm:$0xff]   ;;  %v1670_v26 = vld [vmem:[%s2116_s1 + $0x2d8] sm:$0xff]   ;;  %v1673_v29 = vld [vmem:[%s2116_s1 + $0x210] sm:$0xff]  }
  0x20   :  { %1466 = vmatprep.subr.bf16.mxu0 %v1611_v34  ;;  %v1667_v23 = vld [vmem:[%s2116_s1 + $0x2a0] sm:$0xff]   ;;  %v1671_v27 = vld [vmem:[%s2116_s1 + $0x298] sm:$0xff]   ;;  %v1676_v32 = vld [vmem:[%s2116_s1 + $0x248] sm:$0xff]  }
  0x21   :  { %1459 = vmatpush3.bf16.msra.mxu1 %v1610_v33  ;;  %v1677_v33 = vld [vmem:[%s2116_s1 + $0x208] sm:$0xff]   ;;  %v1680_v36 = vld [vmem:[%s2116_s1 + $0x240] sm:$0xff]  }
  0x22   :  { %1035 = vmatmul.mubr.bf16.vlgmr.msra.gmra.mxu0 %v1607_v31  ;;  %1488 = vmatprep.subr.bf16.mxu1 %v1616_v38  ;;  %v1675_v31 = vld [vmem:[%s2116_s1 + $0x290] sm:$0xff]   ;;  %v1678_v34 = vld [vmem:[%s2116_s1 + $0x2c8] sm:$0xff]   ;;  %v1682_v38 = vld [vmem:[%s2116_s1 + $0x2c0] sm:$0xff]  }
  0x23   :  { %1467 = vmatpush3.bf16.msra.mxu0 %v1615_v37  ;;  %1116 = vmatprep.mubr.bf16.mxu0 %v1647_v4  ;;  %v1681_v37 = vld [vmem:[%s2116_s1 + $0x200] sm:$0xff]  }
  0x24   :  { %1076 = vmatmul.mubr.bf16.vlgmr.msra.gmra.mxu1 %v1612_v35  ;;  %1468 = vmatprep.subr.bf16.mxu0 %v1618_v40  ;;  %v1679_v35 = vld [vmem:[%s2116_s1 + $0x288] sm:$0xff]   ;;  %v1685_v40 = vld [vmem:[%s2117_s0 + $0x24] ss:$56 sps:$4 sm:$0xff]  }
  0x25   :  { %1489 = vmatpush3.bf16.msra.mxu1 %v1617_v39  ;;  %1157 = vmatprep.mubr.bf16.mxu1 %v1652_v8  ;;  %v1683_v39 = vld [vmem:[%s2117_s0 + $0x20] ss:$56 sps:$4 sm:$0xff]  }
  0x26   :  { %1490 = vmatprep.subr.bf16.mxu1 %v1620_v42  ;;  %v1687_v42 = vld [vmem:[%s2116_s1 + $0x378] sm:$0xff]  }
  0x27   :  { %1469 = vmatpush3.bf16.msra.mxu0 %v1619_v41  ;;  %v1686_v41 = vld [vmem:[%s2116_s1 + $0x280] sm:$0xff]  }
  0x28   :  { %1470 = vmatprep.subr.bf16.mxu0 %v1622_v44  ;;  %v1690_v44 = vld [vmem:[%s2117_s0 + $0x2c] ss:$56 sps:$4 sm:$0xff]  }
  0x29   :  { %1491 = vmatpush3.bf16.msra.mxu1 %v1621_v43  ;;  %v1688_v43 = vld [vmem:[%s2117_s0 + $0x28] ss:$56 sps:$4 sm:$0xff]  }
  0x2a   :  { %1492 = vmatprep.subr.bf16.mxu1 %v1624_v46  ;;  %v1692_v46 = vld [vmem:[%s2116_s1 + $0x370] sm:$0xff]  }
  0x2b   :  { %1471 = vmatpush3.bf16.msra.mxu0 %v1623_v45  ;;  %v1691_v45 = vld [vmem:[%s2116_s1 + $0x338] sm:$0xff]  }
  0x2c   :  { %1472 = vmatprep.subr.bf16.mxu0 %v1626_v48  ;;  %v1694_v48 = vld [vmem:[%s2116_s1 + $0x368] sm:$0xff]  }
  0x2d   :  { %1493 = vmatpush3.bf16.msra.mxu1 %v1625_v47  ;;  %v1693_v47 = vld [vmem:[%s2116_s1 + $0x330] sm:$0xff]  }
  0x2e   :  { %1494 = vmatprep.subr.bf16.mxu1 %v1628_v50  ;;  %v1696_v50 = vld [vmem:[%s2116_s1 + $0x360] sm:$0xff]  }
  0x2f   :  { %1473 = vmatpush3.bf16.msra.mxu0 %v1627_v49  ;;  %v1695_v49 = vld [vmem:[%s2116_s1 + $0x328] sm:$0xff]  }
  0x30   :  { %1474 = vmatprep.subr.bf16.mxu0 %v1630_v52  ;;  %v1698_v52 = vld [vmem:[%s2116_s1 + $0x358] sm:$0xff]  }
  0x31   :  { %1495 = vmatpush3.bf16.msra.mxu1 %v1629_v51  ;;  %v1697_v51 = vld [vmem:[%s2116_s1 + $0x320] sm:$0xff]  }
  0x32   :  { %1496 = vmatprep.subr.bf16.mxu1 %v1632_v54  ;;  %v1700_v54 = vld [vmem:[%s2116_s1 + $0x350] sm:$0xff]  }
  0x33   :  { %1475 = vmatpush3.bf16.msra.mxu0 %v1631_v53  ;;  %v1699_v53 = vld [vmem:[%s2116_s1 + $0x318] sm:$0xff]  }
  0x34   :  { %1476 = vmatprep.subr.bf16.mxu0 %v1634_v56  ;;  %v1701_v56 = vld [vmem:[%s2116_s1 + $0x310] sm:$0xff]  }
  0x35   :  { %1497 = vmatpush3.bf16.msra.mxu1 %v1633_v55  ;;  %v1708_v55 = vld [vmem:[%s2117_s0 + $0x34] ss:$56 sps:$4 sm:$0xff]  }
  0x36   :  { %1498 = vmatprep.subr.bf16.mxu1 %v1636_v58  ;;  %v1703_v58 = vld [vmem:[%s2116_s1 + $0x308] sm:$0xff]  }
  0x37   :  { %1477 = vmatpush3.bf16.msra.mxu0 %v1635_v57  ;;  %v1702_v57 = vld [vmem:[%s2116_s1 + $0x348] sm:$0xff]  }
  0x38   :  { %1478 = vmatprep.subr.bf16.mxu0 %v1638_v60  ;;  %v1705_v60 = vld [vmem:[%s2116_s1 + $0x300] sm:$0xff]  }
  0x39   :  { %1499 = vmatpush3.bf16.msra.mxu1 %v1637_v59  ;;  %v1704_v59 = vld [vmem:[%s2116_s1 + $0x340] sm:$0xff]  }
  0x3a   :  { %1500 = vmatprep.subr.bf16.mxu1 %v1640_v62 }
  0x3b   :  { %1479 = vmatpush3.bf16.msra.mxu0 %v1639_v61  ;;  %v1706_v61 = vld [vmem:[%s2117_s0 + $0x30] ss:$56 sps:$4 sm:$0xff]  }
  0x3c   :  { %1480 = vmatprep.subr.bf16.mxu0 %v1642_v0 }
  0x3d   :  { %1501 = vmatpush3.bf16.msra.mxu1 %v1641_v63 }
  0x3e   :  { %1502 = vmatprep.subr.bf16.mxu1 %v1644_v2 }
  0x3f   :  { %1481 = vmatpush3.bf16.msra.mxu0 %v1643_v1 }
  0x40   :  { %1510 = vmatprep.subr.bf16.mxu0 %v1649_v6 }
  0x41   :  { %1503 = vmatpush3.bf16.msra.mxu1 %v1648_v5 }
  0x42   :  { %1117 = vmatmul.mubr.bf16.vlgmr.msra.gmra.mxu0 %v1645_v3  ;;  %1532 = vmatprep.subr.bf16.mxu1 %v1654_v10 }
  0x43   :  { %1511 = vmatpush3.bf16.msra.mxu0 %v1653_v9  ;;  %1198 = vmatprep.mubr.bf16.mxu0 %v1685_v40 }
  0x44   :  { %1158 = vmatmul.mubr.bf16.vlgmr.msra.gmra.mxu1 %v1650_v7  ;;  %1512 = vmatprep.subr.bf16.mxu0 %v1656_v12 }
  0x45   :  { %1533 = vmatpush3.bf16.msra.mxu1 %v1655_v11  ;;  %1239 = vmatprep.mubr.bf16.mxu1 %v1690_v44 }
  0x46   :  { %1534 = vmatprep.subr.bf16.mxu1 %v1658_v14  ;;  %v1295_v14 = vld [vmem:[%s2118_s2] ss:$0 sm:$0xff] }
  0x47   :  { %1513 = vmatpush3.bf16.msra.mxu0 %v1657_v13 }
  0x48   :  { %1514 = vmatprep.subr.bf16.mxu0 %v1660_v16 }
  0x49   :  { %1535 = vmatpush3.bf16.msra.mxu1 %v1659_v15 }
  0x4a   :  { %1536 = vmatprep.subr.bf16.mxu1 %v1662_v18 }
  0x4b   :  { %1515 = vmatpush3.bf16.msra.mxu0 %v1661_v17 }
  0x4c   :  { %1516 = vmatprep.subr.bf16.mxu0 %v1664_v20 }
  0x4d   :  { %1537 = vmatpush3.bf16.msra.mxu1 %v1663_v19 }
  0x4e   :  { %1538 = vmatprep.subr.bf16.mxu1 %v1666_v22 }
  0x4f   :  { %1517 = vmatpush3.bf16.msra.mxu0 %v1665_v21 }
  0x50   :  { %1518 = vmatprep.subr.bf16.mxu0 %v1668_v24 }
  0x51   :  { %1539 = vmatpush3.bf16.msra.mxu1 %v1667_v23 }
  0x52   :  { %1540 = vmatprep.subr.bf16.mxu1 %v1670_v26 }
  0x53   :  { %1519 = vmatpush3.bf16.msra.mxu0 %v1669_v25 }
  0x54   :  { %1520 = vmatprep.subr.bf16.mxu0 %v1672_v28 }
  0x55   :  { %1541 = vmatpush3.bf16.msra.mxu1 %v1671_v27 }
  0x56   :  { %1542 = vmatprep.subr.bf16.mxu1 %v1674_v30 }
  0x57   :  { %1521 = vmatpush3.bf16.msra.mxu0 %v1673_v29 }
  0x58   :  { %1522 = vmatprep.subr.bf16.mxu0 %v1676_v32 }
  0x59   :  { %1543 = vmatpush3.bf16.msra.mxu1 %v1675_v31 }
  0x5a   :  { %1544 = vmatprep.subr.bf16.mxu1 %v1678_v34 }
  0x5b   :  { %1523 = vmatpush3.bf16.msra.mxu0 %v1677_v33 }
  0x5c   :  { %1524 = vmatprep.subr.bf16.mxu0 %v1680_v36 }
  0x5d   :  { %1545 = vmatpush3.bf16.msra.mxu1 %v1679_v35 }
  0x5e   :  { %1546 = vmatprep.subr.bf16.mxu1 %v1682_v38 }
  0x5f   :  { %1525 = vmatpush3.bf16.msra.mxu0 %v1681_v37 }
  0x60   :  { %1554 = vmatprep.subr.bf16.mxu0 %v1687_v42 }
  0x61   :  { %1547 = vmatpush3.bf16.msra.mxu1 %v1686_v41 }
  0x62   :  { %1199 = vmatmul.mubr.bf16.vlgmr.msra.gmra.mxu0 %v1683_v39 }
  0x63   :  { %1555 = vmatpush3.bf16.msra.mxu0 %v1691_v45  ;;  %1280 = vmatprep.mubr.bf16.mxu0 %v1708_v55 }
  0x64   :  { %1240 = vmatmul.mubr.bf16.vlgmr.msra.gmra.mxu1 %v1688_v43  ;;  %1556 = vmatprep.subr.bf16.mxu0 %v1692_v46 }
  0x67   :  { %1557 = vmatpush3.bf16.msra.mxu0 %v1693_v47 }
  0x68   :  { %1558 = vmatprep.subr.bf16.mxu0 %v1694_v48 }
  0x6b   :  { %1559 = vmatpush3.bf16.msra.mxu0 %v1695_v49 }
  0x6c   :  { %1560 = vmatprep.subr.bf16.mxu0 %v1696_v50 }
  0x6f   :  { %1561 = vmatpush3.bf16.msra.mxu0 %v1697_v51 }
  0x70   :  { %1562 = vmatprep.subr.bf16.mxu0 %v1698_v52 }
  0x73   :  { %1563 = vmatpush3.bf16.msra.mxu0 %v1699_v53 }
  0x74   :  { %1564 = vmatprep.subr.bf16.mxu0 %v1700_v54 }
  0x77   :  { %1565 = vmatpush3.bf16.msra.mxu0 %v1701_v56 }
  0x78   :  { %1566 = vmatprep.subr.bf16.mxu0 %v1702_v57 }
  0x7b   :  { %1567 = vmatpush3.bf16.msra.mxu0 %v1703_v58 }
  0x7c   :  { %1568 = vmatprep.subr.bf16.mxu0 %v1704_v59 }
  0x7f   :  { %1569 = vmatpush3.bf16.msra.mxu0 %v1705_v60 }
  0x82   :  { %1281 = vmatmul.mubr.bf16.vlgmr.msra.gmra.mxu0 %v1706_v61 }
  0xe2   :  { %v1438_v62 = vpop.f32.mrf.mxu0 }
  0xe4   :  { %v1439_v63 = vpop.f32.mrf.mxu0  ;;  %v1460_v0 = vpop.f32.mrf.mxu1 }
  0xe5   :  { %v1440_v13 = vadd.f32 %v1439_v63, %v1438_v62 }
  0xe6   :  { %v1441_v1 = vpop.f32.mrf.mxu0  ;;  %v1461_v2 = vpop.f32.mrf.mxu1 }
  0xe7   :  { %v1037_v17 = vadd.f32 %v1440_v13, %v1295_v14  ;;  %v1462_v18 = vadd.f32 %v1461_v2, %v1460_v0 }
  0xe8   :  { %v1442_v3 = vpop.f32.mrf.mxu0  ;;  %v1463_v4 = vpop.f32.mrf.mxu1 }
  0xe9   :  { %v1443_v19 = vadd.f32 %v1442_v3, %v1441_v1  ;;  %v1078_v23 = vadd.f32 %v1462_v18, %v1037_v17 }
  0xea   :  { %v1464_v6 = vpop.f32.mrf.mxu1 }
  0xeb   :  { %v1040_v24 = vadd.f32 %v1443_v19, %v1295_v14  ;;  %v1465_v25 = vadd.f32 %v1464_v6, %v1463_v4 }
  0xed   :  { %v1081_v31 = vadd.f32 %v1465_v25, %v1040_v24 }
 0x102   :  { %v1482_v5 = vpop.f32.mrf.mxu0 }
 0x104   :  { %v1483_v7 = vpop.f32.mrf.mxu0  ;;  %v1504_v8 = vpop.f32.mrf.mxu1 }
 0x105   :  { %v1484_v22 = vadd.f32 %v1483_v7, %v1482_v5 }
 0x106   :  { %v1485_v9 = vpop.f32.mrf.mxu0  ;;  %v1505_v10 = vpop.f32.mrf.mxu1 }
 0x107   :  { %v1119_v28 = vadd.f32 %v1484_v22, %v1078_v23  ;;  %v1506_v29 = vadd.f32 %v1505_v10, %v1504_v8 }
 0x108   :  { %v1486_v11 = vpop.f32.mrf.mxu0  ;;  %v1507_v12 = vpop.f32.mrf.mxu1 }
 0x109   :  { %v1487_v30 = vadd.f32 %v1486_v11, %v1485_v9  ;;  %v1160_v35 = vadd.f32 %v1506_v29, %v1119_v28 }
 0x10a   :  { %v1508_v16 = vpop.f32.mrf.mxu1 }
 0x10b   :  { %v1122_v36 = vadd.f32 %v1487_v30, %v1081_v31  ;;  %v1509_v37 = vadd.f32 %v1508_v16, %v1507_v12 }
 0x10d   :  { %v1163_v43 = vadd.f32 %v1509_v37, %v1122_v36 }
 0x122   :  { %v1526_v15 = vpop.f32.mrf.mxu0 }
 0x124   :  { %v1527_v20 = vpop.f32.mrf.mxu0  ;;  %v1548_v21 = vpop.f32.mrf.mxu1 }
 0x125   :  { %v1528_v32 = vadd.f32 %v1527_v20, %v1526_v15 }
 0x126   :  { %v1529_v26 = vpop.f32.mrf.mxu0  ;;  %v1549_v27 = vpop.f32.mrf.mxu1 }
 0x127   :  { %v1201_v38 = vadd.f32 %v1528_v32, %v1160_v35  ;;  %v1550_v39 = vadd.f32 %v1549_v27, %v1548_v21 }
 0x128   :  { %v1530_v33 = vpop.f32.mrf.mxu0  ;;  %v1551_v34 = vpop.f32.mrf.mxu1 }
 0x129   :  { %v1531_v40 = vadd.f32 %v1530_v33, %v1529_v26  ;;  %v1242_v45 = vadd.f32 %v1550_v39, %v1201_v38 }
 0x12a   :  { %v1552_v41 = vpop.f32.mrf.mxu1 }
 0x12b   :  { %v1204_v46 = vadd.f32 %v1531_v40, %v1163_v43  ;;  %v1553_v47 = vadd.f32 %v1552_v41, %v1551_v34 }
 0x12d   :  { %v1245_v52 = vadd.f32 %v1553_v47, %v1204_v46 }
 0x142   :  { %v1570_v42 = vpop.f32.mrf.mxu0 }
 0x144   :  { %v1571_v44 = vpop.f32.mrf.mxu0 }
 0x145   :  { %v1572_v48 = vadd.f32 %v1571_v44, %v1570_v42 }
 0x146   :  { %v1573_v49 = vpop.f32.mrf.mxu0 }
 0x147   :  { %v1283_v50 = vadd.f32 %v1572_v48, %v1242_v45 }
 0x148   :  { %v1574_v51 = vpop.f32.mrf.mxu0 }
 0x149   :  { %1289 = vst [vmem:[%s2119_s3] sm:$0xff] %v1283_v50  ;;  %v1575_v53 = vadd.f32 %v1574_v51, %v1573_v49 }
 0x14b   :  { %v1286_v54 = vadd.f32 %v1575_v53, %v1245_v52 }
 0x14d   :  { %1290 = vst [vmem:[%s2119_s3 + $0x8] sm:$0xff] %v1286_v54 }

// kernel: forward.17
= control target key start
LH: loop header
LB: loop body
LE: loop exit
PB: predicated region body
PF: predicated region fallthrough
CT: control target
= control target key end

     0   :  { %s1268_s1 = inlined_call_operand.vmem [shape: bf16[896,128], index: 1, kind: input, shape index: {}]   ;;  %s1269_s0 = inlined_call_operand.vmem [shape: bf16[32,896], index: 0, kind: input, shape index: {}]   ;;  %s1270_s2 = inlined_call_operand.vmem [shape: f32[1,128], index: 2, kind: input, shape index: {}]   ;;  %s1271_s3 = inlined_call_operand.vmem [shape: f32[32,128], index: 3, kind: output, shape index: {}]  }
   0x1   :  { %v947_v0 = vld [vmem:[%s1268_s1 + $0x78] sm:$0xff]   ;;  %v951_v4 = vld [vmem:[%s1268_s1 + $0x70] sm:$0xff]   ;;  %v955_v8 = vld [vmem:[%s1268_s1 + $0x68] sm:$0xff]  }
   0x2   :  { %v948_v1 = vld [vmem:[%s1268_s1 + $0x38] sm:$0xff]   ;;  %833 = vmatprep.subr.bf16.mxu0 %v947_v0  ;;  %v952_v5 = vld [vmem:[%s1268_s1 + $0x30] sm:$0xff]   ;;  %v956_v9 = vld [vmem:[%s1268_s1 + $0x28] sm:$0xff]  }
   0x3   :  { %v949_v2 = vld [vmem:[%s1268_s1 + $0xf8] sm:$0xff]   ;;  %834 = vmatpush3.bf16.msra.mxu0 %v948_v1  ;;  %v953_v6 = vld [vmem:[%s1268_s1 + $0xf0] sm:$0xff]   ;;  %v957_v10 = vld [vmem:[%s1268_s1 + $0xe8] sm:$0xff]  }
   0x4   :  { %v950_v3 = vld [vmem:[%s1268_s1 + $0xb8] sm:$0xff]   ;;  %861 = vmatprep.subr.bf16.mxu1 %v949_v2  ;;  %835 = vmatprep.subr.bf16.mxu0 %v951_v4  ;;  %v954_v7 = vld [vmem:[%s1268_s1 + $0xb0] sm:$0xff]   ;;  %v958_v11 = vld [vmem:[%s1268_s1 + $0xa8] sm:$0xff]  }
   0x5   :  { %862 = vmatpush3.bf16.msra.mxu1 %v950_v3  ;;  %v959_v12 = vld [vmem:[%s1268_s1 + $0x60] sm:$0xff]   ;;  %v963_v16 = vld [vmem:[%s1268_s1 + $0x58] sm:$0xff]   ;;  %v967_v20 = vld [vmem:[%s1268_s1 + $0x50] sm:$0xff]  }
   0x6   :  { %863 = vmatprep.subr.bf16.mxu1 %v953_v6  ;;  %v960_v13 = vld [vmem:[%s1268_s1 + $0x20] sm:$0xff]   ;;  %v964_v17 = vld [vmem:[%s1268_s1 + $0x18] sm:$0xff]   ;;  %v968_v21 = vld [vmem:[%s1268_s1 + $0x10] sm:$0xff]  }
   0x7   :  { %836 = vmatpush3.bf16.msra.mxu0 %v952_v5  ;;  %v961_v14 = vld [vmem:[%s1268_s1 + $0xe0] sm:$0xff]   ;;  %v965_v18 = vld [vmem:[%s1268_s1 + $0xd8] sm:$0xff]   ;;  %v969_v22 = vld [vmem:[%s1268_s1 + $0xd0] sm:$0xff]  }
   0x8   :  { %837 = vmatprep.subr.bf16.mxu0 %v955_v8  ;;  %v962_v15 = vld [vmem:[%s1268_s1 + $0xa0] sm:$0xff]   ;;  %v966_v19 = vld [vmem:[%s1268_s1 + $0x98] sm:$0xff]   ;;  %v970_v23 = vld [vmem:[%s1268_s1 + $0x90] sm:$0xff]  }
   0x9   :  { %864 = vmatpush3.bf16.msra.mxu1 %v954_v7  ;;  %v971_v24 = vld [vmem:[%s1268_s1 + $0x48] sm:$0xff]   ;;  %v975_v28 = vld [vmem:[%s1268_s1 + $0x40] sm:$0xff]   ;;  %v982_v34 = vld [vmem:[%s1268_s1 + $0x178] sm:$0xff]  }
   0xa   :  { %865 = vmatprep.subr.bf16.mxu1 %v957_v10  ;;  %v972_v25 = vld [vmem:[%s1268_s1 + $0x8] sm:$0xff]   ;;  %v976_v29 = vld [vmem:[%s1268_s1] sm:$0xff]   ;;  %v986_v37 = vld [vmem:[%s1268_s1 + $0x138] sm:$0xff]  }
   0xb   :  { %838 = vmatpush3.bf16.msra.mxu0 %v956_v9  ;;  %v973_v26 = vld [vmem:[%s1268_s1 + $0xc8] sm:$0xff]   ;;  %v977_v30 = vld [vmem:[%s1268_s1 + $0xc0] sm:$0xff]   ;;  %v987_v38 = vld [vmem:[%s1268_s1 + $0x170] sm:$0xff]  }
   0xc   :  { %839 = vmatprep.subr.bf16.mxu0 %v959_v12  ;;  %v974_v27 = vld [vmem:[%s1268_s1 + $0x88] sm:$0xff]   ;;  %v978_v31 = vld [vmem:[%s1269_s0] ss:$28 sps:$4 sm:$0xff]   ;;  %v989_v40 = vld [vmem:[%s1268_s1 + $0x130] sm:$0xff]  }
   0xd   :  { %866 = vmatpush3.bf16.msra.mxu1 %v958_v11  ;;  %v980_v32 = vld [vmem:[%s1269_s0 + $0x4] ss:$28 sps:$4 sm:$0xff]   ;;  %v985_v36 = vld [vmem:[%s1269_s0 + $0xc] ss:$28 sps:$4 sm:$0xff]   ;;  %v988_v39 = vld [vmem:[%s1268_s1 + $0x1b8] sm:$0xff]  }
   0xe   :  { %867 = vmatprep.subr.bf16.mxu1 %v961_v14  ;;  %v981_v33 = vld [vmem:[%s1268_s1 + $0x80] sm:$0xff]   ;;  %590 = vmatprep.mubr.bf16.mxu0 %v980_v32  ;;  %v990_v41 = vld [vmem:[%s1268_s1 + $0x168] sm:$0xff]   ;;  %v991_v42 = vld [vmem:[%s1268_s1 + $0x1b0] sm:$0xff]  }
   0xf   :  { %840 = vmatpush3.bf16.msra.mxu0 %v960_v13  ;;  %v983_v35 = vld [vmem:[%s1269_s0 + $0x8] ss:$28 sps:$4 sm:$0xff]   ;;  %639 = vmatprep.mubr.bf16.mxu1 %v985_v36  ;;  %v996_v47 = vld [vmem:[%s1268_s1 + $0x158] sm:$0xff]   ;;  %v1005_v54 = vld [vmem:[%s1268_s1 + $0x150] sm:$0xff]  }
  0x10   :  { %841 = vmatprep.subr.bf16.mxu0 %v963_v16  ;;  %v992_v43 = vld [vmem:[%s1268_s1 + $0x128] sm:$0xff]   ;;  %v993_v44 = vld [vmem:[%s1268_s1 + $0x160] sm:$0xff]   ;;  %v998_v49 = vld [vmem:[%s1269_s0 + $0x3c] ss:$28 sps:$4 sm:$0xff]  }
  0x11   :  { %868 = vmatpush3.bf16.msra.mxu1 %v962_v15  ;;  %v994_v45 = vld [vmem:[%s1268_s1 + $0x1a8] sm:$0xff]   ;;  %v995_v46 = vld [vmem:[%s1268_s1 + $0x120] sm:$0xff]   ;;  %v1000_v50 = vld [vmem:[%s1268_s1 + $0x118] sm:$0xff]  }
  0x12   :  { %869 = vmatprep.subr.bf16.mxu1 %v965_v18  ;;  %v997_v48 = vld [vmem:[%s1268_s1 + $0x1a0] sm:$0xff]   ;;  %v1001_v51 = vld [vmem:[%s1269_s0 + $0x38] ss:$28 sps:$4 sm:$0xff]   ;;  %v1008_v57 = vld [vmem:[%s1268_s1 + $0x148] sm:$0xff]  }
  0x13   :  { %842 = vmatpush3.bf16.msra.mxu0 %v964_v17  ;;  %v1002_v52 = vld [vmem:[%s1269_s0 + $0x44] ss:$28 sps:$4 sm:$0xff]   ;;  %v1006_v55 = vld [vmem:[%s1268_s1 + $0x198] sm:$0xff]   ;;  %v1007_v56 = vld [vmem:[%s1268_s1 + $0x110] sm:$0xff]  }
  0x14   :  { %843 = vmatprep.subr.bf16.mxu0 %v967_v20  ;;  %v1004_v53 = vld [vmem:[%s1269_s0 + $0x40] ss:$28 sps:$4 sm:$0xff]   ;;  %v1009_v58 = vld [vmem:[%s1268_s1 + $0x190] sm:$0xff]   ;;  %v1010_v59 = vld [vmem:[%s1268_s1 + $0x108] sm:$0xff]  }
  0x15   :  { %870 = vmatpush3.bf16.msra.mxu1 %v966_v19  ;;  %v1011_v60 = vld [vmem:[%s1268_s1 + $0x140] sm:$0xff]   ;;  %v1012_v61 = vld [vmem:[%s1268_s1 + $0x188] sm:$0xff]   ;;  %v1016_v63 = vld [vmem:[%s1269_s0 + $0x14] ss:$28 sps:$4 sm:$0xff]  }
  0x16   :  { %871 = vmatprep.subr.bf16.mxu1 %v969_v22  ;;  %v1013_v62 = vld [vmem:[%s1268_s1 + $0x100] sm:$0xff]   ;;  %v1018_v1 = vld [vmem:[%s1269_s0 + $0x18] ss:$28 sps:$4 sm:$0xff]   ;;  %v1014_v2 = vld [vmem:[%s1269_s0 + $0x10] ss:$28 sps:$4 sm:$0xff]  }
  0x17   :  { %844 = vmatpush3.bf16.msra.mxu0 %v968_v21  ;;  %v1017_v0 = vld [vmem:[%s1268_s1 + $0x180] sm:$0xff]   ;;  %v1020_v3 = vld [vmem:[%s1269_s0 + $0x4c] ss:$28 sps:$4 sm:$0xff]  }
  0x18   :  { %845 = vmatprep.subr.bf16.mxu0 %v971_v24  ;;  %v1019_v4 = vld [vmem:[%s1269_s0 + $0x50] ss:$28 sps:$4 sm:$0xff]   ;;  %v1022_v5 = vld [vmem:[%s1269_s0 + $0x48] ss:$28 sps:$4 sm:$0xff]   ;;  %v762_v20 = vld [vmem:[%s1270_s2] ss:$0 sm:$0xff] }
  0x19   :  { %872 = vmatpush3.bf16.msra.mxu1 %v970_v23 }
  0x1a   :  { %873 = vmatprep.subr.bf16.mxu1 %v973_v26 }
  0x1b   :  { %846 = vmatpush3.bf16.msra.mxu0 %v972_v25 }
  0x1c   :  { %847 = vmatprep.subr.bf16.mxu0 %v975_v28 }
  0x1d   :  { %874 = vmatpush3.bf16.msra.mxu1 %v974_v27 }
  0x1e   :  { %875 = vmatprep.subr.bf16.mxu1 %v977_v30 }
  0x1f   :  { %848 = vmatpush3.bf16.msra.mxu0 %v976_v29 }
  0x20   :  { %889 = vmatprep.subr.bf16.mxu0 %v982_v34 }
  0x21   :  { %876 = vmatpush3.bf16.msra.mxu1 %v981_v33 }
  0x22   :  { %591 = vmatmul.mubr.bf16.vlgmr.msra.gmra.mxu0 %v978_v31  ;;  %927 = vmatprep.subr.bf16.mxu1 %v988_v39 }
  0x23   :  { %890 = vmatpush3.bf16.msra.mxu0 %v986_v37  ;;  %598 = vmatprep.mubr.bf16.mxu0 %v998_v49 }
  0x24   :  { %640 = vmatmul.mubr.bf16.vlgmr.msra.gmra.mxu1 %v983_v35  ;;  %891 = vmatprep.subr.bf16.mxu0 %v987_v38 }
  0x25   :  { %928 = vmatpush3.bf16.msra.mxu1 %v988_v39  ;;  %647 = vmatprep.mubr.bf16.mxu1 %v1002_v52 }
  0x26   :  { %929 = vmatprep.subr.bf16.mxu1 %v991_v42 }
  0x27   :  { %892 = vmatpush3.bf16.msra.mxu0 %v989_v40 }
  0x28   :  { %893 = vmatprep.subr.bf16.mxu0 %v990_v41 }
  0x29   :  { %930 = vmatpush3.bf16.msra.mxu1 %v991_v42 }
  0x2a   :  { %931 = vmatprep.subr.bf16.mxu1 %v994_v45  ;;  %599 = vmatmul.mubr.bf16.gmra.mxu0 %v1001_v51 }
  0x2b   :  { %894 = vmatpush3.bf16.msra.mxu0 %v992_v43  ;;  %688 = vmatprep.mubr.bf16.mxu0 %v1016_v63 }
  0x2c   :  { %895 = vmatprep.subr.bf16.mxu0 %v993_v44  ;;  %648 = vmatmul.mubr.bf16.gmra.mxu1 %v1004_v53 }
  0x2d   :  { %932 = vmatpush3.bf16.msra.mxu1 %v994_v45  ;;  %943 = vmatprep.mubr.bf16.mxu1 %v1018_v1 }
  0x2e   :  { %933 = vmatprep.subr.bf16.mxu1 %v997_v48 }
  0x2f   :  { %896 = vmatpush3.bf16.msra.mxu0 %v995_v46 }
  0x30   :  { %897 = vmatprep.subr.bf16.mxu0 %v996_v47 }
  0x31   :  { %934 = vmatpush3.bf16.msra.mxu1 %v997_v48 }
  0x32   :  { %935 = vmatprep.subr.bf16.mxu1 %v1006_v55 }
  0x33   :  { %898 = vmatpush3.bf16.msra.mxu0 %v1000_v50 }
  0x34   :  { %899 = vmatprep.subr.bf16.mxu0 %v1005_v54 }
  0x35   :  { %936 = vmatpush3.bf16.msra.mxu1 %v1006_v55 }
  0x36   :  { %937 = vmatprep.subr.bf16.mxu1 %v1009_v58 }
  0x37   :  { %900 = vmatpush3.bf16.msra.mxu0 %v1007_v56 }
  0x38   :  { %901 = vmatprep.subr.bf16.mxu0 %v1008_v57 }
  0x39   :  { %938 = vmatpush3.bf16.msra.mxu1 %v1009_v58 }
  0x3a   :  { %939 = vmatprep.subr.bf16.mxu1 %v1012_v61 }
  0x3b   :  { %902 = vmatpush3.bf16.msra.mxu0 %v1010_v59 }
  0x3c   :  { %903 = vmatprep.subr.bf16.mxu0 %v1011_v60 }
  0x3d   :  { %940 = vmatpush3.bf16.msra.mxu1 %v1012_v61 }
  0x3e   :  { %941 = vmatprep.subr.bf16.mxu1 %v1017_v0 }
  0x3f   :  { %904 = vmatpush3.bf16.msra.mxu0 %v1013_v62 }
  0x41   :  { %942 = vmatpush3.bf16.msra.mxu1 %v1017_v0 }
  0x42   :  { %689 = vmatmul.mubr.bf16.vlgmr.msra.gmra.mxu0 %v1014_v2 }
  0x43   :  { %696 = vmatprep.mubr.bf16.mxu0 %v1020_v3 }
  0x44   :  { %944 = vmatmul.mubr.bf16.vlgmr.msra.gmra.mxu1 %v1019_v4 }
  0x4a   :  { %697 = vmatmul.mubr.bf16.gmra.mxu0 %v1022_v5 }
  0xe2   :  { %v849_v6 = vpop.f32.mrf.mxu0 }
  0xe4   :  { %v877_v7 = vpop.f32.mrf.mxu1  ;;  %v850_v8 = vpop.f32.mrf.mxu0 }
  0xe5   :  { %v851_v19 = vadd.f32 %v850_v8, %v849_v6 }
  0xe6   :  { %v878_v9 = vpop.f32.mrf.mxu1  ;;  %v852_v10 = vpop.f32.mrf.mxu0 }
  0xe7   :  { %v593_v23 = vadd.f32 %v851_v19, %v762_v20  ;;  %v879_v24 = vadd.f32 %v878_v9, %v877_v7 }
  0xe8   :  { %v880_v11 = vpop.f32.mrf.mxu1  ;;  %v853_v12 = vpop.f32.mrf.mxu0 }
  0xe9   :  { %v854_v25 = vadd.f32 %v853_v12, %v852_v10  ;;  %v642_v30 = vadd.f32 %v879_v24, %v593_v23 }
  0xea   :  { %v855_v13 = vpop.f32.mrf.mxu0  ;;  %v881_v14 = vpop.f32.mrf.mxu1 }
  0xeb   :  { %v596_v31 = vadd.f32 %v854_v25, %v762_v20  ;;  %v882_v32 = vadd.f32 %v881_v14, %v880_v11 }
  0xec   :  { %v883_v15 = vpop.f32.mrf.mxu1  ;;  %v856_v16 = vpop.f32.mrf.mxu0 }
  0xed   :  { %v857_v28 = vadd.f32 %v856_v16, %v855_v13  ;;  %v645_v41 = vadd.f32 %v882_v32, %v596_v31 }
  0xee   :  { %v884_v17 = vpop.f32.mrf.mxu1  ;;  %v858_v18 = vpop.f32.mrf.mxu0 }
  0xef   :  { %v601_v38 = vadd.f32 %v857_v28, %v762_v20  ;;  %v885_v39 = vadd.f32 %v884_v17, %v883_v15 }
  0xf0   :  { %v886_v21 = vpop.f32.mrf.mxu1  ;;  %v859_v22 = vpop.f32.mrf.mxu0 }
  0xf1   :  { %v860_v42 = vadd.f32 %v859_v22, %v858_v18  ;;  %v650_v49 = vadd.f32 %v885_v39, %v601_v38 }
  0xf2   :  { %v887_v27 = vpop.f32.mrf.mxu1 }
  0xf3   :  { %v604_v51 = vadd.f32 %v860_v42, %v762_v20  ;;  %v888_v52 = vadd.f32 %v887_v27, %v886_v21 }
  0xf5   :  { %v653_v58 = vadd.f32 %v888_v52, %v604_v51 }
 0x102   :  { %v905_v26 = vpop.f32.mrf.mxu0 }
 0x104   :  { %v906_v29 = vpop.f32.mrf.mxu0  ;;  %v945_v34 = vpop.f32.mrf.mxu1 }
 0x105   :  { %v907_v33 = vadd.f32 %v906_v29, %v905_v26 }
 0x106   :  { %v908_v35 = vpop.f32.mrf.mxu0  ;;  %v739_v37 = vpop.f32.mrf.mxu1 }
 0x107   :  { %v691_v36 = vadd.f32 %v907_v33, %v642_v30 }
 0x108   :  { %v909_v40 = vpop.f32.mrf.mxu0  ;;  %v946_v45 = vpop.f32.mrf.mxu1 }
 0x109   :  { %v910_v43 = vadd.f32 %v909_v40, %v908_v35  ;;  %v740_v44 = vadd.f32 %v739_v37, %v691_v36 }
 0x10a   :  { %v911_v46 = vpop.f32.mrf.mxu0  ;;  %v742_v48 = vpop.f32.mrf.mxu1 }
 0x10b   :  { %754 = vst [vmem:[%s1271_s3] sm:$0xff] %v740_v44  ;;  %v694_v47 = vadd.f32 %v910_v43, %v645_v41 }
 0x10c   :  { %v912_v50 = vpop.f32.mrf.mxu0 }
 0x10d   :  { %v913_v53 = vadd.f32 %v912_v50, %v911_v46  ;;  %v743_v54 = vadd.f32 %v742_v48, %v694_v47 }
 0x10e   :  { %v914_v55 = vpop.f32.mrf.mxu0 }
 0x10f   :  { %v699_v56 = vadd.f32 %v913_v53, %v650_v49  ;;  %755 = vst [vmem:[%s1271_s3 + $0x8] sm:$0xff] %v743_v54 }
 0x110   :  { %v915_v57 = vpop.f32.mrf.mxu0 }
 0x111   :  { %v748_v59 = vadd.f32 %v945_v34, %v699_v56  ;;  %v916_v60 = vadd.f32 %v915_v57, %v914_v55 }
 0x113   :  { %756 = vst [vmem:[%s1271_s3 + $0x10] sm:$0xff] %v748_v59  ;;  %v702_v61 = vadd.f32 %v916_v60, %v653_v58 }
 0x115   :  { %v751_v62 = vadd.f32 %v946_v45, %v702_v61 }
 0x117   :  { %757 = vst [vmem:[%s1271_s3 + $0x18] sm:$0xff] %v751_v62 }

// kernel: forward.18
= control target key start
LH: loop header
LB: loop body
LE: loop exit
PB: predicated region body
PF: predicated region fallthrough
CT: control target
= control target key end

     0   :  { %s1238_s1 = inlined_call_operand.vmem [shape: bf16[512,128], index: 1, kind: input, shape index: {}]   ;;  %s1239_s0 = inlined_call_operand.vmem [shape: bf16[128,512], index: 0, kind: input, shape index: {}]   ;;  %s1240_s2 = inlined_call_operand.vmem [shape: f32[1,128], index: 2, kind: input, shape index: {}]   ;;  %s1241_s3 = inlined_call_operand.vmem [shape: f32[128,128], index: 3, kind: output, shape index: {}]  }
   0x1   :  { %v877_v0 = vld [vmem:[%s1238_s1 + $0x78] sm:$0xff]   ;;  %v881_v4 = vld [vmem:[%s1238_s1 + $0x70] sm:$0xff]   ;;  %v885_v8 = vld [vmem:[%s1238_s1 + $0x68] sm:$0xff]  }
   0x2   :  { %v878_v1 = vld [vmem:[%s1238_s1 + $0xf8] sm:$0xff]   ;;  %749 = vmatprep.subr.bf16.mxu0 %v877_v0  ;;  %v882_v5 = vld [vmem:[%s1238_s1 + $0xf0] sm:$0xff]   ;;  %v886_v9 = vld [vmem:[%s1238_s1 + $0xe8] sm:$0xff]  }
   0x3   :  { %v879_v2 = vld [vmem:[%s1238_s1 + $0x38] sm:$0xff]   ;;  %813 = vmatprep.subr.bf16.mxu1 %v878_v1  ;;  %v883_v6 = vld [vmem:[%s1238_s1 + $0x30] sm:$0xff]   ;;  %v887_v10 = vld [vmem:[%s1238_s1 + $0x28] sm:$0xff]  }
   0x4   :  { %v880_v3 = vld [vmem:[%s1238_s1 + $0xb8] sm:$0xff]   ;;  %750 = vmatpush3.bf16.msra.mxu0 %v879_v2  ;;  %v884_v7 = vld [vmem:[%s1238_s1 + $0xb0] sm:$0xff]   ;;  %v888_v11 = vld [vmem:[%s1238_s1 + $0xa8] sm:$0xff]  }
   0x5   :  { %814 = vmatpush3.bf16.msra.mxu1 %v880_v3  ;;  %751 = vmatprep.subr.bf16.mxu0 %v881_v4  ;;  %v889_v12 = vld [vmem:[%s1238_s1 + $0x60] sm:$0xff]   ;;  %v893_v16 = vld [vmem:[%s1238_s1 + $0x58] sm:$0xff]   ;;  %v897_v20 = vld [vmem:[%s1238_s1 + $0x50] sm:$0xff]  }
   0x6   :  { %815 = vmatprep.subr.bf16.mxu1 %v882_v5  ;;  %v890_v13 = vld [vmem:[%s1238_s1 + $0xe0] sm:$0xff]   ;;  %v894_v17 = vld [vmem:[%s1238_s1 + $0xd8] sm:$0xff]   ;;  %v898_v21 = vld [vmem:[%s1238_s1 + $0xd0] sm:$0xff]  }
   0x7   :  { %v891_v14 = vld [vmem:[%s1238_s1 + $0x20] sm:$0xff]   ;;  %v895_v18 = vld [vmem:[%s1238_s1 + $0x18] sm:$0xff]   ;;  %v899_v22 = vld [vmem:[%s1238_s1 + $0x10] sm:$0xff]  }
   0x8   :  { %752 = vmatpush3.bf16.msra.mxu0 %v883_v6  ;;  %v892_v15 = vld [vmem:[%s1238_s1 + $0xa0] sm:$0xff]   ;;  %v896_v19 = vld [vmem:[%s1238_s1 + $0x98] sm:$0xff]   ;;  %v900_v23 = vld [vmem:[%s1238_s1 + $0x90] sm:$0xff]  }
   0x9   :  { %816 = vmatpush3.bf16.msra.mxu1 %v884_v7  ;;  %753 = vmatprep.subr.bf16.mxu0 %v885_v8  ;;  %v901_v24 = vld [vmem:[%s1238_s1 + $0x48] sm:$0xff]   ;;  %v905_v28 = vld [vmem:[%s1238_s1 + $0x40] sm:$0xff]  }
   0xa   :  { %817 = vmatprep.subr.bf16.mxu1 %v886_v9  ;;  %v902_v25 = vld [vmem:[%s1238_s1 + $0xc8] sm:$0xff]   ;;  %v906_v29 = vld [vmem:[%s1238_s1 + $0xc0] sm:$0xff]  }
   0xb   :  { %v903_v26 = vld [vmem:[%s1238_s1 + $0x8] sm:$0xff]   ;;  %v907_v30 = vld [vmem:[%s1238_s1] sm:$0xff]  }
   0xc   :  { %754 = vmatpush3.bf16.msra.mxu0 %v887_v10  ;;  %v904_v27 = vld [vmem:[%s1238_s1 + $0x88] sm:$0xff]   ;;  %v908_v31 = vld [vmem:[%s1238_s1 + $0x80] sm:$0xff]  }
   0xd   :  { %818 = vmatpush3.bf16.msra.mxu1 %v888_v11  ;;  %755 = vmatprep.subr.bf16.mxu0 %v889_v12  ;;  %v909_v32 = vld [vmem:[%s1239_s0] ss:$16 sps:$4 sm:$0xff]   ;;  %v911_v33 = vld [vmem:[%s1239_s0 + $0x4] ss:$16 sps:$4 sm:$0xff]   ;;  %v912_v34 = vld [vmem:[%s1239_s0 + $0x8] ss:$16 sps:$4 sm:$0xff]  }
   0xe   :  { %819 = vmatprep.subr.bf16.mxu1 %v890_v13  ;;  %v914_v35 = vld [vmem:[%s1239_s0 + $0xc] ss:$16 sps:$4 sm:$0xff]   ;;  %502 = vmatprep.mubr.bf16.mxu0 %v911_v33  ;;  %v915_v36 = vld [vmem:[%s1239_s0 + $0x24] ss:$16 sps:$4 sm:$0xff]   ;;  %v919_v38 = vld [vmem:[%s1239_s0 + $0x20] ss:$16 sps:$4 sm:$0xff]  }
   0xf   :  { %599 = vmatprep.mubr.bf16.mxu1 %v914_v35  ;;  %v917_v37 = vld [vmem:[%s1239_s0 + $0x2c] ss:$16 sps:$4 sm:$0xff]   ;;  %v920_v39 = vld [vmem:[%s1239_s0 + $0x28] ss:$16 sps:$4 sm:$0xff]   ;;  %v921_v40 = vld [vmem:[%s1239_s0 + $0x44] ss:$16 sps:$4 sm:$0xff]  }
  0x10   :  { %756 = vmatpush3.bf16.msra.mxu0 %v891_v14  ;;  %v923_v41 = vld [vmem:[%s1239_s0 + $0x4c] ss:$16 sps:$4 sm:$0xff]   ;;  %v925_v42 = vld [vmem:[%s1239_s0 + $0x40] ss:$16 sps:$4 sm:$0xff]   ;;  %v926_v43 = vld [vmem:[%s1239_s0 + $0x48] ss:$16 sps:$4 sm:$0xff]  }
  0x11   :  { %820 = vmatpush3.bf16.msra.mxu1 %v892_v15  ;;  %757 = vmatprep.subr.bf16.mxu0 %v893_v16  ;;  %v927_v44 = vld [vmem:[%s1239_s0 + $0x64] ss:$16 sps:$4 sm:$0xff]   ;;  %v929_v45 = vld [vmem:[%s1239_s0 + $0x6c] ss:$16 sps:$4 sm:$0xff]   ;;  %v931_v46 = vld [vmem:[%s1239_s0 + $0x60] ss:$16 sps:$4 sm:$0xff]  }
  0x12   :  { %821 = vmatprep.subr.bf16.mxu1 %v894_v17  ;;  %v932_v47 = vld [vmem:[%s1239_s0 + $0x68] ss:$16 sps:$4 sm:$0xff]   ;;  %v933_v48 = vld [vmem:[%s1239_s0 + $0x84] ss:$16 sps:$4 sm:$0xff]   ;;  %v935_v49 = vld [vmem:[%s1239_s0 + $0x8c] ss:$16 sps:$4 sm:$0xff]  }
  0x13   :  { %v937_v50 = vld [vmem:[%s1239_s0 + $0x80] ss:$16 sps:$4 sm:$0xff]   ;;  %v938_v51 = vld [vmem:[%s1239_s0 + $0x88] ss:$16 sps:$4 sm:$0xff]   ;;  %v939_v52 = vld [vmem:[%s1239_s0 + $0xa4] ss:$16 sps:$4 sm:$0xff]  }
  0x14   :  { %758 = vmatpush3.bf16.msra.mxu0 %v895_v18  ;;  %v941_v53 = vld [vmem:[%s1239_s0 + $0xac] ss:$16 sps:$4 sm:$0xff]   ;;  %v943_v54 = vld [vmem:[%s1239_s0 + $0xa0] ss:$16 sps:$4 sm:$0xff]   ;;  %v944_v55 = vld [vmem:[%s1239_s0 + $0xa8] ss:$16 sps:$4 sm:$0xff]  }
  0x15   :  { %822 = vmatpush3.bf16.msra.mxu1 %v896_v19  ;;  %759 = vmatprep.subr.bf16.mxu0 %v897_v20  ;;  %v945_v56 = vld [vmem:[%s1239_s0 + $0xc4] ss:$16 sps:$4 sm:$0xff]   ;;  %v947_v57 = vld [vmem:[%s1239_s0 + $0xcc] ss:$16 sps:$4 sm:$0xff]   ;;  %v949_v58 = vld [vmem:[%s1239_s0 + $0xc0] ss:$16 sps:$4 sm:$0xff]  }
  0x16   :  { %823 = vmatprep.subr.bf16.mxu1 %v898_v21  ;;  %v950_v59 = vld [vmem:[%s1239_s0 + $0xc8] ss:$16 sps:$4 sm:$0xff]   ;;  %v951_v60 = vld [vmem:[%s1239_s0 + $0xe4] ss:$16 sps:$4 sm:$0xff]   ;;  %v953_v61 = vld [vmem:[%s1239_s0 + $0xec] ss:$16 sps:$4 sm:$0xff]  }
  0x17   :  { %v955_v62 = vld [vmem:[%s1239_s0 + $0xe0] ss:$16 sps:$4 sm:$0xff]   ;;  %v956_v63 = vld [vmem:[%s1239_s0 + $0xe8] ss:$16 sps:$4 sm:$0xff]  }
  0x18   :  { %760 = vmatpush3.bf16.msra.mxu0 %v899_v22  ;;  %v1172_v2 = vld [vmem:[%s1240_s2] ss:$0 sm:$0xff] }
  0x19   :  { %824 = vmatpush3.bf16.msra.mxu1 %v900_v23  ;;  %761 = vmatprep.subr.bf16.mxu0 %v901_v24 }
  0x1a   :  { %825 = vmatprep.subr.bf16.mxu1 %v902_v25 }
  0x1c   :  { %762 = vmatpush3.bf16.msra.mxu0 %v903_v26 }
  0x1d   :  { %826 = vmatpush3.bf16.msra.mxu1 %v904_v27  ;;  %763 = vmatprep.subr.bf16.mxu0 %v905_v28 }
  0x1e   :  { %827 = vmatprep.subr.bf16.mxu1 %v906_v29 }
  0x20   :  { %764 = vmatpush3.bf16.msra.mxu0 %v907_v30 }
  0x21   :  { %828 = vmatpush3.bf16.msra.mxu1 %v908_v31 }
  0x23   :  { %503 = vmatmul.mubr.bf16.vlgmr.msra.gmra.mxu0 %v909_v32 }
  0x24   :  { %600 = vmatmul.mubr.bf16.vlgmr.msra.gmra.mxu1 %v912_v34  ;;  %510 = vmatprep.mubr.bf16.mxu0 %v915_v36 }
  0x25   :  { %607 = vmatprep.mubr.bf16.mxu1 %v917_v37 }
  0x2b   :  { %511 = vmatmul.mubr.bf16.gmra.mxu0 %v919_v38 }
  0x2c   :  { %608 = vmatmul.mubr.bf16.gmra.mxu1 %v920_v39  ;;  %518 = vmatprep.mubr.bf16.mxu0 %v921_v40 }
  0x2d   :  { %615 = vmatprep.mubr.bf16.mxu1 %v923_v41 }
  0x33   :  { %519 = vmatmul.mubr.bf16.gmra.mxu0 %v925_v42 }
  0x34   :  { %616 = vmatmul.mubr.bf16.gmra.mxu1 %v926_v43  ;;  %526 = vmatprep.mubr.bf16.mxu0 %v927_v44 }
  0x35   :  { %623 = vmatprep.mubr.bf16.mxu1 %v929_v45 }
  0x3b   :  { %527 = vmatmul.mubr.bf16.gmra.mxu0 %v931_v46 }
  0x3c   :  { %624 = vmatmul.mubr.bf16.gmra.mxu1 %v932_v47  ;;  %534 = vmatprep.mubr.bf16.mxu0 %v933_v48 }
  0x3d   :  { %631 = vmatprep.mubr.bf16.mxu1 %v935_v49 }
  0x43   :  { %535 = vmatmul.mubr.bf16.gmra.mxu0 %v937_v50 }
  0x44   :  { %632 = vmatmul.mubr.bf16.gmra.mxu1 %v938_v51  ;;  %542 = vmatprep.mubr.bf16.mxu0 %v939_v52 }
  0x45   :  { %639 = vmatprep.mubr.bf16.mxu1 %v941_v53 }
  0x4b   :  { %543 = vmatmul.mubr.bf16.gmra.mxu0 %v943_v54 }
  0x4c   :  { %640 = vmatmul.mubr.bf16.gmra.mxu1 %v944_v55  ;;  %550 = vmatprep.mubr.bf16.mxu0 %v945_v56 }
  0x4d   :  { %647 = vmatprep.mubr.bf16.mxu1 %v947_v57 }
  0x53   :  { %551 = vmatmul.mubr.bf16.gmra.mxu0 %v949_v58 }
  0x54   :  { %648 = vmatmul.mubr.bf16.gmra.mxu1 %v950_v59  ;;  %558 = vmatprep.mubr.bf16.mxu0 %v951_v60 }
  0x55   :  { %655 = vmatprep.mubr.bf16.mxu1 %v953_v61 }
  0x5b   :  { %559 = vmatmul.mubr.bf16.gmra.mxu0 %v955_v62 }
  0x5c   :  { %656 = vmatmul.mubr.bf16.gmra.mxu1 %v956_v63 }
  0xe3   :  { %v765_v0 = vpop.f32.mrf.mxu0 }
  0xe4   :  { %v829_v1 = vpop.f32.mrf.mxu1 }
  0xe5   :  { %v766_v3 = vpop.f32.mrf.mxu0 }
  0xe6   :  { %v767_v4 = vadd.f32 %v766_v3, %v765_v0  ;;  %v830_v5 = vpop.f32.mrf.mxu1 }
  0xe7   :  { %v768_v6 = vpop.f32.mrf.mxu0  ;;  %v831_v8 = vadd.f32 %v830_v5, %v829_v1 }
  0xe8   :  { %v505_v7 = vadd.f32 %v767_v4, %v1172_v2  ;;  %v832_v9 = vpop.f32.mrf.mxu1 }
  0xe9   :  { %v769_v10 = vpop.f32.mrf.mxu0 }
  0xea   :  { %v602_v11 = vadd.f32 %v831_v8, %v505_v7  ;;  %v770_v12 = vadd.f32 %v769_v10, %v768_v6  ;;  %v833_v13 = vpop.f32.mrf.mxu1 }
  0xeb   :  { %v771_v14 = vpop.f32.mrf.mxu0  ;;  %v834_v16 = vadd.f32 %v833_v13, %v832_v9 }
  0xec   :  { %664 = vst [vmem:[%s1241_s3] sm:$0xff] %v602_v11  ;;  %v508_v15 = vadd.f32 %v770_v12, %v1172_v2  ;;  %v835_v17 = vpop.f32.mrf.mxu1 }
  0xed   :  { %v772_v18 = vpop.f32.mrf.mxu0 }
  0xee   :  { %v605_v19 = vadd.f32 %v834_v16, %v508_v15  ;;  %v773_v20 = vadd.f32 %v772_v18, %v771_v14  ;;  %v836_v21 = vpop.f32.mrf.mxu1 }
  0xef   :  { %v774_v22 = vpop.f32.mrf.mxu0  ;;  %v837_v24 = vadd.f32 %v836_v21, %v835_v17 }
  0xf0   :  { %665 = vst [vmem:[%s1241_s3 + $0x8] sm:$0xff] %v605_v19  ;;  %v513_v23 = vadd.f32 %v773_v20, %v1172_v2  ;;  %v838_v25 = vpop.f32.mrf.mxu1 }
  0xf1   :  { %v775_v26 = vpop.f32.mrf.mxu0 }
  0xf2   :  { %v610_v27 = vadd.f32 %v837_v24, %v513_v23  ;;  %v776_v28 = vadd.f32 %v775_v26, %v774_v22  ;;  %v839_v29 = vpop.f32.mrf.mxu1 }
  0xf3   :  { %v777_v30 = vpop.f32.mrf.mxu0  ;;  %v840_v32 = vadd.f32 %v839_v29, %v838_v25 }
  0xf4   :  { %666 = vst [vmem:[%s1241_s3 + $0x10] sm:$0xff] %v610_v27  ;;  %v516_v31 = vadd.f32 %v776_v28, %v1172_v2  ;;  %v841_v33 = vpop.f32.mrf.mxu1 }
  0xf5   :  { %v778_v34 = vpop.f32.mrf.mxu0 }
  0xf6   :  { %v613_v35 = vadd.f32 %v840_v32, %v516_v31  ;;  %v779_v36 = vadd.f32 %v778_v34, %v777_v30  ;;  %v842_v37 = vpop.f32.mrf.mxu1 }
  0xf7   :  { %v780_v38 = vpop.f32.mrf.mxu0  ;;  %v843_v40 = vadd.f32 %v842_v37, %v841_v33 }
  0xf8   :  { %667 = vst [vmem:[%s1241_s3 + $0x18] sm:$0xff] %v613_v35  ;;  %v521_v39 = vadd.f32 %v779_v36, %v1172_v2  ;;  %v844_v41 = vpop.f32.mrf.mxu1 }
  0xf9   :  { %v781_v42 = vpop.f32.mrf.mxu0 }
  0xfa   :  { %v618_v43 = vadd.f32 %v843_v40, %v521_v39  ;;  %v782_v44 = vadd.f32 %v781_v42, %v780_v38  ;;  %v845_v45 = vpop.f32.mrf.mxu1 }
  0xfb   :  { %v783_v46 = vpop.f32.mrf.mxu0  ;;  %v846_v48 = vadd.f32 %v845_v45, %v844_v41 }
  0xfc   :  { %668 = vst [vmem:[%s1241_s3 + $0x20] sm:$0xff] %v618_v43  ;;  %v524_v47 = vadd.f32 %v782_v44, %v1172_v2  ;;  %v847_v49 = vpop.f32.mrf.mxu1 }
  0xfd   :  { %v784_v50 = vpop.f32.mrf.mxu0 }
  0xfe   :  { %v621_v51 = vadd.f32 %v846_v48, %v524_v47  ;;  %v785_v52 = vadd.f32 %v784_v50, %v783_v46  ;;  %v848_v53 = vpop.f32.mrf.mxu1 }
  0xff   :  { %v786_v54 = vpop.f32.mrf.mxu0  ;;  %v849_v56 = vadd.f32 %v848_v53, %v847_v49 }
 0x100   :  { %669 = vst [vmem:[%s1241_s3 + $0x28] sm:$0xff] %v621_v51  ;;  %v529_v55 = vadd.f32 %v785_v52, %v1172_v2  ;;  %v850_v57 = vpop.f32.mrf.mxu1 }
 0x101   :  { %v787_v58 = vpop.f32.mrf.mxu0 }
 0x102   :  { %v626_v59 = vadd.f32 %v849_v56, %v529_v55  ;;  %v788_v60 = vadd.f32 %v787_v58, %v786_v54  ;;  %v851_v61 = vpop.f32.mrf.mxu1 }
 0x103   :  { %v789_v62 = vpop.f32.mrf.mxu0  ;;  %v852_v0 = vadd.f32 %v851_v61, %v850_v57 }
 0x104   :  { %670 = vst [vmem:[%s1241_s3 + $0x30] sm:$0xff] %v626_v59  ;;  %v532_v63 = vadd.f32 %v788_v60, %v1172_v2  ;;  %v853_v1 = vpop.f32.mrf.mxu1 }
 0x105   :  { %v790_v3 = vpop.f32.mrf.mxu0 }
 0x106   :  { %v629_v4 = vadd.f32 %v852_v0, %v532_v63  ;;  %v791_v5 = vadd.f32 %v790_v3, %v789_v62  ;;  %v854_v6 = vpop.f32.mrf.mxu1 }
 0x107   :  { %v792_v7 = vpop.f32.mrf.mxu0  ;;  %v855_v9 = vadd.f32 %v854_v6, %v853_v1 }
 0x108   :  { %671 = vst [vmem:[%s1241_s3 + $0x38] sm:$0xff] %v629_v4  ;;  %v537_v8 = vadd.f32 %v791_v5, %v1172_v2  ;;  %v856_v10 = vpop.f32.mrf.mxu1 }
 0x109   :  { %v793_v11 = vpop.f32.mrf.mxu0 }
 0x10a   :  { %v634_v12 = vadd.f32 %v855_v9, %v537_v8  ;;  %v794_v13 = vadd.f32 %v793_v11, %v792_v7  ;;  %v857_v14 = vpop.f32.mrf.mxu1 }
 0x10b   :  { %v795_v15 = vpop.f32.mrf.mxu0  ;;  %v858_v17 = vadd.f32 %v857_v14, %v856_v10 }
 0x10c   :  { %672 = vst [vmem:[%s1241_s3 + $0x40] sm:$0xff] %v634_v12  ;;  %v540_v16 = vadd.f32 %v794_v13, %v1172_v2  ;;  %v859_v18 = vpop.f32.mrf.mxu1 }
 0x10d   :  { %v796_v19 = vpop.f32.mrf.mxu0 }
 0x10e   :  { %v637_v20 = vadd.f32 %v858_v17, %v540_v16  ;;  %v797_v21 = vadd.f32 %v796_v19, %v795_v15  ;;  %v860_v22 = vpop.f32.mrf.mxu1 }
 0x10f   :  { %v798_v23 = vpop.f32.mrf.mxu0  ;;  %v861_v25 = vadd.f32 %v860_v22, %v859_v18 }
 0x110   :  { %673 = vst [vmem:[%s1241_s3 + $0x48] sm:$0xff] %v637_v20  ;;  %v545_v24 = vadd.f32 %v797_v21, %v1172_v2  ;;  %v862_v26 = vpop.f32.mrf.mxu1 }
 0x111   :  { %v799_v27 = vpop.f32.mrf.mxu0 }
 0x112   :  { %v642_v28 = vadd.f32 %v861_v25, %v545_v24  ;;  %v800_v29 = vadd.f32 %v799_v27, %v798_v23  ;;  %v863_v30 = vpop.f32.mrf.mxu1 }
 0x113   :  { %v801_v31 = vpop.f32.mrf.mxu0  ;;  %v864_v33 = vadd.f32 %v863_v30, %v862_v26 }
 0x114   :  { %674 = vst [vmem:[%s1241_s3 + $0x50] sm:$0xff] %v642_v28  ;;  %v548_v32 = vadd.f32 %v800_v29, %v1172_v2  ;;  %v865_v34 = vpop.f32.mrf.mxu1 }
 0x115   :  { %v802_v35 = vpop.f32.mrf.mxu0 }
 0x116   :  { %v645_v36 = vadd.f32 %v864_v33, %v548_v32  ;;  %v803_v37 = vadd.f32 %v802_v35, %v801_v31  ;;  %v866_v38 = vpop.f32.mrf.mxu1 }
 0x117   :  { %v804_v39 = vpop.f32.mrf.mxu0  ;;  %v867_v41 = vadd.f32 %v866_v38, %v865_v34 }
 0x118   :  { %675 = vst [vmem:[%s1241_s3 + $0x58] sm:$0xff] %v645_v36  ;;  %v553_v40 = vadd.f32 %v803_v37, %v1172_v2  ;;  %v868_v42 = vpop.f32.mrf.mxu1 }
 0x119   :  { %v805_v43 = vpop.f32.mrf.mxu0 }
 0x11a   :  { %v650_v44 = vadd.f32 %v867_v41, %v553_v40  ;;  %v806_v45 = vadd.f32 %v805_v43, %v804_v39  ;;  %v869_v46 = vpop.f32.mrf.mxu1 }
 0x11b   :  { %v807_v47 = vpop.f32.mrf.mxu0  ;;  %v870_v49 = vadd.f32 %v869_v46, %v868_v42 }
 0x11c   :  { %676 = vst [vmem:[%s1241_s3 + $0x60] sm:$0xff] %v650_v44  ;;  %v556_v48 = vadd.f32 %v806_v45, %v1172_v2  ;;  %v871_v50 = vpop.f32.mrf.mxu1 }
 0x11d   :  { %v808_v51 = vpop.f32.mrf.mxu0 }
 0x11e   :  { %v653_v52 = vadd.f32 %v870_v49, %v556_v48  ;;  %v809_v53 = vadd.f32 %v808_v51, %v807_v47  ;;  %v872_v54 = vpop.f32.mrf.mxu1 }
 0x11f   :  { %v810_v55 = vpop.f32.mrf.mxu0  ;;  %v873_v57 = vadd.f32 %v872_v54, %v871_v50 }
 0x120   :  { %677 = vst [vmem:[%s1241_s3 + $0x68] sm:$0xff] %v653_v52  ;;  %v561_v56 = vadd.f32 %v809_v53, %v1172_v2  ;;  %v874_v58 = vpop.f32.mrf.mxu1 }
 0x121   :  { %v811_v59 = vpop.f32.mrf.mxu0 }
 0x122   :  { %v658_v60 = vadd.f32 %v873_v57, %v561_v56  ;;  %v812_v61 = vadd.f32 %v811_v59, %v810_v55  ;;  %v875_v62 = vpop.f32.mrf.mxu1 }
 0x123   :  { %v876_v0 = vadd.f32 %v875_v62, %v874_v58 }
 0x124   :  { %678 = vst [vmem:[%s1241_s3 + $0x70] sm:$0xff] %v658_v60  ;;  %v564_v63 = vadd.f32 %v812_v61, %v1172_v2 }
 0x126   :  { %v661_v1 = vadd.f32 %v876_v0, %v564_v63 }
 0x128   :  { %679 = vst [vmem:[%s1241_s3 + $0x78] sm:$0xff] %v661_v1 }

// kernel: forward.19
= control target key start
LH: loop header
LB: loop body
LE: loop exit
PB: predicated region body
PF: predicated region fallthrough
CT: control target
= control target key end

     0   :  { %s1140_s12 = smov 0   ;;  %s1317_s0 = inlined_call_operand.vmem [shape: bf16[512,256], index: 0, kind: input, shape index: {}]   ;;  %s1318_s1 = inlined_call_operand.vmem [shape: bf16[256,128], index: 1, kind: input, shape index: {}]   ;;  %s1319_s2 = inlined_call_operand.vmem [shape: f32[1,128], index: 2, kind: input, shape index: {}]   ;;  %s1320_s3 = inlined_call_operand.vmem [shape: f32[512,128], index: 3, kind: output, shape index: {}]  }
   0x1 LB: > { %s786_s13 = sadd.s32 4294967295, %s1118_s12   ;;  %p790_p0 = scmp.ge.s32.totalorder %s1118_s12, 1  ;;  %s1118_s12 = sphi %s1140_s12, %s13_s12  }
   0x2   : > { %p139_p1 = scmp.lt.s32.totalorder %s1118_s12, 3 }
   0x4   : > { %p140_p2 = pnand %p790_p0, %p139_p1 }
   0x5   : > { %s791_s16 = sshll.u32 (!%p140_p2), %s786_s13, 5 }
   0x6   : > { %143 = sbr.rel (%p140_p2) target bundleno = 319 (0x13f), region = 32  ;;  %p165_p3 = scmp.lt.s32.totalorder (!%p140_p2), %s791_s16, 63 }
   0xb   : > { %v984_v0 = vld [vmem:[%s1318_s1 + $0x78] sm:$0xff]   ;;  %v986_v2 = vld [vmem:[%s1318_s1 + $0x70] sm:$0xff]   ;;  %v988_v4 = vld [vmem:[%s1318_s1 + $0x68] sm:$0xff]   ;;  %s1322_s16 = smov (!%p165_p3, %s791_s16), 63 }
   0xc   : > { %v985_v1 = vld [vmem:[%s1318_s1 + $0x38] sm:$0xff]   ;;  %848 = vmatprep.subr.bf16.mxu0 %v984_v0  ;;  %960 = vmatprep.subr.bf16.mxu1 %v984_v0  ;;  %v987_v3 = vld [vmem:[%s1318_s1 + $0x30] sm:$0xff]   ;;  %v989_v5 = vld [vmem:[%s1318_s1 + $0x28] sm:$0xff]   ;;  %s847_s4 = sshll.u32 %s1322_s16, 3 }
   0xd   : > { %849 = vmatpush3.bf16.msra.mxu0 %v985_v1  ;;  %968 = vmatpush3.bf16.msra.mxu1 %v985_v1  ;;  %v990_v6 = vld [vmem:[%s1318_s1 + $0x60] sm:$0xff]   ;;  %v992_v8 = vld [vmem:[%s1318_s1 + $0x58] sm:$0xff]   ;;  %s1183_s9 = scalar_lea.vmem %s1317_s0, %s847_s4  ;;  %v994_v10 = vld [vmem:[%s1318_s1 + $0x50] sm:$0xff]   ;;  %s1256_s30 = scalar_lea.vmem %s1320_s3, %s847_s4 }
   0xe   : > { %850 = vmatprep.subr.bf16.mxu0 %v986_v2  ;;  %961 = vmatprep.subr.bf16.mxu1 %v986_v2  ;;  %v991_v7 = vld [vmem:[%s1318_s1 + $0x20] sm:$0xff]   ;;  %v993_v9 = vld [vmem:[%s1318_s1 + $0x18] sm:$0xff]   ;;  %v995_v13 = vld [vmem:[%s1318_s1 + $0x10] sm:$0xff]  }
   0xf   : > { %v1002_v11 = vld [vmem:[%s1183_s9 + $0x4] ss:$8 sps:$4 sm:$0xff]   ;;  %v1000_v18 = vld [vmem:[%s1183_s9] ss:$8 sps:$4 sm:$0xff]   ;;  %v1006_v20 = vld [vmem:[%s1183_s9 + $0x14] ss:$8 sps:$4 sm:$0xff]  }
  0x10   : > { %v1005_v12 = vld [vmem:[%s1183_s9 + $0x84] ss:$8 sps:$4 sm:$0xff]   ;;  %537 = vmatprep.mubr.bf16.mxu0 %v1002_v11  ;;  %v1003_v19 = vld [vmem:[%s1183_s9 + $0x80] ss:$8 sps:$4 sm:$0xff]   ;;  %v1008_v21 = vld [vmem:[%s1183_s9 + $0x94] ss:$8 sps:$4 sm:$0xff]  }
  0x11   : > { %851 = vmatpush3.bf16.msra.mxu0 %v987_v3  ;;  %969 = vmatpush3.bf16.msra.mxu1 %v987_v3  ;;  %v996_v14 = vld [vmem:[%s1318_s1 + $0x48] sm:$0xff]   ;;  %v998_v16 = vld [vmem:[%s1318_s1 + $0x40] sm:$0xff]   ;;  %v1010_v22 = vld [vmem:[%s1183_s9 + $0x10] ss:$8 sps:$4 sm:$0xff]  }
  0x12   : > { %852 = vmatprep.subr.bf16.mxu0 %v988_v4  ;;  %962 = vmatprep.subr.bf16.mxu1 %v988_v4  ;;  %v997_v15 = vld [vmem:[%s1318_s1 + $0x8] sm:$0xff]   ;;  %v999_v17 = vld [vmem:[%s1318_s1] sm:$0xff]   ;;  %v1011_v23 = vld [vmem:[%s1183_s9 + $0x90] ss:$8 sps:$4 sm:$0xff]  }
  0x13   : > { %601 = vmatprep.mubr.bf16.mxu1 %v1005_v12  ;;  %v1012_v24 = vld [vmem:[%s1183_s9 + $0x24] ss:$8 sps:$4 sm:$0xff]   ;;  %v1016_v26 = vld [vmem:[%s1183_s9 + $0x20] ss:$8 sps:$4 sm:$0xff]   ;;  %v1018_v28 = vld [vmem:[%s1183_s9 + $0x34] ss:$8 sps:$4 sm:$0xff]  }
  0x14   : > { %v1014_v25 = vld [vmem:[%s1183_s9 + $0xa4] ss:$8 sps:$4 sm:$0xff]   ;;  %v1017_v27 = vld [vmem:[%s1183_s9 + $0xa0] ss:$8 sps:$4 sm:$0xff]   ;;  %v1020_v29 = vld [vmem:[%s1183_s9 + $0xb4] ss:$8 sps:$4 sm:$0xff]  }
  0x15   : > { %853 = vmatpush3.bf16.msra.mxu0 %v989_v5  ;;  %970 = vmatpush3.bf16.msra.mxu1 %v989_v5  ;;  %v1022_v30 = vld [vmem:[%s1183_s9 + $0x30] ss:$8 sps:$4 sm:$0xff]   ;;  %v1024_v32 = vld [vmem:[%s1183_s9 + $0x44] ss:$8 sps:$4 sm:$0xff]   ;;  %v1028_v34 = vld [vmem:[%s1183_s9 + $0x40] ss:$8 sps:$4 sm:$0xff]  }
  0x16   : > { %854 = vmatprep.subr.bf16.mxu0 %v990_v6  ;;  %963 = vmatprep.subr.bf16.mxu1 %v990_v6  ;;  %v1023_v31 = vld [vmem:[%s1183_s9 + $0xb0] ss:$8 sps:$4 sm:$0xff]   ;;  %v1026_v33 = vld [vmem:[%s1183_s9 + $0xc4] ss:$8 sps:$4 sm:$0xff]   ;;  %v1029_v35 = vld [vmem:[%s1183_s9 + $0xc0] ss:$8 sps:$4 sm:$0xff]  }
  0x17   : > { %v1030_v36 = vld [vmem:[%s1183_s9 + $0x54] ss:$8 sps:$4 sm:$0xff]   ;;  %v1034_v38 = vld [vmem:[%s1183_s9 + $0x50] ss:$8 sps:$4 sm:$0xff]   ;;  %v1036_v40 = vld [vmem:[%s1183_s9 + $0x64] ss:$8 sps:$4 sm:$0xff]  }
  0x18   : > { %v1032_v37 = vld [vmem:[%s1183_s9 + $0xd4] ss:$8 sps:$4 sm:$0xff]   ;;  %v1035_v39 = vld [vmem:[%s1183_s9 + $0xd0] ss:$8 sps:$4 sm:$0xff]   ;;  %v1038_v41 = vld [vmem:[%s1183_s9 + $0xe4] ss:$8 sps:$4 sm:$0xff]  }
  0x19   : > { %855 = vmatpush3.bf16.msra.mxu0 %v991_v7  ;;  %971 = vmatpush3.bf16.msra.mxu1 %v991_v7  ;;  %v1040_v42 = vld [vmem:[%s1183_s9 + $0x60] ss:$8 sps:$4 sm:$0xff]   ;;  %v1042_v44 = vld [vmem:[%s1183_s9 + $0x74] ss:$8 sps:$4 sm:$0xff]   ;;  %v1046_v46 = vld [vmem:[%s1183_s9 + $0x70] ss:$8 sps:$4 sm:$0xff]  }
  0x1a   : > { %856 = vmatprep.subr.bf16.mxu0 %v992_v8  ;;  %964 = vmatprep.subr.bf16.mxu1 %v992_v8  ;;  %v1041_v43 = vld [vmem:[%s1183_s9 + $0xe0] ss:$8 sps:$4 sm:$0xff]   ;;  %v1044_v45 = vld [vmem:[%s1183_s9 + $0xf4] ss:$8 sps:$4 sm:$0xff]   ;;  %v1047_v47 = vld [vmem:[%s1183_s9 + $0xf0] ss:$8 sps:$4 sm:$0xff]  }
  0x1b   : > { %v1241_v50 = vld [vmem:[%s1319_s2] ss:$0 sm:$0xff] }
  0x1d   : > { %857 = vmatpush3.bf16.msra.mxu0 %v993_v9  ;;  %972 = vmatpush3.bf16.msra.mxu1 %v993_v9 }
  0x1e   : > { %858 = vmatprep.subr.bf16.mxu0 %v994_v10  ;;  %965 = vmatprep.subr.bf16.mxu1 %v994_v10 }
  0x21   : > { %859 = vmatpush3.bf16.msra.mxu0 %v995_v13  ;;  %973 = vmatpush3.bf16.msra.mxu1 %v995_v13 }
  0x22   : > { %860 = vmatprep.subr.bf16.mxu0 %v996_v14  ;;  %966 = vmatprep.subr.bf16.mxu1 %v996_v14 }
  0x25   : > { %861 = vmatpush3.bf16.msra.mxu0 %v997_v15  ;;  %974 = vmatpush3.bf16.msra.mxu1 %v997_v15 }
  0x26   : > { %862 = vmatprep.subr.bf16.mxu0 %v998_v16  ;;  %967 = vmatprep.subr.bf16.mxu1 %v998_v16 }
  0x29   : > { %863 = vmatpush3.bf16.msra.mxu0 %v999_v17  ;;  %975 = vmatpush3.bf16.msra.mxu1 %v999_v17 }
  0x2c   : > { %538 = vmatmul.mubr.bf16.vlgmr.msra.gmra.mxu0 %v1000_v18  ;;  %602 = vmatmul.mubr.bf16.vlgmr.msra.gmra.mxu1 %v1003_v19 }
  0x2d   : > { %545 = vmatprep.mubr.bf16.mxu0 %v1006_v20  ;;  %609 = vmatprep.mubr.bf16.mxu1 %v1008_v21 }
  0x34   : > { %546 = vmatmul.mubr.bf16.gmra.mxu0 %v1010_v22  ;;  %610 = vmatmul.mubr.bf16.gmra.mxu1 %v1011_v23 }
  0x35   : > { %553 = vmatprep.mubr.bf16.mxu0 %v1012_v24  ;;  %617 = vmatprep.mubr.bf16.mxu1 %v1014_v25 }
  0x3c   : > { %554 = vmatmul.mubr.bf16.gmra.mxu0 %v1016_v26  ;;  %618 = vmatmul.mubr.bf16.gmra.mxu1 %v1017_v27 }
  0x3d   : > { %561 = vmatprep.mubr.bf16.mxu0 %v1018_v28  ;;  %625 = vmatprep.mubr.bf16.mxu1 %v1020_v29 }
  0x44   : > { %562 = vmatmul.mubr.bf16.gmra.mxu0 %v1022_v30  ;;  %626 = vmatmul.mubr.bf16.gmra.mxu1 %v1023_v31 }
  0x45   : > { %569 = vmatprep.mubr.bf16.mxu0 %v1024_v32  ;;  %633 = vmatprep.mubr.bf16.mxu1 %v1026_v33 }
  0x4c   : > { %570 = vmatmul.mubr.bf16.gmra.mxu0 %v1028_v34  ;;  %634 = vmatmul.mubr.bf16.gmra.mxu1 %v1029_v35 }
  0x4d   : > { %577 = vmatprep.mubr.bf16.mxu0 %v1030_v36  ;;  %641 = vmatprep.mubr.bf16.mxu1 %v1032_v37 }
  0x54   : > { %578 = vmatmul.mubr.bf16.gmra.mxu0 %v1034_v38  ;;  %642 = vmatmul.mubr.bf16.gmra.mxu1 %v1035_v39 }
  0x55   : > { %585 = vmatprep.mubr.bf16.mxu0 %v1036_v40  ;;  %649 = vmatprep.mubr.bf16.mxu1 %v1038_v41 }
  0x5c   : > { %586 = vmatmul.mubr.bf16.gmra.mxu0 %v1040_v42  ;;  %650 = vmatmul.mubr.bf16.gmra.mxu1 %v1041_v43 }
  0x5d   : > { %593 = vmatprep.mubr.bf16.mxu0 %v1042_v44  ;;  %657 = vmatprep.mubr.bf16.mxu1 %v1044_v45 }
  0x64   : > { %594 = vmatmul.mubr.bf16.gmra.mxu0 %v1046_v46  ;;  %658 = vmatmul.mubr.bf16.gmra.mxu1 %v1047_v47 }
  0xec   : > { %v864_v48 = vpop.f32.mrf.mxu0  ;;  %v912_v49 = vpop.f32.mrf.mxu1 }
  0xee   : > { %v865_v51 = vpop.f32.mrf.mxu0  ;;  %v913_v52 = vpop.f32.mrf.mxu1 }
  0xef   : > { %v866_v53 = vadd.f32 %v865_v51, %v864_v48  ;;  %v914_v54 = vadd.f32 %v913_v52, %v912_v49 }
  0xf0   : > { %v867_v55 = vpop.f32.mrf.mxu0  ;;  %v915_v56 = vpop.f32.mrf.mxu1 }
  0xf1   : > { %v540_v57 = vadd.f32 %v866_v53, %v1241_v50  ;;  %v604_v58 = vadd.f32 %v914_v54, %v1241_v50 }
  0xf2   : > { %v868_v59 = vpop.f32.mrf.mxu0  ;;  %v916_v60 = vpop.f32.mrf.mxu1 }
  0xf3   : > { %1048 = vtanh.f32 %v540_v57  ;;  %v869_v61 = vadd.f32 %v868_v59, %v867_v55  ;;  %v917_v62 = vadd.f32 %v916_v60, %v915_v56 }
  0xf4   : > { %1050 = vtanh.f32 %v604_v58  ;;  %v870_v63 = vpop.f32.mrf.mxu0  ;;  %v918_v0 = vpop.f32.mrf.mxu1 }
  0xf5   : > { %v543_v1 = vadd.f32 %v869_v61, %v1241_v50  ;;  %v607_v2 = vadd.f32 %v917_v62, %v1241_v50 }
  0xf6   : > { %v871_v3 = vpop.f32.mrf.mxu0  ;;  %v919_v4 = vpop.f32.mrf.mxu1 }
  0xf7   : > { %1052 = vtanh.f32 %v543_v1  ;;  %v872_v5 = vadd.f32 %v871_v3, %v870_v63  ;;  %v920_v6 = vadd.f32 %v919_v4, %v918_v0 }
  0xf8   : > { %1054 = vtanh.f32 %v607_v2  ;;  %v873_v7 = vpop.f32.mrf.mxu0  ;;  %v921_v8 = vpop.f32.mrf.mxu1 }
  0xf9   : > { %v548_v9 = vadd.f32 %v872_v5, %v1241_v50  ;;  %v612_v10 = vadd.f32 %v920_v6, %v1241_v50 }
  0xfa   : > { %v874_v11 = vpop.f32.mrf.mxu0  ;;  %v922_v12 = vpop.f32.mrf.mxu1 }
  0xfb   : > { %1056 = vtanh.f32 %v548_v9  ;;  %v875_v13 = vadd.f32 %v874_v11, %v873_v7  ;;  %v923_v14 = vadd.f32 %v922_v12, %v921_v8 }
  0xfc   : > { %1058 = vtanh.f32 %v612_v10  ;;  %v876_v15 = vpop.f32.mrf.mxu0  ;;  %v924_v16 = vpop.f32.mrf.mxu1 }
  0xfd   : > { %v551_v17 = vadd.f32 %v875_v13, %v1241_v50  ;;  %v615_v18 = vadd.f32 %v923_v14, %v1241_v50 }
  0xfe   : > { %v877_v19 = vpop.f32.mrf.mxu0  ;;  %v925_v20 = vpop.f32.mrf.mxu1 }
  0xff   : > { %1060 = vtanh.f32 %v551_v17  ;;  %v878_v21 = vadd.f32 %v877_v19, %v876_v15  ;;  %v926_v22 = vadd.f32 %v925_v20, %v924_v16 }
 0x100   : > { %v1049_v23 = vpop.eup %1048  ;;  %1062 = vtanh.f32 %v615_v18  ;;  %v879_v24 = vpop.f32.mrf.mxu0 }
 0x101   : > { %v927_v25 = vpop.f32.mrf.mxu1  ;;  %v1051_v26 = vpop.eup %1050  ;;  %698 = vst [vmem:[%s1256_s30] sm:$0xff] %v1049_v23  ;;  %v556_v27 = vadd.f32 %v878_v21, %v1241_v50  ;;  %v620_v28 = vadd.f32 %v926_v22, %v1241_v50 }
 0x102   : > { %714 = vst [vmem:[%s1256_s30 + $0x80] sm:$0xff] %v1051_v26  ;;  %v880_v29 = vpop.f32.mrf.mxu0 }
 0x103   : > { %v928_v30 = vpop.f32.mrf.mxu1  ;;  %1064 = vtanh.f32 %v556_v27  ;;  %v881_v31 = vadd.f32 %v880_v29, %v879_v24 }
 0x104   : > { %v929_v32 = vadd.f32 %v928_v30, %v927_v25  ;;  %v1053_v33 = vpop.eup %1052  ;;  %1066 = vtanh.f32 %v620_v28  ;;  %v882_v34 = vpop.f32.mrf.mxu0 }
 0x105   : > { %v930_v35 = vpop.f32.mrf.mxu1  ;;  %v1055_v36 = vpop.eup %1054  ;;  %699 = vst [vmem:[%s1256_s30 + $0x8] sm:$0xff] %v1053_v33  ;;  %v559_v37 = vadd.f32 %v881_v31, %v1241_v50 }
 0x106   : > { %v623_v38 = vadd.f32 %v929_v32, %v1241_v50  ;;  %715 = vst [vmem:[%s1256_s30 + $0x88] sm:$0xff] %v1055_v36  ;;  %v883_v39 = vpop.f32.mrf.mxu0 }
 0x107   : > { %v931_v40 = vpop.f32.mrf.mxu1  ;;  %1068 = vtanh.f32 %v559_v37  ;;  %v884_v41 = vadd.f32 %v883_v39, %v882_v34 }
 0x108   : > { %v932_v42 = vadd.f32 %v931_v40, %v930_v35  ;;  %v1057_v43 = vpop.eup %1056  ;;  %1070 = vtanh.f32 %v623_v38  ;;  %v885_v44 = vpop.f32.mrf.mxu0 }
 0x109   : > { %v933_v45 = vpop.f32.mrf.mxu1  ;;  %v1059_v46 = vpop.eup %1058  ;;  %700 = vst [vmem:[%s1256_s30 + $0x10] sm:$0xff] %v1057_v43  ;;  %v564_v47 = vadd.f32 %v884_v41, %v1241_v50 }
 0x10a   : > { %v628_v48 = vadd.f32 %v932_v42, %v1241_v50  ;;  %716 = vst [vmem:[%s1256_s30 + $0x90] sm:$0xff] %v1059_v46  ;;  %v886_v49 = vpop.f32.mrf.mxu0 }
 0x10b   : > { %v934_v51 = vpop.f32.mrf.mxu1  ;;  %1072 = vtanh.f32 %v564_v47  ;;  %v887_v52 = vadd.f32 %v886_v49, %v885_v44 }
 0x10c   : > { %v935_v53 = vadd.f32 %v934_v51, %v933_v45  ;;  %v1061_v54 = vpop.eup %1060  ;;  %1074 = vtanh.f32 %v628_v48  ;;  %v888_v55 = vpop.f32.mrf.mxu0 }
 0x10d   : > { %v936_v56 = vpop.f32.mrf.mxu1  ;;  %v1063_v57 = vpop.eup %1062  ;;  %701 = vst [vmem:[%s1256_s30 + $0x18] sm:$0xff] %v1061_v54  ;;  %v567_v58 = vadd.f32 %v887_v52, %v1241_v50 }
 0x10e   : > { %v631_v59 = vadd.f32 %v935_v53, %v1241_v50  ;;  %717 = vst [vmem:[%s1256_s30 + $0x98] sm:$0xff] %v1063_v57  ;;  %v889_v60 = vpop.f32.mrf.mxu0 }
 0x10f   : > { %v937_v61 = vpop.f32.mrf.mxu1  ;;  %1076 = vtanh.f32 %v567_v58  ;;  %v890_v62 = vadd.f32 %v889_v60, %v888_v55 }
 0x110   : > { %v938_v63 = vadd.f32 %v937_v61, %v936_v56  ;;  %v1065_v0 = vpop.eup %1064  ;;  %1078 = vtanh.f32 %v631_v59  ;;  %v891_v1 = vpop.f32.mrf.mxu0 }
 0x111   : > { %v939_v2 = vpop.f32.mrf.mxu1  ;;  %v1067_v3 = vpop.eup %1066  ;;  %702 = vst [vmem:[%s1256_s30 + $0x20] sm:$0xff] %v1065_v0  ;;  %v572_v4 = vadd.f32 %v890_v62, %v1241_v50 }
 0x112   : > { %v636_v5 = vadd.f32 %v938_v63, %v1241_v50  ;;  %718 = vst [vmem:[%s1256_s30 + $0xa0] sm:$0xff] %v1067_v3  ;;  %v892_v6 = vpop.f32.mrf.mxu0 }
 0x113   : > { %v940_v7 = vpop.f32.mrf.mxu1  ;;  %1080 = vtanh.f32 %v572_v4  ;;  %v893_v8 = vadd.f32 %v892_v6, %v891_v1 }
 0x114   : > { %v941_v9 = vadd.f32 %v940_v7, %v939_v2  ;;  %v1069_v10 = vpop.eup %1068  ;;  %1082 = vtanh.f32 %v636_v5  ;;  %v894_v11 = vpop.f32.mrf.mxu0 }
 0x115   : > { %v942_v12 = vpop.f32.mrf.mxu1  ;;  %v1071_v13 = vpop.eup %1070  ;;  %703 = vst [vmem:[%s1256_s30 + $0x28] sm:$0xff] %v1069_v10  ;;  %v575_v14 = vadd.f32 %v893_v8, %v1241_v50 }
 0x116   : > { %v639_v15 = vadd.f32 %v941_v9, %v1241_v50  ;;  %719 = vst [vmem:[%s1256_s30 + $0xa8] sm:$0xff] %v1071_v13  ;;  %v895_v16 = vpop.f32.mrf.mxu0 }
 0x117   : > { %v943_v17 = vpop.f32.mrf.mxu1  ;;  %1084 = vtanh.f32 %v575_v14  ;;  %v896_v18 = vadd.f32 %v895_v16, %v894_v11 }
 0x118   : > { %v944_v19 = vadd.f32 %v943_v17, %v942_v12  ;;  %v1073_v20 = vpop.eup %1072  ;;  %1086 = vtanh.f32 %v639_v15  ;;  %v897_v21 = vpop.f32.mrf.mxu0 }
 0x119   : > { %v945_v22 = vpop.f32.mrf.mxu1  ;;  %v1075_v23 = vpop.eup %1074  ;;  %704 = vst [vmem:[%s1256_s30 + $0x30] sm:$0xff] %v1073_v20  ;;  %v580_v24 = vadd.f32 %v896_v18, %v1241_v50 }
 0x11a   : > { %v644_v25 = vadd.f32 %v944_v19, %v1241_v50  ;;  %720 = vst [vmem:[%s1256_s30 + $0xb0] sm:$0xff] %v1075_v23  ;;  %v898_v26 = vpop.f32.mrf.mxu0 }
 0x11b   : > { %v946_v27 = vpop.f32.mrf.mxu1  ;;  %1088 = vtanh.f32 %v580_v24  ;;  %v899_v28 = vadd.f32 %v898_v26, %v897_v21 }
 0x11c   : > { %v947_v29 = vadd.f32 %v946_v27, %v945_v22  ;;  %v1077_v30 = vpop.eup %1076  ;;  %1090 = vtanh.f32 %v644_v25  ;;  %v900_v31 = vpop.f32.mrf.mxu0 }
 0x11d   : > { %v948_v32 = vpop.f32.mrf.mxu1  ;;  %v1079_v33 = vpop.eup %1078  ;;  %705 = vst [vmem:[%s1256_s30 + $0x38] sm:$0xff] %v1077_v30  ;;  %v583_v34 = vadd.f32 %v899_v28, %v1241_v50 }
 0x11e   : > { %v647_v35 = vadd.f32 %v947_v29, %v1241_v50  ;;  %721 = vst [vmem:[%s1256_s30 + $0xb8] sm:$0xff] %v1079_v33  ;;  %v901_v36 = vpop.f32.mrf.mxu0 }
 0x11f   : > { %v949_v37 = vpop.f32.mrf.mxu1  ;;  %1092 = vtanh.f32 %v583_v34  ;;  %v902_v38 = vadd.f32 %v901_v36, %v900_v31 }
 0x120   : > { %v950_v39 = vadd.f32 %v949_v37, %v948_v32  ;;  %v1081_v40 = vpop.eup %1080  ;;  %1094 = vtanh.f32 %v647_v35  ;;  %v903_v41 = vpop.f32.mrf.mxu0 }
 0x121   : > { %v951_v42 = vpop.f32.mrf.mxu1  ;;  %v1083_v43 = vpop.eup %1082  ;;  %706 = vst [vmem:[%s1256_s30 + $0x40] sm:$0xff] %v1081_v40  ;;  %v588_v44 = vadd.f32 %v902_v38, %v1241_v50 }
 0x122   : > { %v652_v45 = vadd.f32 %v950_v39, %v1241_v50  ;;  %722 = vst [vmem:[%s1256_s30 + $0xc0] sm:$0xff] %v1083_v43  ;;  %v904_v46 = vpop.f32.mrf.mxu0 }
 0x123   : > { %v952_v47 = vpop.f32.mrf.mxu1  ;;  %1096 = vtanh.f32 %v588_v44  ;;  %v905_v48 = vadd.f32 %v904_v46, %v903_v41 }
 0x124   : > { %v953_v49 = vadd.f32 %v952_v47, %v951_v42  ;;  %v1085_v51 = vpop.eup %1084  ;;  %1098 = vtanh.f32 %v652_v45  ;;  %v906_v52 = vpop.f32.mrf.mxu0 }
 0x125   : > { %v954_v53 = vpop.f32.mrf.mxu1  ;;  %v1087_v54 = vpop.eup %1086  ;;  %707 = vst [vmem:[%s1256_s30 + $0x48] sm:$0xff] %v1085_v51  ;;  %v591_v55 = vadd.f32 %v905_v48, %v1241_v50 }
 0x126   : > { %v655_v56 = vadd.f32 %v953_v49, %v1241_v50  ;;  %723 = vst [vmem:[%s1256_s30 + $0xc8] sm:$0xff] %v1087_v54  ;;  %v907_v57 = vpop.f32.mrf.mxu0 }
 0x127   : > { %v955_v58 = vpop.f32.mrf.mxu1  ;;  %1100 = vtanh.f32 %v591_v55  ;;  %v908_v59 = vadd.f32 %v907_v57, %v906_v52 }
 0x128   : > { %v956_v60 = vadd.f32 %v955_v58, %v954_v53  ;;  %v1089_v61 = vpop.eup %1088  ;;  %1102 = vtanh.f32 %v655_v56  ;;  %v909_v62 = vpop.f32.mrf.mxu0 }
 0x129   : > { %v957_v63 = vpop.f32.mrf.mxu1  ;;  %v1091_v0 = vpop.eup %1090  ;;  %708 = vst [vmem:[%s1256_s30 + $0x50] sm:$0xff] %v1089_v61  ;;  %v596_v1 = vadd.f32 %v908_v59, %v1241_v50 }
 0x12a   : > { %v660_v2 = vadd.f32 %v956_v60, %v1241_v50  ;;  %724 = vst [vmem:[%s1256_s30 + $0xd0] sm:$0xff] %v1091_v0  ;;  %v910_v3 = vpop.f32.mrf.mxu0 }
 0x12b   : > { %v958_v4 = vpop.f32.mrf.mxu1  ;;  %1104 = vtanh.f32 %v596_v1  ;;  %v911_v5 = vadd.f32 %v910_v3, %v909_v62 }
 0x12c   : > { %v959_v6 = vadd.f32 %v958_v4, %v957_v63  ;;  %v1093_v7 = vpop.eup %1092  ;;  %1106 = vtanh.f32 %v660_v2 }
 0x12d   : > { %v1095_v8 = vpop.eup %1094  ;;  %709 = vst [vmem:[%s1256_s30 + $0x58] sm:$0xff] %v1093_v7  ;;  %v599_v9 = vadd.f32 %v911_v5, %v1241_v50 }
 0x12e   : > { %v663_v10 = vadd.f32 %v959_v6, %v1241_v50  ;;  %725 = vst [vmem:[%s1256_s30 + $0xd8] sm:$0xff] %v1095_v8 }
 0x12f   : > { %1108 = vtanh.f32 %v599_v9 }
 0x130   : > { %v1097_v11 = vpop.eup %1096  ;;  %1110 = vtanh.f32 %v663_v10 }
 0x131   : > { %v1099_v12 = vpop.eup %1098  ;;  %710 = vst [vmem:[%s1256_s30 + $0x60] sm:$0xff] %v1097_v11 }
 0x132   : > { %726 = vst [vmem:[%s1256_s30 + $0xe0] sm:$0xff] %v1099_v12 }
 0x134   : > { %v1101_v13 = vpop.eup %1100 }
 0x135   : > { %v1103_v14 = vpop.eup %1102  ;;  %711 = vst [vmem:[%s1256_s30 + $0x68] sm:$0xff] %v1101_v13 }
 0x136   : > { %727 = vst [vmem:[%s1256_s30 + $0xe8] sm:$0xff] %v1103_v14 }
 0x138   : > { %v1105_v15 = vpop.eup %1104 }
 0x139   : > { %v1107_v16 = vpop.eup %1106  ;;  %712 = vst [vmem:[%s1256_s30 + $0x70] sm:$0xff] %v1105_v15 }
 0x13a   : > { %728 = vst [vmem:[%s1256_s30 + $0xf0] sm:$0xff] %v1107_v16 }
 0x13c   : > { %v1109_v17 = vpop.eup %1108 }
 0x13d   : > { %v1111_v18 = vpop.eup %1110  ;;  %713 = vst [vmem:[%s1256_s30 + $0x78] sm:$0xff] %v1109_v17 }
 0x13e   : > { %729 = vst [vmem:[%s1256_s30 + $0xf8] sm:$0xff] %v1111_v18 }
 0x13f PF: > { %s13_s12 = sadd.s32 1, %s1118_s12  }
 0x140   : > { %p10_p4 = scmp.ge.s32.totalorder %s13_s12, 4  }
 0x142   :  { %12 = sbr.rel (!%p10_p4) target bundleno = 1 (0x1), region = 62 }

</bundles_post_ra>
